<compile_context>
chip_gen: v5e
topology: v5e:2x2
jax: 0.10.0
libtpu: 0.0.40
codegen_flags: <defaults>
</compile_context>

<pallas_src>
import functools

import jax
import jax.numpy as jnp
from jax.experimental import pallas as pl
from jax.experimental.pallas import tpu as pltpu

NORMALIZATION = ((0.485, 0.456, 0.406), (0.229, 0.224, 0.225))


# ------------------------------ Pallas kernel --------------------------------

def _fused_encoder_kernel(img_ref, tac_ref, wc_ref, bc_ref, wi_ref, bi_ref,
                          wt_ref, bt_ref, o_ref, patch_ref, *, H, W, C):
    """One batch element: in-kernel im2col -> conv -> ReLU -> GAP ->
    projector_img / projector_tac -> concat, stored with a single write."""
    kpad = patch_ref.shape[-1]

    # Build 3x3 (pad=1) im2col patches in VMEM scratch. img_ref holds the
    # border-padded image; the pad value was chosen so the *folded*
    # normalization maps it to exactly 0 (== zero-pad of the normalized image).
    img = img_ref[0].astype(jnp.float32)                     # (H+2, W+2, C)
    patch_ref[...] = jnp.zeros_like(patch_ref)               # zero incl. K-pad cols
    for dy in range(3):
        for dx in range(3):
            t = dy * 3 + dx
            patch_ref[:, :, t * C:(t + 1) * C] = img[dy:dy + H, dx:dx + W, :]

    patches = patch_ref[...].reshape(H * W, kpad).astype(jnp.bfloat16)

    # Conv-as-matmul on the MXU (bf16 operands, f32 accumulate), ReLU, GAP.
    h = jnp.dot(patches, wc_ref[...], preferred_element_type=jnp.float32)
    h = jnp.maximum(h + bc_ref[...], 0.0)                    # (HW, gap_dim) f32
    img_feat = jnp.mean(h, axis=0, keepdims=True)            # (1, gap_dim)

    # Fused projectors + concat: one lane-dense store of the whole output row.
    img_emb = jnp.dot(img_feat, wi_ref[...],
                      preferred_element_type=jnp.float32) + bi_ref[...]
    tac_emb = jnp.dot(tac_ref[0], wt_ref[...],
                      preferred_element_type=jnp.float32) + bt_ref[...]
    o_ref[0] = jnp.concatenate([img_emb, tac_emb], axis=-1)  # (1, 2*emb)


# ------------------------------ Pallas wrapper --------------------------------

def _fused_encoder(img_pad_bf16, tac_f32, wc, bc, wi, bi, wt, bt):
    B, Hp2, Wp2, C = img_pad_bf16.shape
    H, W = Hp2 - 2, Wp2 - 2
    kpad, gap_dim = wc.shape
    emb = wi.shape[1]
    tdim = tac_f32.shape[-1]

    kernel = functools.partial(_fused_encoder_kernel, H=H, W=W, C=C)
    out = pl.pallas_call(
        kernel,
        out_shape=jax.ShapeDtypeStruct((B, 1, 2 * emb), jnp.float32),
        grid=(B,),
        in_specs=[
            pl.BlockSpec((1, Hp2, Wp2, C), lambda b: (b, 0, 0, 0)),   # image
            pl.BlockSpec((1, 1, tdim), lambda b: (b, 0, 0)),          # tac
            pl.BlockSpec((kpad, gap_dim), lambda b: (0, 0)),          # folded conv W
            pl.BlockSpec((1, gap_dim), lambda b: (0, 0)),             # folded conv b
            pl.BlockSpec((gap_dim, emb), lambda b: (0, 0)),           # wi
            pl.BlockSpec((1, emb), lambda b: (0, 0)),                 # bi
            pl.BlockSpec((tdim, emb), lambda b: (0, 0)),              # wt
            pl.BlockSpec((1, emb), lambda b: (0, 0)),                 # bt
        ],
        out_specs=pl.BlockSpec((1, 1, 2 * emb), lambda b: (b, 0, 0)),
        scratch_shapes=[pltpu.VMEM((H, W, kpad), jnp.float32)],
        compiler_params=pltpu.CompilerParams(
            dimension_semantics=("parallel",)),
    )(img_pad_bf16, tac_f32, wc, bc, wi, bi, wt, bt)
    return out[:, 0, :]                                               # (B, 2*emb)


# --------------------------------- forward -----------------------------------

def init_params(key, gap_dim, emb_dim):
    k1, k2, k3, k4, k5 = jax.random.split(key, 5)
    return {
        # synthetic backbone conv: 3x3x3 -> gap_dim, rows ordered (dy, dx, c)
        "conv_w": 0.1 * jax.random.normal(k1, (27, gap_dim), jnp.float32),
        "conv_b": 0.01 * jax.random.normal(k2, (1, gap_dim), jnp.float32),
        # projector_img: Linear(gap_dim, emb_dim)
        "wi": 0.1 * jax.random.normal(k3, (gap_dim, emb_dim), jnp.float32),
        "bi": 0.01 * jax.random.normal(k4, (1, emb_dim), jnp.float32),
        # projector_tac: Linear(20, emb_dim)
        "wt": 0.1 * jax.random.normal(k5, (20, emb_dim), jnp.float32),
        "bt": jnp.zeros((1, emb_dim), jnp.float32),
    }


def encoder_no_pre_forward(imag_u8_nchw, tac, params):
    """Equivalent of Encoder_no_pre.forward for the tuple input branch."""
    B, C, H, W = imag_u8_nchw.shape
    mean = jnp.asarray(NORMALIZATION[0], jnp.float32)
    std = jnp.asarray(NORMALIZATION[1], jnp.float32)

    conv_w = params["conv_w"]                           # (9*C, gap_dim), (dy,dx,c) rows
    conv_b = params["conv_b"]                           # (1, gap_dim)
    gap_dim = conv_w.shape[1]

    # Fold ConvertImageDtype (x/255) + Normalize ((.-mean)/std) into the conv:
    #   conv(norm(x)) == x @ (conv_w / (255*std)) + (conv_b - (mean/std)_tiled @ conv_w)
    # mean/std are repeated per tap in the same (dy, dx, c) order as conv_w rows.
    scale = jnp.tile(1.0 / (255.0 * std), 9)[:, None]   # (9C, 1)
    shift = jnp.tile(mean / std, 9)                     # (9C,)
    kpad = ((9 * C + 31) // 32) * 32                    # pad contraction 27 -> 32
    wc = jnp.zeros((kpad, gap_dim), jnp.float32)
    wc = wc.at[:9 * C].set(conv_w * scale).astype(jnp.bfloat16)
    bc = conv_b - shift @ conv_w                        # (1, gap_dim) f32

    # uint8 NCHW -> bf16 NHWC, border-padded with 255*mean so that, after the
    # folded normalization, the border contributes exactly 0 (i.e. matches
    # zero-padding the *normalized* image, like the torch backbone's conv).
    x = imag_u8_nchw.astype(jnp.float32).transpose(0, 2, 3, 1)        # (B,H,W,C)
    pad_val = 255.0 * mean
    x_pad = jnp.pad(x - pad_val, ((0, 0), (1, 1), (1, 1), (0, 0))) + pad_val
    x_pad = x_pad.astype(jnp.bfloat16)                                # (B,H+2,W+2,C)

    tac3 = tac.astype(jnp.float32).reshape(B, 1, -1)                  # (B,1,20)

    return _fused_encoder(x_pad, tac3, wc, bc,
                          params["wi"], params["bi"],
                          params["wt"], params["bt"])                 # (B, 2*emb)


# ----------------------------------- main -------------------------------------

if __name__ == "__main__":
    B, H, W = 2, 16, 16
    GAP_DIM, EMB_DIM = 32, 32

    root = jax.random.PRNGKey(0)
    k_img, k_tac, k_par = jax.random.split(root, 3)

    imag = jax.random.randint(k_img, (B, 3, H, W), 0, 256,
                              dtype=jnp.int32).astype(jnp.uint8)
    tac = jax.random.normal(k_tac, (B, 20), jnp.float32)
    params = init_params(k_par, GAP_DIM, EMB_DIM)

    feat = jax.jit(encoder_no_pre_forward)(imag, tac, params)
    feat = jax.block_until_ready(feat)

    assert feat.shape == (B, 2 * EMB_DIM), feat.shape
    assert feat.dtype == jnp.float32
    print("KERNEL_OK")
</pallas_src>

<mosaic_0001>
module attributes {stable_mosaic.version = 11 : i64} {
  func.func @_fused_encoder_kernel(%arg0: i32, %arg1: memref<1x18x18x3xbf16, #tpu.memory_space<vmem>>, %arg2: memref<1x1x20xf32, #tpu.memory_space<vmem>>, %arg3: memref<32x32xbf16, #tpu.memory_space<vmem>>, %arg4: memref<1x32xf32, #tpu.memory_space<vmem>>, %arg5: memref<32x32xf32, #tpu.memory_space<vmem>>, %arg6: memref<1x32xf32, #tpu.memory_space<vmem>>, %arg7: memref<20x32xf32, #tpu.memory_space<vmem>>, %arg8: memref<1x32xf32, #tpu.memory_space<vmem>>, %arg9: memref<1x1x64xf32, #tpu.memory_space<vmem>>, %arg10: memref<16x16x32xf32, #tpu.memory_space<vmem>>) attributes {dimension_semantics = [#tpu.dimension_semantics<parallel>], iteration_bounds = array<i64: 2>, scalar_prefetch = 0 : i64, scratch_operands = 1 : i64, tpu.core_type = #tpu.core_type<tc>, window_params = [{transform_indices = @transform_0, window_bounds = array<i64: 1, 18, 18, 3>}, {transform_indices = @transform_1, window_bounds = array<i64: 1, 1, 20>}, {pipeline_mode = #tpu.pipeline_mode<synchronous>, transform_indices = @transform_2, window_bounds = array<i64: 32, 32>}, {pipeline_mode = #tpu.pipeline_mode<synchronous>, transform_indices = @transform_3, window_bounds = array<i64: 1, 32>}, {pipeline_mode = #tpu.pipeline_mode<synchronous>, transform_indices = @transform_4, window_bounds = array<i64: 32, 32>}, {pipeline_mode = #tpu.pipeline_mode<synchronous>, transform_indices = @transform_5, window_bounds = array<i64: 1, 32>}, {pipeline_mode = #tpu.pipeline_mode<synchronous>, transform_indices = @transform_6, window_bounds = array<i64: 20, 32>}, {pipeline_mode = #tpu.pipeline_mode<synchronous>, transform_indices = @transform_7, window_bounds = array<i64: 1, 32>}, {transform_indices = @transform_8, window_bounds = array<i64: 1, 1, 64>}]} {
    %c0 = arith.constant 0 : index
    %c0_0 = arith.constant 0 : index
    %c0_1 = arith.constant 0 : index
    %c0_2 = arith.constant 0 : index
    %0 = vector.load %arg1[%c0, %c0_0, %c0_1, %c0_2] : memref<1x18x18x3xbf16, #tpu.memory_space<vmem>>, vector<1x18x18x3xbf16>
    %1 = vector.shape_cast %0 : vector<1x18x18x3xbf16> to vector<18x18x3xbf16>
    %2 = arith.extf %1 : vector<18x18x3xbf16> to vector<18x18x3xf32>
    %cst = arith.constant 0.000000e+00 : f32
    %3 = vector.broadcast %cst : f32 to vector<16x16x32xf32>
    %c0_3 = arith.constant 0 : index
    %c0_4 = arith.constant 0 : index
    %c0_5 = arith.constant 0 : index
    %4 = vector.load %arg10[%c0_3, %c0_4, %c0_5] : memref<16x16x32xf32, #tpu.memory_space<vmem>>, vector<16x16x32xf32>
    tpu.vector_store %arg10[%c0_3, %c0_4, %c0_5], %3 {strides = array<i32>} : memref<16x16x32xf32, #tpu.memory_space<vmem>>, vector<16x16x32xf32>,
    %5 = vector.extract_strided_slice %2 {offsets = [0, 0, 0], sizes = [16, 16, 3], strides = [1, 1, 1]} : vector<18x18x3xf32> to vector<16x16x3xf32>
    %c0_6 = arith.constant 0 : index
    %c0_7 = arith.constant 0 : index
    %c0_8 = arith.constant 0 : index
    %6 = vector.load %arg10[%c0_6, %c0_7, %c0_8] : memref<16x16x32xf32, #tpu.memory_space<vmem>>, vector<16x16x3xf32>
    tpu.vector_store %arg10[%c0_6, %c0_7, %c0_8], %5 {strides = array<i32>} : memref<16x16x32xf32, #tpu.memory_space<vmem>>, vector<16x16x3xf32>,
    %7 = vector.extract_strided_slice %2 {offsets = [0, 1, 0], sizes = [16, 16, 3], strides = [1, 1, 1]} : vector<18x18x3xf32> to vector<16x16x3xf32>
    %c0_9 = arith.constant 0 : index
    %c0_10 = arith.constant 0 : index
    %c3 = arith.constant 3 : index
    %8 = vector.load %arg10[%c0_9, %c0_10, %c3] : memref<16x16x32xf32, #tpu.memory_space<vmem>>, vector<16x16x3xf32>
    tpu.vector_store %arg10[%c0_9, %c0_10, %c3], %7 {strides = array<i32>} : memref<16x16x32xf32, #tpu.memory_space<vmem>>, vector<16x16x3xf32>,
    %9 = vector.extract_strided_slice %2 {offsets = [0, 2, 0], sizes = [16, 16, 3], strides = [1, 1, 1]} : vector<18x18x3xf32> to vector<16x16x3xf32>
    %c0_11 = arith.constant 0 : index
    %c0_12 = arith.constant 0 : index
    %c6 = arith.constant 6 : index
    %10 = vector.load %arg10[%c0_11, %c0_12, %c6] : memref<16x16x32xf32, #tpu.memory_space<vmem>>, vector<16x16x3xf32>
    tpu.vector_store %arg10[%c0_11, %c0_12, %c6], %9 {strides = array<i32>} : memref<16x16x32xf32, #tpu.memory_space<vmem>>, vector<16x16x3xf32>,
    %11 = vector.extract_strided_slice %2 {offsets = [1, 0, 0], sizes = [16, 16, 3], strides = [1, 1, 1]} : vector<18x18x3xf32> to vector<16x16x3xf32>
    %c0_13 = arith.constant 0 : index
    %c0_14 = arith.constant 0 : index
    %c9 = arith.constant 9 : index
    %12 = vector.load %arg10[%c0_13, %c0_14, %c9] : memref<16x16x32xf32, #tpu.memory_space<vmem>>, vector<16x16x3xf32>
    tpu.vector_store %arg10[%c0_13, %c0_14, %c9], %11 {strides = array<i32>} : memref<16x16x32xf32, #tpu.memory_space<vmem>>, vector<16x16x3xf32>,
    %13 = vector.extract_strided_slice %2 {offsets = [1, 1, 0], sizes = [16, 16, 3], strides = [1, 1, 1]} : vector<18x18x3xf32> to vector<16x16x3xf32>
    %c0_15 = arith.constant 0 : index
    %c0_16 = arith.constant 0 : index
    %c12 = arith.constant 12 : index
    %14 = vector.load %arg10[%c0_15, %c0_16, %c12] : memref<16x16x32xf32, #tpu.memory_space<vmem>>, vector<16x16x3xf32>
    tpu.vector_store %arg10[%c0_15, %c0_16, %c12], %13 {strides = array<i32>} : memref<16x16x32xf32, #tpu.memory_space<vmem>>, vector<16x16x3xf32>,
    %15 = vector.extract_strided_slice %2 {offsets = [1, 2, 0], sizes = [16, 16, 3], strides = [1, 1, 1]} : vector<18x18x3xf32> to vector<16x16x3xf32>
    %c0_17 = arith.constant 0 : index
    %c0_18 = arith.constant 0 : index
    %c15 = arith.constant 15 : index
    %16 = vector.load %arg10[%c0_17, %c0_18, %c15] : memref<16x16x32xf32, #tpu.memory_space<vmem>>, vector<16x16x3xf32>
    tpu.vector_store %arg10[%c0_17, %c0_18, %c15], %15 {strides = array<i32>} : memref<16x16x32xf32, #tpu.memory_space<vmem>>, vector<16x16x3xf32>,
    %17 = vector.extract_strided_slice %2 {offsets = [2, 0, 0], sizes = [16, 16, 3], strides = [1, 1, 1]} : vector<18x18x3xf32> to vector<16x16x3xf32>
    %c0_19 = arith.constant 0 : index
    %c0_20 = arith.constant 0 : index
    %c18 = arith.constant 18 : index
    %18 = vector.load %arg10[%c0_19, %c0_20, %c18] : memref<16x16x32xf32, #tpu.memory_space<vmem>>, vector<16x16x3xf32>
    tpu.vector_store %arg10[%c0_19, %c0_20, %c18], %17 {strides = array<i32>} : memref<16x16x32xf32, #tpu.memory_space<vmem>>, vector<16x16x3xf32>,
    %19 = vector.extract_strided_slice %2 {offsets = [2, 1, 0], sizes = [16, 16, 3], strides = [1, 1, 1]} : vector<18x18x3xf32> to vector<16x16x3xf32>
    %c0_21 = arith.constant 0 : index
    %c0_22 = arith.constant 0 : index
    %c21 = arith.constant 21 : index
    %20 = vector.load %arg10[%c0_21, %c0_22, %c21] : memref<16x16x32xf32, #tpu.memory_space<vmem>>, vector<16x16x3xf32>
    tpu.vector_store %arg10[%c0_21, %c0_22, %c21], %19 {strides = array<i32>} : memref<16x16x32xf32, #tpu.memory_space<vmem>>, vector<16x16x3xf32>,
    %21 = vector.extract_strided_slice %2 {offsets = [2, 2, 0], sizes = [16, 16, 3], strides = [1, 1, 1]} : vector<18x18x3xf32> to vector<16x16x3xf32>
    %c0_23 = arith.constant 0 : index
    %c0_24 = arith.constant 0 : index
    %c24 = arith.constant 24 : index
    %22 = vector.load %arg10[%c0_23, %c0_24, %c24] : memref<16x16x32xf32, #tpu.memory_space<vmem>>, vector<16x16x3xf32>
    tpu.vector_store %arg10[%c0_23, %c0_24, %c24], %21 {strides = array<i32>} : memref<16x16x32xf32, #tpu.memory_space<vmem>>, vector<16x16x3xf32>,
    %c0_25 = arith.constant 0 : index
    %c0_26 = arith.constant 0 : index
    %c0_27 = arith.constant 0 : index
    %23 = vector.load %arg10[%c0_25, %c0_26, %c0_27] : memref<16x16x32xf32, #tpu.memory_space<vmem>>, vector<16x16x32xf32>
    %24 = vector.shape_cast %23 : vector<16x16x32xf32> to vector<256x32xf32>
    %25 = arith.truncf %24 : vector<256x32xf32> to vector<256x32xbf16>
    %c0_28 = arith.constant 0 : index
    %c0_29 = arith.constant 0 : index
    %26 = vector.load %arg3[%c0_28, %c0_29] : memref<32x32xbf16, #tpu.memory_space<vmem>>, vector<32x32xbf16>
    %cst_30 = arith.constant dense<0.000000e+00> : vector<256x32xf32>
    %27 = tpu.matmul %25, %26, %cst_30 {dimension_numbers = #tpu.dot_dimension_numbers<[1], [0], [0], [1], [0, 0, 1, 1], [], []>} : vector<256x32xbf16>, vector<32x32xbf16>, vector<256x32xf32> -> vector<256x32xf32>
    %c0_31 = arith.constant 0 : index
    %c0_32 = arith.constant 0 : index
    %28 = vector.load %arg4[%c0_31, %c0_32] : memref<1x32xf32, #tpu.memory_space<vmem>>, vector<1x32xf32>
    %29 = vector.broadcast %28 : vector<1x32xf32> to vector<256x32xf32>
    %30 = arith.addf %27, %29 : vector<256x32xf32>
    %cst_33 = arith.constant 0.000000e+00 : f32
    %31 = vector.broadcast %cst_33 : f32 to vector<256x32xf32>
    %32 = arith.maximumf %30, %31 : vector<256x32xf32>
    %cst_34 = arith.constant dense<0.000000e+00> : vector<32xf32>
    %33 = vector.multi_reduction <add>, %32, %cst_34 [0] : vector<256x32xf32> to vector<32xf32>
    %34 = vector.shape_cast %33 : vector<32xf32> to vector<1x32xf32>
    %cst_35 = arith.constant 2.560000e+02 : f32
    %35 = vector.broadcast %cst_35 : f32 to vector<1x32xf32>
    %36 = arith.divf %34, %35 : vector<1x32xf32>
    %c0_36 = arith.constant 0 : index
    %c0_37 = arith.constant 0 : index
    %37 = vector.load %arg5[%c0_36, %c0_37] : memref<32x32xf32, #tpu.memory_space<vmem>>, vector<32x32xf32>
    %cst_38 = arith.constant dense<0.000000e+00> : vector<1x32xf32>
    %38 = tpu.matmul %36, %37, %cst_38 {dimension_numbers = #tpu.dot_dimension_numbers<[1], [0], [0], [1], [0, 0, 1, 1], [], []>} : vector<1x32xf32>, vector<32x32xf32>, vector<1x32xf32> -> vector<1x32xf32>
    %c0_39 = arith.constant 0 : index
    %c0_40 = arith.constant 0 : index
    %39 = vector.load %arg6[%c0_39, %c0_40] : memref<1x32xf32, #tpu.memory_space<vmem>>, vector<1x32xf32>
    %40 = arith.addf %38, %39 : vector<1x32xf32>
    %c0_41 = arith.constant 0 : index
    %c0_42 = arith.constant 0 : index
    %c0_43 = arith.constant 0 : index
    %41 = vector.load %arg2[%c0_41, %c0_42, %c0_43] : memref<1x1x20xf32, #tpu.memory_space<vmem>>, vector<1x1x20xf32>
    %42 = vector.shape_cast %41 : vector<1x1x20xf32> to vector<1x20xf32>
    %c0_44 = arith.constant 0 : index
    %c0_45 = arith.constant 0 : index
    %43 = vector.load %arg7[%c0_44, %c0_45] : memref<20x32xf32, #tpu.memory_space<vmem>>, vector<20x32xf32>
    %cst_46 = arith.constant dense<0.000000e+00> : vector<1x32xf32>
    %44 = tpu.matmul %42, %43, %cst_46 {dimension_numbers = #tpu.dot_dimension_numbers<[1], [0], [0], [1], [0, 0, 1, 1], [], []>} : vector<1x20xf32>, vector<20x32xf32>, vector<1x32xf32> -> vector<1x32xf32>
    %c0_47 = arith.constant 0 : index
    %c0_48 = arith.constant 0 : index
    %45 = vector.load %arg8[%c0_47, %c0_48] : memref<1x32xf32, #tpu.memory_space<vmem>>, vector<1x32xf32>
    %46 = arith.addf %44, %45 : vector<1x32xf32>
    %47 = tpu.concatenate %40, %46 in 1 : vector<1x32xf32>, vector<1x32xf32> -> vector<1x64xf32>
    %c0_49 = arith.constant 0 : index
    %c0_50 = arith.constant 0 : index
    %c0_51 = arith.constant 0 : index
    %48 = vector.load %arg9[%c0_49, %c0_50, %c0_51] : memref<1x1x64xf32, #tpu.memory_space<vmem>>, vector<1x1x64xf32>
    %49 = vector.shape_cast %48 : vector<1x1x64xf32> to vector<1x64xf32>
    %50 = vector.shape_cast %47 : vector<1x64xf32> to vector<1x1x64xf32>
    tpu.vector_store %arg9[%c0_49, %c0_50, %c0_51], %50 {strides = array<i32>} : memref<1x1x64xf32, #tpu.memory_space<vmem>>, vector<1x1x64xf32>,
    return
  }
  func.func @transform_0(%arg0: i32) -> (i32, i32, i32, i32) {
    %c0_i32 = arith.constant 0 : i32
    %c0_i32_0 = arith.constant 0 : i32
    %c0_i32_1 = arith.constant 0 : i32
    %c0_i32_2 = arith.constant 0 : i32
    return %arg0, %c0_i32, %c0_i32_0, %c0_i32_1 : i32, i32, i32, i32
  }
  func.func @transform_1(%arg0: i32) -> (i32, i32, i32) {
    %c0_i32 = arith.constant 0 : i32
    %c0_i32_0 = arith.constant 0 : i32
    %c0_i32_1 = arith.constant 0 : i32
    return %arg0, %c0_i32, %c0_i32_0 : i32, i32, i32
  }
  func.func @transform_2(%arg0: i32) -> (i32, i32) {
    %c0_i32 = arith.constant 0 : i32
    %c0_i32_0 = arith.constant 0 : i32
    %c0_i32_1 = arith.constant 0 : i32
    return %c0_i32, %c0_i32_0 : i32, i32
  }
  func.func @transform_3(%arg0: i32) -> (i32, i32) {
    %c0_i32 = arith.constant 0 : i32
    %c0_i32_0 = arith.constant 0 : i32
    %c0_i32_1 = arith.constant 0 : i32
    return %c0_i32, %c0_i32_0 : i32, i32
  }
  func.func @transform_4(%arg0: i32) -> (i32, i32) {
    %c0_i32 = arith.constant 0 : i32
    %c0_i32_0 = arith.constant 0 : i32
    %c0_i32_1 = arith.constant 0 : i32
    return %c0_i32, %c0_i32_0 : i32, i32
  }
  func.func @transform_5(%arg0: i32) -> (i32, i32) {
    %c0_i32 = arith.constant 0 : i32
    %c0_i32_0 = arith.constant 0 : i32
    %c0_i32_1 = arith.constant 0 : i32
    return %c0_i32, %c0_i32_0 : i32, i32
  }
  func.func @transform_6(%arg0: i32) -> (i32, i32) {
    %c0_i32 = arith.constant 0 : i32
    %c0_i32_0 = arith.constant 0 : i32
    %c0_i32_1 = arith.constant 0 : i32
    return %c0_i32, %c0_i32_0 : i32, i32
  }
  func.func @transform_7(%arg0: i32) -> (i32, i32) {
    %c0_i32 = arith.constant 0 : i32
    %c0_i32_0 = arith.constant 0 : i32
    %c0_i32_1 = arith.constant 0 : i32
    return %c0_i32, %c0_i32_0 : i32, i32
  }
  func.func @transform_8(%arg0: i32) -> (i32, i32, i32) {
    %c0_i32 = arith.constant 0 : i32
    %c0_i32_0 = arith.constant 0 : i32
    %c0_i32_1 = arith.constant 0 : i32
    return %arg0, %c0_i32, %c0_i32_0 : i32, i32, i32
  }
}

</mosaic_0001>

<bundles_post_ra>
// kernel: tile.14
= control target key start
LH: loop header
LB: loop body
LE: loop exit
PB: predicated region body
PF: predicated region fallthrough
CT: control target
= control target key end

     0   :  { %s28_s0 = inlined_call_operand.vmem [shape: f32[3], index: 0, kind: input, shape index: {}]   ;;  %s29_s1 = inlined_call_operand.vmem [shape: f32[9,3], index: 1, kind: output, shape index: {}]  }
   0x1   :  { %v4_v0 = vld [vmem:[%s28_s0] ss:$0 sm:$0xff] }
   0x2   :  { %5 = vst [vmem:[%s29_s1] sm:$0xff] %v4_v0 }
   0x3   :  { %8 = vst [vmem:[%s29_s1 + $0x8] sm:$0xff] %v4_v0 }

// kernel: tile.15
= control target key start
LH: loop header
LB: loop body
LE: loop exit
PB: predicated region body
PF: predicated region fallthrough
CT: control target
= control target key end

     0   :  { %s75_s10 = smov 24   ;;  %s76_s11 = smov 18   ;;  %vm3_vm0 = vcmask 23552   ;;  %vm9_vm1 = vcmask 220352   ;;  %vm15_vm2 = vcmask 195752   ;;  %vm21_vm3 = vcmask 171152   ;;  %s123_s0 = inlined_call_operand.vmem [shape: f32[9,3], index: 0, kind: input, shape index: {}]   ;;  %s124_s1 = inlined_call_operand.vmem [shape: f32[27], index: 1, kind: output, shape index: {}]  }
   0x1   :  { %v59_v0 = vld [vmem:[%s123_s0 + $0x8] sm:$0x1]   ;;  %v61_v1 = vld [vmem:[%s123_s0 + $0x6] sm:$0x1]   ;;  %v63_v2 = vld [vmem:[%s123_s0 + $0x4] sm:$0x1]  }
   0x2   :  { %7 = vrot.lane.b32.xlu0 %v59_v0, %s75_s10  ;;  %19 = vrot.lane.b32.xlu1 %v61_v1, %s76_s11  ;;  %s77_s14 = smov 12   ;;  %v60_v3 = vld [vmem:[%s123_s0 + $0x7] sm:$0x1]   ;;  %v62_v4 = vld [vmem:[%s123_s0 + $0x5] sm:$0x1]   ;;  %s78_s19 = smov 21  }
   0x3   :  { %31 = vrot.lane.b32.xlu2 %v63_v2, %s77_s14  ;;  %s79_s20 = smov 15   ;;  %v64_v5 = vld [vmem:[%s123_s0 + $0x3] sm:$0x1]   ;;  %s80_s23 = smov 9   ;;  %v65_v6 = vld [vmem:[%s123_s0 + $0x2] sm:$0x1]  }
   0x4   :  { %v66_v7 = vld [vmem:[%s123_s0 + $0x1] sm:$0x1]   ;;  %s81_s28 = smov 6   ;;  %s82_s29 = smov 3   ;;  %v2_v8 = vld [vmem:[%s123_s0] sm:$0x1]  }
   0x5   :  { %4 = vst.msk [vmem:[#allocation0] sm:$0x1] %vm3_vm0, %v2_v8   ;;  %vm27_vm4 = vcmask 146552   ;;  %vm33_vm5 = vcmask 121952   ;;  %vm39_vm6 = vcmask 97352   ;;  %vm45_vm7 = vcmask 72752  }
   0x6   :  { %vm51_vm8 = vcmask 48152  }
   0xa   :  { %13 = vrot.lane.b32.xlu0 %v60_v3, %s78_s19  ;;  %25 = vrot.lane.b32.xlu1 %v62_v4, %s79_s20 }
   0xb   :  { %37 = vrot.lane.b32.xlu2 %v64_v5, %s80_s23 }
  0x12   :  { %43 = vrot.lane.b32.xlu0 %v65_v6, %s81_s28  ;;  %49 = vrot.lane.b32.xlu1 %v66_v7, %s82_s29 }
  0x5d   :  { %v32_v9 = vpop.permute.xlu2 %31  }
  0x65   :  { %v38_v10 = vpop.permute.xlu2 %37  }
  0x74   :  { %v8_v11 = vpop.permute.xlu0 %7   ;;  %v20_v12 = vpop.permute.xlu1 %19  }
  0x75   :  { %10 = vst.msk [vmem:[#allocation0] sm:$0x1] %vm9_vm1, %v8_v11  }
  0x7c   :  { %v14_v13 = vpop.permute.xlu0 %13   ;;  %v26_v14 = vpop.permute.xlu1 %25  }
  0x7d   :  { %16 = vst.msk [vmem:[#allocation0] sm:$0x1] %vm15_vm2, %v14_v13  }
  0x7e   :  { %22 = vst.msk [vmem:[#allocation0] sm:$0x1] %vm21_vm3, %v20_v12  }
  0x7f   :  { %28 = vst.msk [vmem:[#allocation0] sm:$0x1] %vm27_vm4, %v26_v14  }
  0x80   :  { %34 = vst.msk [vmem:[#allocation0] sm:$0x1] %vm33_vm5, %v32_v9  }
  0x81   :  { %40 = vst.msk [vmem:[#allocation0] sm:$0x1] %vm39_vm6, %v38_v10  }
  0x84   :  { %v44_v15 = vpop.permute.xlu0 %43   ;;  %v50_v16 = vpop.permute.xlu1 %49  }
  0x85   :  { %46 = vst.msk [vmem:[#allocation0] sm:$0x1] %vm45_vm7, %v44_v15  }
  0x86   :  { %52 = vst.msk [vmem:[#allocation0] sm:$0x1] %vm51_vm8, %v50_v16  }
  0x8d   :  { %v55_v17 = vld [vmem:[#allocation0] sm:$0x1] }
  0x8e   :  { %58 = vst [vmem:[%s124_s1] sm:$0x1] %v55_v17 }

// kernel: encoder_no_pre_forward.1
= control target key start
LH: loop header
LB: loop body
LE: loop exit
PB: predicated region body
PF: predicated region fallthrough
CT: control target
= control target key end

     0   :  { %13 = vsyncpa [#allocation4], 0  ;;  %s5017_s0 = inlined_call_operand.vmem [shape: bf16[2,18,18,3], index: 0, kind: input, shape index: {}]   ;;  %s5018_s1 = inlined_call_operand.vmem [shape: f32[2,1,20], index: 1, kind: input, shape index: {}]   ;;  %s5019_s2 = inlined_call_operand.vmem [shape: bf16[32,32], index: 2, kind: input, shape index: {}]   ;;  %s5020_s3 = inlined_call_operand.vmem [shape: f32[1,32], index: 3, kind: input, shape index: {}]   ;;  %s5021_s4 = inlined_call_operand.vmem [shape: f32[32,32], index: 4, kind: input, shape index: {}]   ;;  %s5022_s5 = inlined_call_operand.vmem [shape: f32[1,32], index: 5, kind: input, shape index: {}]   ;;  %s5023_s6 = inlined_call_operand.vmem [shape: f32[20,32], index: 6, kind: input, shape index: {}]   ;;  %s5024_s7 = inlined_call_operand.vmem [shape: f32[1,32], index: 7, kind: input, shape index: {}]   ;;  %s5025_s8 = inlined_call_operand.hbm [shape: f32[2,1,64], index: 8, kind: output, shape index: {}]  }
   0x1   :  { %15 = vsyncpa [#allocation4 + $0x1], 0  ;;  %s3568_s27 = smov 0   ;;  %s3570_s28 = smov 0  }
   0x2   :  { %s3572_s29 = smov 0   ;;  %s3574_s30 = smov 0  }
   0x3 LB: > { %s3589_s9 = sadd.s32 4294967295, %s3510_s30   ;;  %s2433_s10 = sadd.s32 4294967294, %s3510_s30   ;;  %s3510_s30 = sphi %s3574_s30, %s5102_s30   ;;  %s3506_s29 = sphi %s3572_s29, %s5101_s29   ;;  %s3502_s28 = sphi %s3570_s28, %s5100_s28   ;;  %s3498_s27 = sphi %s3568_s27, %s5099_s27  }
   0x4   : > { %s3593_s11 = sadd.s32 1, %s3510_s30   ;;  %s206_s12 = sadd.s32 1, %s3506_s29 }
   0x5   : > { %s203_s13 = ssub.s32 %s3510_s30, %s3593_s11  ;;  %p216_p0 = scmp.ne.s32.totalorder %s3506_s29, %s3502_s28 }
   0x6   : > { %p204_p1 = scmp.eq.s32.totalorder %s203_s13, 0  ;;  %p217_p2 = scmp.eq.s32.totalorder %s3589_s9, 1 }
   0x7   : > { %p222_p3 = scmp.ne.s32.totalorder %s3502_s28, %s3498_s27  ;;  %p223_p4 = scmp.eq.s32.totalorder %s2433_s10, 1 }
   0x8   : > { %s3604_s14 = scalar_select %p204_p1, %s3506_s29, %s206_s12  }
   0x9   : > { %p3606_p5 = por %p217_p2, %p216_p0  ;;  %p3610_p6 = por %p223_p4, %p222_p3 }
   0xa   : > { %p2436_p7 = scmp.ge.s32.totalorder %s3510_s30, 1  ;;  %p273_p8 = scmp.lt.s32.totalorder %s3510_s30, 3 }
   0xc   : > { %p274_p9 = pnand %p2436_p7, %p273_p8 }
   0xe   : > { %277 = sbr.rel (%p274_p9) target bundleno = 921 (0x399), region = 52 }
  0x13   : > { %p309_p10 = scmp.lt.s32.totalorder %s3589_s9, 1  ;;  %s3512_s22 = smov 3   ;;  %vm426_vm0 = vcmask 261120   ;;  %vm459_vm1 = vcmask 23552   ;;  %vm688_vm2 = vcmask 40984   ;;  %vm684_vm3 = vcmask 48153  }
  0x14   : > { %s3513_s23 = smov 6   ;;  %s3515_s24 = smov 9   ;;  %vm686_vm4 = vcmask 48152   ;;  %vm883_vm5 = vcmask 66608   ;;  %vm881_vm6 = vcmask 72752   ;;  %vm879_vm7 = vcmask 72754  }
  0x15   : > { %s3618_s17 = scalar_select %p309_p10, %s3589_s9, 1  ;;  %vm1028_vm8 = vcmask 97352   ;;  %vm1210_vm9 = vcmask 114784   ;;  %vm1206_vm10 = vcmask 121953   ;;  %vm1208_vm11 = vcmask 121952  }
  0x16   : > { %s3516_s25 = smov 12   ;;  %s3517_s26 = smov 15   ;;  %vm1405_vm12 = vcmask 140408   ;;  %vm1401_vm13 = vcmask 146554   ;;  %vm1403_vm14 = vcmask 146552   ;;  %vm1550_vm15 = vcmask 171152  }
  0x17   : > { %s2519_s18 = smul.u32 216, %s3618_s17  ;;  %s3518_s10 = smov 18  }
  0x18   : > { %s3519_s12 = smov 24   ;;  %s3520_s13 = smov 21  }
  0x19   : > { %s3624_s21 = scalar_lea.vmem %s5017_s0, %s2519_s18  ;;  %s316_s18 = scalar_lea.vmem %s5018_s1, %s3618_s17 }
  0x1a   : > { %v322_v0 = vld [vmem:[%s3624_s21 + $0xc] sm:$0xff]   ;;  %v3628_v1 = vld [vmem:[%s3624_s21 + $0x14] sm:$0x1]  ;;  %v3631_v2 = vld [vmem:[%s3624_s21] sm:$0xff]   ;;  %s307_s19 = sand.u32 1, %s3502_s28   ;;  %s3468_s20 = scalar_lea.hbm %s5025_s8, 2 }
  0x1b   : > { %v3633_v3 = vunpack.c.h.bf16 %v322_v0  ;;  %v5030_v4 = vunpack.c.l.bf16 %v3628_v1  ;;  %v5033_v5 = vunpack.c.l.bf16 %v3631_v2  ;;  %v5032_v6 = vunpack.c.h.bf16 %v3631_v2  ;;  %v2505_v7 = vld [vmem:[%s3624_s21 + $0x18] sm:$0xff]   ;;  %v320_v8 = vld [vmem:[%s3624_s21 + $0x8] sm:$0x1]  ;;  %v3641_v9 = vld [vmem:[%s3624_s21 + $0x20] sm:$0x1] }
  0x1c   : > { %v327_v12 = vld [vmem:[%s3624_s21 + $0x24] sm:$0xff]   ;;  %v3655_v13 = vunpack.c.l.bf16 %v2505_v7  ;;  %v3657_v14 = vunpack.c.h.bf16 %v2505_v7  ;;  %v374_v15 = vunpack.c.l.bf16 %v320_v8  ;;  %v3663_v16 = vunpack.c.l.bf16 %v322_v0  ;;  %v3669_v19 = vld [vmem:[%s3624_s21 + $0x2c] sm:$0x1]  ;;  %v332_v23 = vld [vmem:[%s3624_s21 + $0x38] sm:$0x1] }
  0x1d   : > { %v3646_v10 = vpack.i.bf16 %v5030_v4, %v3633_v3  ;;  %v3652_v11 = vpack.i.bf16 %v5032_v6, %v5033_v5  ;;  %v5031_v17 = vunpack.c.l.bf16 %v3641_v9  ;;  %v3666_v18 = vunpack.c.l.bf16 %v327_v12  ;;  %v333_v26 = vld [vmem:[%s3624_s21 + $0x3c] sm:$0xff]   ;;  %v2506_v27 = vld [vmem:[%s3624_s21 + $0x30] sm:$0xff]   ;;  %v3709_v33 = vld [vmem:[%s3624_s21 + $0x44] sm:$0x1] }
  0x1e   : > { %v3678_v21 = vpack.i.bf16 %v3657_v14, %v3655_v13  ;;  %v3681_v22 = vpack.i.bf16 %v3663_v16, %v374_v15  ;;  %v3686_v24 = vunpack.c.h.bf16 %v327_v12  ;;  %v5029_v25 = vunpack.c.l.bf16 %v3669_v19  ;;  %5062 = vst [vmem:[#allocation7_spill] sm:$0xff] %v3709_v33  ;;  %v3720_v36 = vld [vmem:[%s3624_s21 + $0x50] sm:$0x1]  ;;  %v339_v39 = vld [vmem:[%s3624_s21 + $0x54] sm:$0xff]   ;;  %v2507_v40 = vld [vmem:[%s3624_s21 + $0x48] sm:$0xff]  }
  0x1f   : > { %2581 = vrot.lane.b32.xlu1 %v3646_v10, %s3512_s22  ;;  %2571 = vrot.lane.b32.xlu0 %v3652_v11, %s3512_s22  ;;  %v3674_v20 = vpack.i.bf16 %v3666_v18, %v5031_v17  ;;  %v3691_v28 = vunpack.c.l.bf16 %v332_v23  ;;  %v3697_v29 = vunpack.c.l.bf16 %v333_v26  ;;  %v3699_v30 = vunpack.c.l.bf16 %v2506_v27  ;;  %v341_v46 = vld [vmem:[%s3624_s21 + $0x5c] sm:$0x1]  ;;  %v344_v49 = vld [vmem:[%s3624_s21 + $0x68] sm:$0x1] }
  0x20   : > { %v3701_v31 = vunpack.c.h.bf16 %v2506_v27  ;;  %v3706_v32 = vpack.i.bf16 %v5029_v25, %v3686_v24  ;;  %v3724_v37 = vunpack.c.h.bf16 %v333_v26  ;;  %v5027_v38 = vunpack.c.l.bf16 %v3709_v33  ;;  %v345_v52 = vld [vmem:[%s3624_s21 + $0x6c] sm:$0xff]   ;;  %v2508_v53 = vld [vmem:[%s3624_s21 + $0x60] sm:$0xff]   ;;  %v3781_v59 = vld [vmem:[%s3624_s21 + $0x74] sm:$0x1] }
  0x21   : > { %2591 = vrot.lane.b32.xlu2 %v3674_v20, %s3512_s22  ;;  %5061 = vst [vmem:[#allocation6_spill] sm:$0xff] %v3697_v29  ;;  %v3713_v34 = vpack.i.bf16 %v3697_v29, %v3691_v28  ;;  %v5028_v41 = vunpack.c.l.bf16 %v3720_v36  ;;  %v3734_v42 = vunpack.c.l.bf16 %v339_v39  ;;  %v3736_v43 = vunpack.c.l.bf16 %v2507_v40  ;;  %v350_v62 = vld [vmem:[%s3624_s21 + $0x80] sm:$0x1]  ;;  %v351_v7 = vld [vmem:[%s3624_s21 + $0x84] sm:$0xff]   ;;  %v2509_v8 = vld [vmem:[%s3624_s21 + $0x78] sm:$0xff]  }
  0x22   : > { %v3717_v35 = vpack.i.bf16 %v3701_v31, %v3699_v30  ;;  %v3738_v44 = vunpack.c.h.bf16 %v2507_v40  ;;  %v3743_v45 = vpack.i.bf16 %v5027_v38, %v3724_v37  ;;  %v3758_v50 = vunpack.c.h.bf16 %v339_v39  ;;  %5067 = vst [vmem:[#allocation12_spill] sm:$0xff] %v3781_v59  ;;  %v353_v39 = vld [vmem:[%s3624_s21 + $0x8c] sm:$0x1]  ;;  %v359_v25 = vld [vmem:[%s3624_s21 + $0xa4] sm:$0x1] }
  0x23   : > { %v3749_v47 = vpack.i.bf16 %v3734_v42, %v5028_v41  ;;  %v3760_v51 = vunpack.c.l.bf16 %v341_v46  ;;  %v3764_v54 = vunpack.c.l.bf16 %v344_v49  ;;  %v3770_v55 = vunpack.c.l.bf16 %v345_v52  ;;  %v3826_v49 = vld [vmem:[%s3624_s21 + $0x98] sm:$0x1]  ;;  %v362_v6 = vld [vmem:[%s3624_s21 + $0xb0] sm:$0x1] }
  0x24   : > { %5063 = vst [vmem:[#allocation8_spill] sm:$0xff] %v3717_v35  ;;  %v3753_v48 = vpack.i.bf16 %v3738_v44, %v3736_v43  ;;  %v3772_v56 = vunpack.c.l.bf16 %v2508_v53  ;;  %v3774_v57 = vunpack.c.h.bf16 %v2508_v53  ;;  %v3794_v63 = vunpack.c.h.bf16 %v345_v52 }
  0x25   : > { %5064 = vst [vmem:[#allocation9_spill] sm:$0xff] %v3743_v45  ;;  %v3778_v58 = vpack.i.bf16 %v3760_v51, %v3758_v50  ;;  %v3785_v60 = vpack.i.bf16 %v3770_v55, %v3764_v54  ;;  %v5026_v0 = vunpack.c.l.bf16 %v3781_v59  ;;  %v3799_v12 = vunpack.c.l.bf16 %v350_v62  ;;  %v357_v62 = vld [vmem:[%s3624_s21 + $0x9c] sm:$0xff]   ;;  %v2511_v59 = vld [vmem:[%s3624_s21 + $0xa8] sm:$0xff]  }
  0x26   : > { %5065 = vst [vmem:[#allocation10_spill] sm:$0xff] %v3760_v51  ;;  %v3789_v61 = vpack.i.bf16 %v3774_v57, %v3772_v56  ;;  %v3805_v15 = vunpack.c.l.bf16 %v351_v7  ;;  %v3807_v23 = vunpack.c.l.bf16 %v2509_v8  ;;  %v3809_v26 = vunpack.c.h.bf16 %v2509_v8  ;;  %v2510_v8 = vld [vmem:[%s3624_s21 + $0x90] sm:$0xff]  }
  0x27   : > { %2586 = vrot.lane.b32.xlu1 %v3678_v21, %s3512_s22  ;;  %2576 = vrot.lane.b32.xlu0 %v3681_v22, %s3512_s22  ;;  %5066 = vst [vmem:[#allocation11_spill] sm:$0xff] %v3764_v54  ;;  %v3814_v27 = vpack.i.bf16 %v5026_v0, %v3794_v63  ;;  %v3830_v52 = vunpack.c.h.bf16 %v351_v7  ;;  %v3832_v53 = vunpack.c.l.bf16 %v353_v39  ;;  %v5039_v0 = vunpack.c.l.bf16 %v3826_v49 }
  0x28   : > { %5068 = vst [vmem:[#allocation13_spill] sm:$0xff] %v3799_v12  ;;  %v3819_v40 = vpack.i.bf16 %v3805_v15, %v3799_v12  ;;  %v3823_v46 = vpack.i.bf16 %v3809_v26, %v3807_v23  ;;  %v3841_v38 = vunpack.c.l.bf16 %v357_v62  ;;  %v3843_v41 = vunpack.c.l.bf16 %v2510_v8 }
  0x29   : > { %2596 = vrot.lane.b32.xlu2 %v3706_v32, %s3512_s22  ;;  %5069 = vst [vmem:[#allocation14_spill] sm:$0xff] %v3814_v27  ;;  %v3845_v7 = vunpack.c.h.bf16 %v2510_v8  ;;  %v3849_v39 = vpack.i.bf16 %v3832_v53, %v3830_v52  ;;  %v3864_v8 = vunpack.c.h.bf16 %v357_v62  ;;  %v3866_v5 = vunpack.c.l.bf16 %v359_v25  ;;  %v3887_v62 = vld [vmem:[%s3624_s21 + $0xbc] sm:$0x1] }
  0x2a   : > { %5070 = vst [vmem:[#allocation15_spill] sm:$0xff] %v3826_v49  ;;  %v3855_v4 = vpack.i.bf16 %v3841_v38, %v5039_v0  ;;  %v3870_v12 = vunpack.c.l.bf16 %v362_v6  ;;  %v3878_v49 = vunpack.c.l.bf16 %v2511_v59  ;;  %v3880_v51 = vunpack.c.h.bf16 %v2511_v59 }
  0x2b   : > { %5071 = vst [vmem:[#allocation16_spill] sm:$0xff] %v3832_v53  ;;  %v3859_v17 = vpack.i.bf16 %v3845_v7, %v3843_v41  ;;  %v363_v53 = vld [vmem:[%s3624_s21 + $0xb4] sm:$0xff]   ;;  %v3884_v25 = vpack.i.bf16 %v3866_v5, %v3864_v8  ;;  %v5048_v59 = vunpack.c.l.bf16 %v3887_v62 }
  0x2c   : > { %5072 = vst [vmem:[#allocation17_spill] sm:$0xff] %v3849_v39  ;;  %v3876_v0 = vunpack.c.l.bf16 %v363_v53  ;;  %v3895_v54 = vpack.i.bf16 %v3880_v51, %v3878_v49  ;;  %v3899_v33 = vunpack.c.h.bf16 %v363_v53  ;;  %v3514_v53 = vmov 0.0  }
  0x2d   : > { %5073 = vst [vmem:[#allocation18_spill] sm:$0xff] %v3866_v5 }
  0x2e   : > { %v3891_v6 = vpack.i.bf16 %v3876_v0, %v3870_v12  ;;  %v3909_v5 = vpack.i.bf16 %v5048_v59, %v3899_v33  ;;  %432 = vst.msk [vmem:[#allocation2 + $0x28] sm:$0xff] %vm426_vm0, %v3514_v53 }
  0x2f   : > { %2606 = vrot.lane.b32.xlu1 %v3713_v34, %s3512_s22  ;;  %2601 = vrot.lane.b32.xlu0 %v3717_v35, %s3512_s22  ;;  %433 = vst.msk [vmem:[#allocation2 + $0x30] sm:$0xff] %vm426_vm0, %v3514_v53 }
  0x30   : > { %5074 = vst [vmem:[#allocation19_spill] sm:$0xff] %v3909_v5 }
  0x31   : > { %2611 = vrot.lane.b32.xlu2 %v3743_v45, %s3512_s22  ;;  %466 = vst.msk [vmem:[#allocation2 + $0x30] sm:$0xff] %vm459_vm1, %v3666_v18 }
  0x32   : > { %465 = vst.msk [vmem:[#allocation2 + $0x28] sm:$0xff] %vm459_vm1, %v3657_v14 }
  0x33   : > { %427 = vst.msk [vmem:[#allocation2] sm:$0xff] %vm426_vm0, %v3514_v53 }
  0x34   : > { %428 = vst.msk [vmem:[#allocation2 + $0x8] sm:$0xff] %vm426_vm0, %v3514_v53 }
  0x35   : > { %429 = vst.msk [vmem:[#allocation2 + $0x10] sm:$0xff] %vm426_vm0, %v3514_v53 }
  0x36   : > { %430 = vst.msk [vmem:[#allocation2 + $0x18] sm:$0xff] %vm426_vm0, %v3514_v53 }
  0x37   : > { %2621 = vrot.lane.b32.xlu1 %v3749_v47, %s3512_s22  ;;  %2616 = vrot.lane.b32.xlu0 %v3753_v48, %s3512_s22  ;;  %431 = vst.msk [vmem:[#allocation2 + $0x20] sm:$0xff] %vm426_vm0, %v3514_v53 }
  0x38   : > { %434 = vst.msk [vmem:[#allocation2 + $0x38] sm:$0xff] %vm426_vm0, %v3514_v53 }
  0x39   : > { %2626 = vrot.lane.b32.xlu2 %v3778_v58, %s3512_s22  ;;  %435 = vst.msk [vmem:[#allocation2 + $0x40] sm:$0xff] %vm426_vm0, %v3514_v53 }
  0x3a   : > { %436 = vst.msk [vmem:[#allocation2 + $0x48] sm:$0xff] %vm426_vm0, %v3514_v53 }
  0x3b   : > { %437 = vst.msk [vmem:[#allocation2 + $0x50] sm:$0xff] %vm426_vm0, %v3514_v53 }
  0x3c   : > { %438 = vst.msk [vmem:[#allocation2 + $0x58] sm:$0xff] %vm426_vm0, %v3514_v53 }
  0x3d   : > { %439 = vst.msk [vmem:[#allocation2 + $0x60] sm:$0xff] %vm426_vm0, %v3514_v53 }
  0x3e   : > { %440 = vst.msk [vmem:[#allocation2 + $0x68] sm:$0xff] %vm426_vm0, %v3514_v53 }
  0x3f   : > { %2636 = vrot.lane.b32.xlu1 %v3785_v60, %s3512_s22  ;;  %2631 = vrot.lane.b32.xlu0 %v3789_v61, %s3512_s22  ;;  %441 = vst.msk [vmem:[#allocation2 + $0x70] sm:$0xff] %vm426_vm0, %v3514_v53 }
  0x40   : > { %442 = vst.msk [vmem:[#allocation2 + $0x78] sm:$0xff] %vm426_vm0, %v3514_v53 }
  0x41   : > { %2641 = vrot.lane.b32.xlu2 %v3814_v27, %s3512_s22  ;;  %443 = vst.msk [vmem:[#allocation2 + $0x80] sm:$0xff] %vm426_vm0, %v3514_v53 }
  0x42   : > { %444 = vst.msk [vmem:[#allocation2 + $0x88] sm:$0xff] %vm426_vm0, %v3514_v53 }
  0x43   : > { %445 = vst.msk [vmem:[#allocation2 + $0x90] sm:$0xff] %vm426_vm0, %v3514_v53 }
  0x44   : > { %446 = vst.msk [vmem:[#allocation2 + $0x98] sm:$0xff] %vm426_vm0, %v3514_v53 }
  0x45   : > { %447 = vst.msk [vmem:[#allocation2 + $0xa0] sm:$0xff] %vm426_vm0, %v3514_v53 }
  0x46   : > { %448 = vst.msk [vmem:[#allocation2 + $0xa8] sm:$0xff] %vm426_vm0, %v3514_v53 }
  0x47   : > { %2651 = vrot.lane.b32.xlu1 %v3819_v40, %s3512_s22  ;;  %2646 = vrot.lane.b32.xlu0 %v3823_v46, %s3512_s22  ;;  %449 = vst.msk [vmem:[#allocation2 + $0xb0] sm:$0xff] %vm426_vm0, %v3514_v53 }
  0x48   : > { %450 = vst.msk [vmem:[#allocation2 + $0xb8] sm:$0xff] %vm426_vm0, %v3514_v53 }
  0x49   : > { %2656 = vrot.lane.b32.xlu2 %v3849_v39, %s3512_s22  ;;  %451 = vst.msk [vmem:[#allocation2 + $0xc0] sm:$0xff] %vm426_vm0, %v3514_v53 }
  0x4a   : > { %452 = vst.msk [vmem:[#allocation2 + $0xc8] sm:$0xff] %vm426_vm0, %v3514_v53 }
  0x4b   : > { %453 = vst.msk [vmem:[#allocation2 + $0xd0] sm:$0xff] %vm426_vm0, %v3514_v53 }
  0x4c   : > { %454 = vst.msk [vmem:[#allocation2 + $0xd8] sm:$0xff] %vm426_vm0, %v3514_v53 }
  0x4d   : > { %455 = vst.msk [vmem:[#allocation2 + $0xe0] sm:$0xff] %vm426_vm0, %v3514_v53 }
  0x4e   : > { %456 = vst.msk [vmem:[#allocation2 + $0xe8] sm:$0xff] %vm426_vm0, %v3514_v53 }
  0x4f   : > { %2666 = vrot.lane.b32.xlu1 %v3855_v4, %s3512_s22  ;;  %2661 = vrot.lane.b32.xlu0 %v3859_v17, %s3512_s22  ;;  %457 = vst.msk [vmem:[#allocation2 + $0xf0] sm:$0xff] %vm426_vm0, %v3514_v53 }
  0x50   : > { %458 = vst.msk [vmem:[#allocation2 + $0xf8] sm:$0xff] %vm426_vm0, %v3514_v53 }
  0x51   : > { %2671 = vrot.lane.b32.xlu2 %v3884_v25, %s3512_s22  ;;  %462 = vst.msk [vmem:[#allocation2 + $0x10] sm:$0xff] %vm459_vm1, %v3663_v16 }
  0x52   : > { %463 = vst.msk [vmem:[#allocation2 + $0x18] sm:$0xff] %vm459_vm1, %v3633_v3 }
  0x53   : > { %464 = vst.msk [vmem:[#allocation2 + $0x20] sm:$0xff] %vm459_vm1, %v3655_v13 }
  0x54   : > { %467 = vst.msk [vmem:[#allocation2 + $0x38] sm:$0xff] %vm459_vm1, %v3686_v24 }
  0x55   : > { %468 = vst.msk [vmem:[#allocation2 + $0x40] sm:$0xff] %vm459_vm1, %v3699_v30 }
  0x56   : > { %469 = vst.msk [vmem:[#allocation2 + $0x48] sm:$0xff] %vm459_vm1, %v3701_v31 }
  0x57   : > { %2681 = vrot.lane.b32.xlu1 %v3891_v6, %s3512_s22  ;;  %2676 = vrot.lane.b32.xlu0 %v3895_v54, %s3512_s22  ;;  %470 = vst.msk [vmem:[#allocation2 + $0x50] sm:$0xff] %vm459_vm1, %v3697_v29 }
  0x58   : > { %471 = vst.msk [vmem:[#allocation2 + $0x58] sm:$0xff] %vm459_vm1, %v3724_v37 }
  0x59   : > { %2686 = vrot.lane.b32.xlu2 %v3909_v5, %s3512_s22  ;;  %472 = vst.msk [vmem:[#allocation2 + $0x60] sm:$0xff] %vm459_vm1, %v3736_v43  ;;  %s2365_s22 = scalar_lea.hbm %s5025_s8, %s3589_s9 }
  0x5a   : > { %473 = vst.msk [vmem:[#allocation2 + $0x68] sm:$0xff] %vm459_vm1, %v3738_v44 }
  0x5b   : > { %474 = vst.msk [vmem:[#allocation2 + $0x70] sm:$0xff] %vm459_vm1, %v3734_v42 }
  0x5c   : > { %475 = vst.msk [vmem:[#allocation2 + $0x78] sm:$0xff] %vm459_vm1, %v3758_v50 }
  0x5d   : > { %476 = vst.msk [vmem:[#allocation2 + $0x80] sm:$0xff] %vm459_vm1, %v3772_v56 }
  0x5e   : > { %477 = vst.msk [vmem:[#allocation2 + $0x88] sm:$0xff] %vm459_vm1, %v3774_v57 }
  0x5f   : > { %2696 = vrot.lane.b32.xlu1 %v3681_v22, %s3513_s23  ;;  %2691 = vrot.lane.b32.xlu0 %v3652_v11, %s3513_s23  ;;  %478 = vst.msk [vmem:[#allocation2 + $0x90] sm:$0xff] %vm459_vm1, %v3770_v55 }
  0x60   : > { %479 = vst.msk [vmem:[#allocation2 + $0x98] sm:$0xff] %vm459_vm1, %v3794_v63 }
  0x61   : > { %2701 = vrot.lane.b32.xlu2 %v3646_v10, %s3513_s23  ;;  %480 = vst.msk [vmem:[#allocation2 + $0xa0] sm:$0xff] %vm459_vm1, %v3807_v23 }
  0x62   : > { %481 = vst.msk [vmem:[#allocation2 + $0xa8] sm:$0xff] %vm459_vm1, %v3809_v26 }
  0x63   : > { %482 = vst.msk [vmem:[#allocation2 + $0xb0] sm:$0xff] %vm459_vm1, %v3805_v15 }
  0x64   : > { %483 = vst.msk [vmem:[#allocation2 + $0xb8] sm:$0xff] %vm459_vm1, %v3830_v52 }
  0x65   : > { %484 = vst.msk [vmem:[#allocation2 + $0xc0] sm:$0xff] %vm459_vm1, %v3843_v41 }
  0x66   : > { %485 = vst.msk [vmem:[#allocation2 + $0xc8] sm:$0xff] %vm459_vm1, %v3845_v7 }
  0x67   : > { %2711 = vrot.lane.b32.xlu1 %v3674_v20, %s3513_s23  ;;  %2706 = vrot.lane.b32.xlu0 %v3678_v21, %s3513_s23  ;;  %486 = vst.msk [vmem:[#allocation2 + $0xd0] sm:$0xff] %vm459_vm1, %v3841_v38 }
  0x68   : > { %487 = vst.msk [vmem:[#allocation2 + $0xd8] sm:$0xff] %vm459_vm1, %v3864_v8 }
  0x69   : > { %2716 = vrot.lane.b32.xlu2 %v3706_v32, %s3513_s23  ;;  %488 = vst.msk [vmem:[#allocation2 + $0xe0] sm:$0xff] %vm459_vm1, %v3878_v49 }
  0x6a   : > { %489 = vst.msk [vmem:[#allocation2 + $0xe8] sm:$0xff] %vm459_vm1, %v3880_v51 }
  0x6b   : > { %490 = vst.msk [vmem:[#allocation2 + $0xf0] sm:$0xff] %vm459_vm1, %v3876_v0 }
  0x6c   : > { %491 = vst.msk [vmem:[#allocation2 + $0xf8] sm:$0xff] %vm459_vm1, %v3899_v33 }
  0x6f   : > { %2726 = vrot.lane.b32.xlu1 %v3713_v34, %s3513_s23  ;;  %2721 = vrot.lane.b32.xlu0 %v3717_v35, %s3513_s23 }
  0x71   : > { %2731 = vrot.lane.b32.xlu2 %v3743_v45, %s3513_s23 }
  0x77   : > { %2741 = vrot.lane.b32.xlu1 %v3749_v47, %s3513_s23  ;;  %2736 = vrot.lane.b32.xlu0 %v3753_v48, %s3513_s23  ;;  %v5075_v47 = vunpack.c.l.bf16 %v3631_v2 }
  0x79   : > { %2746 = vrot.lane.b32.xlu2 %v3778_v58, %s3513_s23  ;;  %460 = vst.msk [vmem:[#allocation2] sm:$0xff] %vm459_vm1, %v5075_v47  ;;  %v5076_v58 = vunpack.c.h.bf16 %v3631_v2 }
  0x7b   : > { %v2592_v10 = vpop.permute.xlu2 %2591  ;;  %461 = vst.msk [vmem:[#allocation2 + $0x8] sm:$0xff] %vm459_vm1, %v5076_v58  ;;  %vm1728_vm1 = vcmask 195753  }
  0x7c   : > { %v2594_v11 = vunpack.i.h.bf16 %v2592_v10  ;;  %v2593_v22 = vunpack.i.l.bf16 %v2592_v10 }
  0x7e   : > { %696 = vst.msk [vmem:[#allocation2 + $0x2f] sm:$0xfe] %vm684_vm3, %v2594_v11 }
  0x7f   : > { %2756 = vrot.lane.b32.xlu1 %v3785_v60, %s3513_s23  ;;  %2751 = vrot.lane.b32.xlu0 %v3789_v61, %s3513_s23  ;;  %695 = vst.msk [vmem:[#allocation2 + $0x2f] sm:$0x1] %vm688_vm2, %v2593_v22 }
  0x81   : > { %2761 = vrot.lane.b32.xlu2 %v3814_v27, %s3513_s23  ;;  %v4109_v27 = vpack.i.bf16 %v3758_v50, %v3734_v42 }
  0x83   : > { %v3985_v34 = vpop.permute.xlu2 %2596 }
  0x84   : > { %v2599_v47 = vunpack.i.h.bf16 %v3985_v34  ;;  %v2598_v58 = vunpack.i.l.bf16 %v3985_v34 }
  0x86   : > { %698 = vst.msk [vmem:[#allocation2 + $0x3f] sm:$0x1] %vm688_vm2, %v2599_v47 }
  0x87   : > { %2771 = vrot.lane.b32.xlu1 %v3819_v40, %s3513_s23  ;;  %2766 = vrot.lane.b32.xlu0 %v3823_v46, %s3513_s23  ;;  %697 = vst.msk [vmem:[#allocation2 + $0x37] sm:$0xff] %vm686_vm4, %v2598_v58 }
  0x89   : > { %2776 = vrot.lane.b32.xlu2 %v3849_v39, %s3513_s23 }
  0x8f   : > { %2786 = vrot.lane.b32.xlu1 %v3855_v4, %s3513_s23  ;;  %2781 = vrot.lane.b32.xlu0 %v3859_v17, %s3513_s23  ;;  %v4013_v4 = vpop.permute.xlu2 %2611 }
  0x90   : > { %v2614_v50 = vunpack.i.h.bf16 %v4013_v4 }
  0x91   : > { %v4005_v2 = vpop.permute.xlu1 %2581  ;;  %v4007_v60 = vpop.permute.xlu0 %2571  ;;  %2791 = vrot.lane.b32.xlu2 %v3884_v25, %s3513_s23  ;;  %v4071_v25 = vpack.i.bf16 %v3724_v37, %v3697_v29 }
  0x92   : > { %v2584_v22 = vunpack.i.h.bf16 %v4005_v2  ;;  %v2573_v37 = vunpack.i.l.bf16 %v4007_v60  ;;  %v2574_v45 = vunpack.i.h.bf16 %v4007_v60  ;;  %v2583_v29 = vunpack.i.l.bf16 %v4005_v2  ;;  %704 = vst.msk [vmem:[#allocation2 + $0x5f] sm:$0x1] %vm688_vm2, %v2614_v50 }
  0x94   : > { %692 = vst.msk [vmem:[#allocation2 + $0x1f] sm:$0x1] %vm688_vm2, %v2584_v22 }
  0x95   : > { %685 = vst.msk [vmem:[#allocation2 - $0x1] sm:$0xfe] %vm684_vm3, %v2573_v37 }
  0x96   : > { %687 = vst.msk [vmem:[#allocation2 + $0x7] sm:$0xff] %vm686_vm4, %v2574_v45  ;;  %v2613_v45 = vunpack.i.l.bf16 %v4013_v4 }
  0x97   : > { %2801 = vrot.lane.b32.xlu1 %v3891_v6, %s3513_s23  ;;  %2796 = vrot.lane.b32.xlu0 %v3895_v54, %s3513_s23  ;;  %v4041_v6 = vpack.i.bf16 %v3633_v3, %v3663_v16  ;;  %v4043_v10 = vpop.permute.xlu2 %2626  ;;  %691 = vst.msk [vmem:[#allocation2 + $0x17] sm:$0xff] %vm686_vm4, %v2583_v29 }
  0x98   : > { %703 = vst.msk [vmem:[#allocation2 + $0x57] sm:$0xff] %vm686_vm4, %v2613_v45 }
  0x99   : > { %v2587_v40 = vpop.permute.xlu1 %2586  ;;  %v4033_v53 = vpop.permute.xlu0 %2576  ;;  %2806 = vrot.lane.b32.xlu2 %v3909_v5, %s3513_s23  ;;  %v4101_v5 = vpack.i.bf16 %v3686_v24, %v3666_v18 }
  0x9a   : > { %v2588_v18 = vunpack.i.l.bf16 %v2587_v40  ;;  %v2579_v24 = vunpack.i.h.bf16 %v4033_v53  ;;  %v2578_v42 = vunpack.i.l.bf16 %v4033_v53  ;;  %v4133_v53 = vpack.i.bf16 %v3830_v52, %v3805_v15 }
  0x9b   : > { %v2628_v52 = vunpack.i.l.bf16 %v4043_v10 }
  0x9c   : > { %693 = vst.msk [vmem:[#allocation2 + $0x1f] sm:$0xfe] %vm684_vm3, %v2588_v18  ;;  %v4155_v18 = vpack.i.bf16 %v3794_v63, %v3770_v55  ;;  %v4170_v63 = vld [vmem:[%s3624_s21 + $0xc0] sm:$0xff]  }
  0x9d   : > { %690 = vst.msk [vmem:[#allocation2 + $0xf] sm:$0xfe] %vm684_vm3, %v2579_v24 }
  0x9e   : > { %689 = vst.msk [vmem:[#allocation2 + $0xf] sm:$0x1] %vm688_vm2, %v2578_v42  ;;  %v4163_v42 = vpack.i.bf16 %v3864_v8, %v3841_v38  ;;  %v2503_v8 = vunpack.c.l.bf16 %v4170_v63 }
  0x9f   : > { %2816 = vrot.lane.b32.xlu1 %v3678_v21, %s3515_s24  ;;  %2811 = vrot.lane.b32.xlu0 %v4041_v6, %s3515_s24  ;;  %v4073_v11 = vpop.permute.xlu2 %2641  ;;  %709 = vst.msk [vmem:[#allocation2 + $0x77] sm:$0xff] %vm686_vm4, %v2628_v52 }
  0xa0   : > { %v2643_v45 = vunpack.i.l.bf16 %v4073_v11 }
  0xa1   : > { %v2607_v3 = vpop.permute.xlu1 %2606  ;;  %v4063_v16 = vpop.permute.xlu0 %2601  ;;  %2821 = vrot.lane.b32.xlu2 %v4101_v5, %s3515_s24 }
  0xa2   : > { %v2609_v29 = vunpack.i.h.bf16 %v2607_v3  ;;  %v2603_v4 = vunpack.i.l.bf16 %v4063_v16  ;;  %715 = vst.msk [vmem:[#allocation2 + $0x97] sm:$0xff] %vm686_vm4, %v2643_v45 }
  0xa4   : > { %702 = vst.msk [vmem:[#allocation2 + $0x4f] sm:$0xfe] %vm684_vm3, %v2609_v29  ;;  %v2504_v29 = vunpack.c.h.bf16 %v4170_v63 }
  0xa5   : > { %699 = vst.msk [vmem:[#allocation2 + $0x3f] sm:$0xfe] %vm684_vm3, %v2603_v4 }
  0xa6   : > { %v4194_v52 = vpack.i.bf16 %v2504_v29, %v2503_v8 }
  0xa7   : > { %2831 = vrot.lane.b32.xlu1 %v4071_v25, %s3515_s24  ;;  %2826 = vrot.lane.b32.xlu0 %v3717_v35, %s3515_s24  ;;  %v4111_v34 = vpop.permute.xlu2 %2656  ;;  %v2589_v35 = vunpack.i.h.bf16 %v2587_v40  ;;  %v2608_v40 = vunpack.i.l.bf16 %v2607_v3  ;;  %v2629_v3 = vunpack.i.h.bf16 %v4043_v10 }
  0xa9   : > { %v2622_v59 = vpop.permute.xlu1 %2621  ;;  %v4097_v39 = vpop.permute.xlu0 %2616  ;;  %694 = vst.msk [vmem:[#allocation2 + $0x27] sm:$0xff] %vm686_vm4, %v2589_v35  ;;  %v2604_v35 = vunpack.i.h.bf16 %v4063_v16  ;;  %2836 = vrot.lane.b32.xlu2 %v3753_v48, %s3515_s24 }
  0xaa   : > { %701 = vst.msk [vmem:[#allocation2 + $0x4f] sm:$0x1] %vm688_vm2, %v2608_v40  ;;  %v2624_v16 = vunpack.i.h.bf16 %v2622_v59  ;;  %v2623_v37 = vunpack.i.l.bf16 %v2622_v59  ;;  %v2619_v10 = vunpack.i.h.bf16 %v4097_v39  ;;  %v2618_v24 = vunpack.i.l.bf16 %v4097_v39 }
  0xab   : > { %700 = vst.msk [vmem:[#allocation2 + $0x47] sm:$0xff] %vm686_vm4, %v2604_v35  ;;  %v2644_v59 = vunpack.i.h.bf16 %v4073_v11 }
  0xac   : > { %710 = vst.msk [vmem:[#allocation2 + $0x7f] sm:$0x1] %vm688_vm2, %v2629_v3  ;;  %v2658_v3 = vunpack.i.l.bf16 %v4111_v34 }
  0xad   : > { %708 = vst.msk [vmem:[#allocation2 + $0x6f] sm:$0xfe] %vm684_vm3, %v2624_v16 }
  0xae   : > { %707 = vst.msk [vmem:[#allocation2 + $0x6f] sm:$0x1] %vm688_vm2, %v2623_v37 }
  0xaf   : > { %2846 = vrot.lane.b32.xlu1 %v3789_v61, %s3515_s24  ;;  %2841 = vrot.lane.b32.xlu0 %v4109_v27, %s3515_s24  ;;  %v4135_v22 = vpop.permute.xlu2 %2671  ;;  %706 = vst.msk [vmem:[#allocation2 + $0x67] sm:$0xff] %vm686_vm4, %v2619_v10 }
  0xb0   : > { %705 = vst.msk [vmem:[#allocation2 + $0x5f] sm:$0xfe] %vm684_vm3, %v2618_v24  ;;  %v2673_v24 = vunpack.i.l.bf16 %v4135_v22 }
  0xb1   : > { %v2637_v2 = vpop.permute.xlu1 %2636  ;;  %v2632_v60 = vpop.permute.xlu0 %2631  ;;  %2851 = vrot.lane.b32.xlu2 %v4155_v18, %s3515_s24  ;;  %716 = vst.msk [vmem:[#allocation2 + $0x9f] sm:$0x1] %vm688_vm2, %v2644_v59 }
  0xb2   : > { %v2639_v39 = vunpack.i.h.bf16 %v2637_v2  ;;  %v2638_v38 = vunpack.i.l.bf16 %v2637_v2  ;;  %v2634_v11 = vunpack.i.h.bf16 %v2632_v60  ;;  %v2633_v40 = vunpack.i.l.bf16 %v2632_v60  ;;  %721 = vst.msk [vmem:[#allocation2 + $0xb7] sm:$0xff] %vm686_vm4, %v2658_v3 }
  0xb3   : > { %v2659_v2 = vunpack.i.h.bf16 %v4111_v34  ;;  %727 = vst.msk [vmem:[#allocation2 + $0xd7] sm:$0xff] %vm686_vm4, %v2673_v24 }
  0xb4   : > { %714 = vst.msk [vmem:[#allocation2 + $0x8f] sm:$0xfe] %vm684_vm3, %v2639_v39 }
  0xb5   : > { %713 = vst.msk [vmem:[#allocation2 + $0x8f] sm:$0x1] %vm688_vm2, %v2638_v38 }
  0xb6   : > { %712 = vst.msk [vmem:[#allocation2 + $0x87] sm:$0xff] %vm686_vm4, %v2634_v11  ;;  %v5077_v11 = vunpack.c.l.bf16 %v3641_v9 }
  0xb7   : > { %2861 = vrot.lane.b32.xlu1 %v4133_v53, %s3515_s24  ;;  %2856 = vrot.lane.b32.xlu0 %v3823_v46, %s3515_s24  ;;  %v4165_v50 = vpop.permute.xlu2 %2686  ;;  %711 = vst.msk [vmem:[#allocation2 + $0x7f] sm:$0xfe] %vm684_vm3, %v2633_v40 }
  0xb8   : > { %722 = vst.msk [vmem:[#allocation2 + $0xbf] sm:$0x1] %vm688_vm2, %v2659_v2  ;;  %v4221_v40 = vpack.i.bf16 %v5077_v11, %v3657_v14  ;;  %v2688_v9 = vunpack.i.l.bf16 %v4165_v50  ;;  %v5079_v11 = vunpack.c.l.bf16 %v3669_v19 }
  0xb9   : > { %v2652_v47 = vpop.permute.xlu1 %2651  ;;  %v2647_v58 = vpop.permute.xlu0 %2646  ;;  %2866 = vrot.lane.b32.xlu2 %v3859_v17, %s3515_s24 }
  0xba   : > { %v2654_v60 = vunpack.i.h.bf16 %v2652_v47  ;;  %v2653_v37 = vunpack.i.l.bf16 %v2652_v47  ;;  %v2649_v34 = vunpack.i.h.bf16 %v2647_v58  ;;  %v2648_v10 = vunpack.i.l.bf16 %v2647_v58  ;;  %733 = vst.msk [vmem:[#allocation2 + $0xf7] sm:$0xff] %vm686_vm4, %v2688_v9 }
  0xbb   : > { %v2674_v47 = vunpack.i.h.bf16 %v4135_v22  ;;  %v4214_v58 = vpack.i.bf16 %v3899_v33, %v3876_v0  ;;  %v2689_v33 = vunpack.i.h.bf16 %v4165_v50  ;;  %v5080_v9 = vunpack.c.l.bf16 %v3720_v36 }
  0xbc   : > { %720 = vst.msk [vmem:[#allocation2 + $0xaf] sm:$0xfe] %vm684_vm3, %v2654_v60 }
  0xbd   : > { %719 = vst.msk [vmem:[#allocation2 + $0xaf] sm:$0x1] %vm688_vm2, %v2653_v37  ;;  %v5078_v37 = vunpack.c.l.bf16 %v3628_v1 }
  0xbe   : > { %718 = vst.msk [vmem:[#allocation2 + $0xa7] sm:$0xff] %vm686_vm4, %v2649_v34 }
  0xbf   : > { %2876 = vrot.lane.b32.xlu1 %v3895_v54, %s3515_s24  ;;  %2871 = vrot.lane.b32.xlu0 %v4163_v42, %s3515_s24  ;;  %v4196_v16 = vpop.permute.xlu2 %2701  ;;  %717 = vst.msk [vmem:[#allocation2 + $0x9f] sm:$0xfe] %vm684_vm3, %v2648_v10  ;;  %v4240_v34 = vpack.i.bf16 %v3655_v13, %v5078_v37 }
  0xc0   : > { %728 = vst.msk [vmem:[#allocation2 + $0xdf] sm:$0x1] %vm688_vm2, %v2674_v47  ;;  %v4246_v47 = vpack.i.bf16 %v3691_v28, %v3701_v31  ;;  %v2704_v1 = vunpack.i.h.bf16 %v4196_v16 }
  0xc1   : > { %v2667_v35 = vpop.permute.xlu1 %2666  ;;  %v2662_v4 = vpop.permute.xlu0 %2661  ;;  %2881 = vrot.lane.b32.xlu2 %v4214_v58, %s3515_s24  ;;  %734 = vst.msk [vmem:[#allocation2 + $0xff] sm:$0x1] %vm688_vm2, %v2689_v33 }
  0xc2   : > { %v2669_v39 = vunpack.i.h.bf16 %v2667_v35  ;;  %v2668_v38 = vunpack.i.l.bf16 %v2667_v35  ;;  %v2664_v22 = vunpack.i.h.bf16 %v2662_v4  ;;  %v2663_v3 = vunpack.i.l.bf16 %v2662_v4  ;;  %887 = vst.msk [vmem:[#allocation2 + $0x1e] sm:$0x3] %vm883_vm5, %v2704_v1 }
  0xc4   : > { %726 = vst.msk [vmem:[#allocation2 + $0xcf] sm:$0xfe] %vm684_vm3, %v2669_v39 }
  0xc5   : > { %725 = vst.msk [vmem:[#allocation2 + $0xcf] sm:$0x1] %vm688_vm2, %v2668_v38 }
  0xc6   : > { %724 = vst.msk [vmem:[#allocation2 + $0xc7] sm:$0xff] %vm686_vm4, %v2664_v22  ;;  %v4265_v22 = vpack.i.bf16 %v3699_v30, %v5079_v11 }
  0xc7   : > { %2891 = vrot.lane.b32.xlu1 %v4041_v6, %s3516_s25  ;;  %2886 = vrot.lane.b32.xlu0 %v4194_v52, %s3515_s24  ;;  %v2717_v2 = vpop.permute.xlu2 %2716  ;;  %723 = vst.msk [vmem:[#allocation2 + $0xbf] sm:$0xfe] %vm684_vm3, %v2663_v3  ;;  %s308_s24 = scalar_lea.vmem [#allocation3], %s307_s19 }
  0xc8   : > { %v2719_v3 = vunpack.i.h.bf16 %v2717_v2  ;;  %v2718_v33 = vunpack.i.l.bf16 %v2717_v2 }
  0xc9   : > { %v2682_v59 = vpop.permute.xlu1 %2681  ;;  %v2677_v45 = vpop.permute.xlu0 %2676  ;;  %2896 = vrot.lane.b32.xlu2 %v4240_v34, %s3516_s25 }
  0xca   : > { %v2684_v14 = vunpack.i.h.bf16 %v2682_v59  ;;  %v2683_v35 = vunpack.i.l.bf16 %v2682_v59  ;;  %v2679_v50 = vunpack.i.h.bf16 %v2677_v45  ;;  %v2678_v10 = vunpack.i.l.bf16 %v2677_v45  ;;  %893 = vst.msk [vmem:[#allocation2 + $0x3e] sm:$0x3] %vm883_vm5, %v2719_v3 }
  0xcb   : > { %v2703_v59 = vunpack.i.l.bf16 %v4196_v16  ;;  %892 = vst.msk [vmem:[#allocation2 + $0x36] sm:$0xff] %vm881_vm6, %v2718_v33  ;;  %v5084_v33 = vld [vmem:[#allocation10_spill] sm:$0xff] }
  0xcc   : > { %732 = vst.msk [vmem:[#allocation2 + $0xef] sm:$0xfe] %vm684_vm3, %v2684_v14  ;;  %v4272_v14 = vpack.i.bf16 %v5080_v9, %v3738_v44  ;;  %v4311_v9 = vpack.i.bf16 %v3772_v56, %v5084_v33 }
  0xcd   : > { %731 = vst.msk [vmem:[#allocation2 + $0xef] sm:$0x1] %vm688_vm2, %v2683_v35  ;;  %vm1730_vm2 = vcmask 195752  }
  0xce   : > { %730 = vst.msk [vmem:[#allocation2 + $0xe7] sm:$0xff] %vm686_vm4, %v2679_v50  ;;  %v5081_v50 = vld [vmem:[#allocation7_spill] sm:$0xff]  ;;  %vm1732_vm4 = vcmask 188584  }
  0xcf   : > { %2906 = vrot.lane.b32.xlu1 %v4101_v5, %s3516_s25  ;;  %2901 = vrot.lane.b32.xlu0 %v4221_v40, %s3516_s25  ;;  %v2732_v24 = vpop.permute.xlu2 %2731  ;;  %729 = vst.msk [vmem:[#allocation2 + $0xdf] sm:$0xfe] %vm684_vm3, %v2678_v10  ;;  %v5082_v10 = vunpack.c.l.bf16 %v5081_v50  ;;  %vm1923_vm3 = vcmask 220354  }
  0xd0   : > { %886 = vst.msk [vmem:[#allocation2 + $0x16] sm:$0xff] %vm881_vm6, %v2703_v59  ;;  %v2734_v36 = vunpack.i.h.bf16 %v2732_v24  ;;  %v2733_v44 = vunpack.i.l.bf16 %v2732_v24 }
  0xd1   : > { %v2697_v4 = vpop.permute.xlu1 %2696  ;;  %v2692_v60 = vpop.permute.xlu0 %2691  ;;  %2911 = vrot.lane.b32.xlu2 %v4265_v22, %s3516_s25  ;;  %v4289_v59 = vpack.i.bf16 %v3736_v43, %v5082_v10 }
  0xd2   : > { %v2698_v13 = vunpack.i.l.bf16 %v2697_v4  ;;  %v2699_v31 = vunpack.i.h.bf16 %v2697_v4  ;;  %v2693_v16 = vunpack.i.l.bf16 %v2692_v60  ;;  %v2694_v45 = vunpack.i.h.bf16 %v2692_v60  ;;  %899 = vst.msk [vmem:[#allocation2 + $0x5e] sm:$0x3] %vm883_vm5, %v2734_v36 }
  0xd3   : > { %898 = vst.msk [vmem:[#allocation2 + $0x56] sm:$0xff] %vm881_vm6, %v2733_v44 }
  0xd4   : > { %884 = vst.msk [vmem:[#allocation2 + $0xe] sm:$0x3] %vm883_vm5, %v2698_v13 }
  0xd5   : > { %885 = vst.msk [vmem:[#allocation2 + $0xe] sm:$0xfc] %vm879_vm7, %v2699_v31  ;;  %v5083_v31 = vld [vmem:[#allocation11_spill] sm:$0xff] }
  0xd6   : > { %880 = vst.msk [vmem:[#allocation2 - $0x2] sm:$0xfc] %vm879_vm7, %v2693_v16  ;;  %v4295_v16 = vpack.i.bf16 %v5083_v31, %v3774_v57 }
  0xd7   : > { %2921 = vrot.lane.b32.xlu1 %v4071_v25, %s3516_s25  ;;  %2916 = vrot.lane.b32.xlu0 %v4246_v47, %s3516_s25  ;;  %v2747_v35 = vpop.permute.xlu2 %2746  ;;  %882 = vst.msk [vmem:[#allocation2 + $0x6] sm:$0xff] %vm881_vm6, %v2694_v45 }
  0xd8   : > { %v2748_v11 = vunpack.i.l.bf16 %v2747_v35 }
  0xd9   : > { %v2712_v39 = vpop.permute.xlu1 %2711  ;;  %v2707_v38 = vpop.permute.xlu0 %2706  ;;  %2926 = vrot.lane.b32.xlu2 %v4289_v59, %s3516_s25 }
  0xda   : > { %v2714_v4 = vunpack.i.h.bf16 %v2712_v39  ;;  %v2713_v19 = vunpack.i.l.bf16 %v2712_v39  ;;  %v2709_v30 = vunpack.i.h.bf16 %v2707_v38  ;;  %v2708_v2 = vunpack.i.l.bf16 %v2707_v38  ;;  %904 = vst.msk [vmem:[#allocation2 + $0x76] sm:$0xff] %vm881_vm6, %v2748_v11 }
  0xdb   : > { %v2749_v38 = vunpack.i.h.bf16 %v2747_v35 }
  0xdc   : > { %891 = vst.msk [vmem:[#allocation2 + $0x2e] sm:$0xfc] %vm879_vm7, %v2714_v4 }
  0xdd   : > { %890 = vst.msk [vmem:[#allocation2 + $0x2e] sm:$0x3] %vm883_vm5, %v2713_v19 }
  0xde   : > { %889 = vst.msk [vmem:[#allocation2 + $0x26] sm:$0xff] %vm881_vm6, %v2709_v30 }
  0xdf   : > { %2936 = vrot.lane.b32.xlu1 %v4109_v27, %s3516_s25  ;;  %2931 = vrot.lane.b32.xlu0 %v4272_v14, %s3516_s25  ;;  %888 = vst.msk [vmem:[#allocation2 + $0x1e] sm:$0xfc] %vm879_vm7, %v2708_v2  ;;  %v2762_v39 = vpop.permute.xlu2 %2761  ;;  %v5085_v2 = vld [vmem:[#allocation13_spill] sm:$0xff] }
  0xe0   : > { %905 = vst.msk [vmem:[#allocation2 + $0x7e] sm:$0x3] %vm883_vm5, %v2749_v38  ;;  %v2960_v36 = vpack.i.bf16 %v5085_v2, %v3809_v26  ;;  %v2764_v44 = vunpack.i.h.bf16 %v2762_v39 }
  0xe1   : > { %v2727_v60 = vpop.permute.xlu1 %2726  ;;  %v2722_v37 = vpop.permute.xlu0 %2721  ;;  %2941 = vrot.lane.b32.xlu2 %v4311_v9, %s3516_s25 }
  0xe2   : > { %v2729_v1 = vunpack.i.h.bf16 %v2727_v60  ;;  %v2728_v13 = vunpack.i.l.bf16 %v2727_v60  ;;  %v2723_v24 = vunpack.i.l.bf16 %v2722_v37  ;;  %v2724_v45 = vunpack.i.h.bf16 %v2722_v37  ;;  %911 = vst.msk [vmem:[#allocation2 + $0x9e] sm:$0x3] %vm883_vm5, %v2764_v44  ;;  %v5090_v44 = vld [vmem:[#allocation16_spill] sm:$0xff] }
  0xe3   : > { %v2763_v60 = vunpack.i.l.bf16 %v2762_v39 }
  0xe4   : > { %897 = vst.msk [vmem:[#allocation2 + $0x4e] sm:$0xfc] %vm879_vm7, %v2729_v1 }
  0xe5   : > { %896 = vst.msk [vmem:[#allocation2 + $0x4e] sm:$0x3] %vm883_vm5, %v2728_v13  ;;  %v5086_v13 = vld [vmem:[#allocation12_spill] sm:$0xff] }
  0xe6   : > { %894 = vst.msk [vmem:[#allocation2 + $0x3e] sm:$0xfc] %vm879_vm7, %v2723_v24  ;;  %v5087_v24 = vunpack.c.l.bf16 %v5086_v13  ;;  %v368_v13 = vld [vmem:[%s3624_s21 + $0xc8] sm:$0x1] }
  0xe7   : > { %2951 = vrot.lane.b32.xlu1 %v4155_v18, %s3516_s25  ;;  %2946 = vrot.lane.b32.xlu0 %v4295_v16, %s3516_s25  ;;  %895 = vst.msk [vmem:[#allocation2 + $0x46] sm:$0xff] %vm881_vm6, %v2724_v45  ;;  %v2777_v56 = vpop.permute.xlu2 %2776 }
  0xe8   : > { %v2779_v37 = vunpack.i.h.bf16 %v2777_v56  ;;  %v2778_v50 = vunpack.i.l.bf16 %v2777_v56  ;;  %910 = vst.msk [vmem:[#allocation2 + $0x96] sm:$0xff] %vm881_vm6, %v2763_v60  ;;  %v4331_v45 = vpack.i.bf16 %v3807_v23, %v5087_v24  ;;  %v2970_v60 = vpack.i.bf16 %v3843_v41, %v5090_v44 }
  0xe9   : > { %v2742_v57 = vpop.permute.xlu1 %2741  ;;  %v2737_v3 = vpop.permute.xlu0 %2736 }
  0xea   : > { %v2744_v4 = vunpack.i.h.bf16 %v2742_v57  ;;  %v2743_v35 = vunpack.i.l.bf16 %v2742_v57  ;;  %v2738_v19 = vunpack.i.l.bf16 %v2737_v3  ;;  %v2739_v30 = vunpack.i.h.bf16 %v2737_v3  ;;  %917 = vst.msk [vmem:[#allocation2 + $0xbe] sm:$0x3] %vm883_vm5, %v2779_v37  ;;  %v5088_v3 = vld [vmem:[#allocation15_spill] sm:$0xff]  ;;  %2956 = vrot.lane.b32.xlu2 %v4331_v45, %s3516_s25 }
  0xeb   : > { %916 = vst.msk [vmem:[#allocation2 + $0xb6] sm:$0xff] %vm881_vm6, %v2778_v50 }
  0xec   : > { %903 = vst.msk [vmem:[#allocation2 + $0x6e] sm:$0xfc] %vm879_vm7, %v2744_v4  ;;  %v5089_v4 = vunpack.c.l.bf16 %v5088_v3  ;;  %v5091_v3 = vld [vmem:[#allocation18_spill] sm:$0xff] }
  0xed   : > { %902 = vst.msk [vmem:[#allocation2 + $0x6e] sm:$0x3] %vm883_vm5, %v2743_v35 }
  0xee   : > { %900 = vst.msk [vmem:[#allocation2 + $0x5e] sm:$0xfc] %vm879_vm7, %v2738_v19  ;;  %v4338_v35 = vpack.i.bf16 %v5089_v4, %v3845_v7  ;;  %v2985_v4 = vpack.i.bf16 %v3878_v49, %v5091_v3 }
  0xef   : > { %901 = vst.msk [vmem:[#allocation2 + $0x66] sm:$0xff] %vm881_vm6, %v2739_v30  ;;  %2966 = vrot.lane.b32.xlu1 %v4133_v53, %s3516_s25  ;;  %2961 = vrot.lane.b32.xlu0 %v2960_v36, %s3516_s25  ;;  %v2792_v23 = vpop.permute.xlu2 %2791 }
  0xf0   : > { %v2794_v7 = vunpack.i.h.bf16 %v2792_v23  ;;  %v2793_v19 = vunpack.i.l.bf16 %v2792_v23 }
  0xf1   : > { %v2757_v10 = vpop.permute.xlu1 %2756  ;;  %v2752_v1 = vpop.permute.xlu0 %2751 }
  0xf2   : > { %v2759_v39 = vunpack.i.h.bf16 %v2757_v10  ;;  %v2758_v38 = vunpack.i.l.bf16 %v2757_v10  ;;  %v2753_v11 = vunpack.i.l.bf16 %v2752_v1  ;;  %v2754_v57 = vunpack.i.h.bf16 %v2752_v1  ;;  %923 = vst.msk [vmem:[#allocation2 + $0xde] sm:$0x3] %vm883_vm5, %v2794_v7  ;;  %2971 = vrot.lane.b32.xlu2 %v2970_v60, %s3516_s25 }
  0xf3   : > { %922 = vst.msk [vmem:[#allocation2 + $0xd6] sm:$0xff] %vm881_vm6, %v2793_v19  ;;  %v4356_v1 = vpack.i.bf16 %v3870_v12, %v3880_v51  ;;  %v4368_v51 = vunpack.c.l.bf16 %v368_v13 }
  0xf4   : > { %909 = vst.msk [vmem:[#allocation2 + $0x8e] sm:$0xfc] %vm879_vm7, %v2759_v39 }
  0xf5   : > { %908 = vst.msk [vmem:[#allocation2 + $0x8e] sm:$0x3] %vm883_vm5, %v2758_v38 }
  0xf6   : > { %906 = vst.msk [vmem:[#allocation2 + $0x7e] sm:$0xfc] %vm879_vm7, %v2753_v11 }
  0xf7   : > { %907 = vst.msk [vmem:[#allocation2 + $0x86] sm:$0xff] %vm881_vm6, %v2754_v57  ;;  %2981 = vrot.lane.b32.xlu1 %v4163_v42, %s3516_s25  ;;  %2976 = vrot.lane.b32.xlu0 %v4338_v35, %s3516_s25  ;;  %v2807_v24 = vpop.permute.xlu2 %2806 }
  0xf8   : > { %v2809_v39 = vunpack.i.h.bf16 %v2807_v24  ;;  %v2808_v38 = vunpack.i.l.bf16 %v2807_v24 }
  0xf9   : > { %v2772_v30 = vpop.permute.xlu1 %2771  ;;  %v2767_v36 = vpop.permute.xlu0 %2766 }
  0xfa   : > { %v2774_v56 = vunpack.i.h.bf16 %v2772_v30  ;;  %v2773_v37 = vunpack.i.l.bf16 %v2772_v30  ;;  %v2768_v50 = vunpack.i.l.bf16 %v2767_v36  ;;  %v2769_v10 = vunpack.i.h.bf16 %v2767_v36  ;;  %929 = vst.msk [vmem:[#allocation2 + $0xfe] sm:$0x3] %vm883_vm5, %v2809_v39  ;;  %2986 = vrot.lane.b32.xlu2 %v2985_v4, %s3516_s25 }
  0xfb   : > { %928 = vst.msk [vmem:[#allocation2 + $0xf6] sm:$0xff] %vm881_vm6, %v2808_v38  ;;  %v4377_v36 = vpack.i.bf16 %v4368_v51, %v2504_v29 }
  0xfc   : > { %915 = vst.msk [vmem:[#allocation2 + $0xae] sm:$0xfc] %vm879_vm7, %v2774_v56 }
  0xfd   : > { %914 = vst.msk [vmem:[#allocation2 + $0xae] sm:$0x3] %vm883_vm5, %v2773_v37  ;;  %v5092_v37 = vunpack.c.l.bf16 %v3887_v62 }
  0xfe   : > { %912 = vst.msk [vmem:[#allocation2 + $0x9e] sm:$0xfc] %vm879_vm7, %v2768_v50 }
  0xff   : > { %913 = vst.msk [vmem:[#allocation2 + $0xa6] sm:$0xff] %vm881_vm6, %v2769_v10  ;;  %2996 = vrot.lane.b32.xlu1 %v4214_v58, %s3516_s25  ;;  %2991 = vrot.lane.b32.xlu0 %v4356_v1, %s3516_s25  ;;  %v2822_v60 = vpop.permute.xlu2 %2821  ;;  %v4392_v50 = vpack.i.bf16 %v2503_v8, %v5092_v37 }
 0x100   : > { %v2823_v38 = vunpack.i.l.bf16 %v2822_v60 }
 0x101   : > { %v2787_v11 = vpop.permute.xlu1 %2786  ;;  %v2782_v57 = vpop.permute.xlu0 %2781 }
 0x102   : > { %v2789_v23 = vunpack.i.h.bf16 %v2787_v11  ;;  %v2788_v7 = vunpack.i.l.bf16 %v2787_v11  ;;  %v2783_v19 = vunpack.i.l.bf16 %v2782_v57  ;;  %v2784_v30 = vunpack.i.h.bf16 %v2782_v57  ;;  %3001 = vrot.lane.b32.xlu2 %v4392_v50, %s3516_s25  ;;  %1033 = vst.msk [vmem:[#allocation2 + $0x20] sm:$0xff] %vm1028_vm8, %v2823_v38 }
 0x104   : > { %921 = vst.msk [vmem:[#allocation2 + $0xce] sm:$0xfc] %vm879_vm7, %v2789_v23 }
 0x105   : > { %920 = vst.msk [vmem:[#allocation2 + $0xce] sm:$0x3] %vm883_vm5, %v2788_v7 }
 0x106   : > { %918 = vst.msk [vmem:[#allocation2 + $0xbe] sm:$0xfc] %vm879_vm7, %v2783_v19 }
 0x107   : > { %919 = vst.msk [vmem:[#allocation2 + $0xc6] sm:$0xff] %vm881_vm6, %v2784_v30  ;;  %3011 = vrot.lane.b32.xlu1 %v4041_v6, %s3517_s26  ;;  %3006 = vrot.lane.b32.xlu0 %v4377_v36, %s3516_s25  ;;  %v2824_v6 = vunpack.i.h.bf16 %v2822_v60  ;;  %v2837_v62 = vpop.permute.xlu2 %2836  ;;  %s2367_s25 = sshll.u32 %s308_s24, 4  ;;  %s2368_s25 = int_to_ptr.vmem [resolvable:$true] %s2367_s25 }
 0x108   : > { %v2839_v63 = vunpack.i.h.bf16 %v2837_v62  ;;  %v2838_v8 = vunpack.i.l.bf16 %v2837_v62 }
 0x109   : > { %v2802_v29 = vpop.permute.xlu1 %2801  ;;  %v2797_v56 = vpop.permute.xlu0 %2796  ;;  %1034 = vst.msk [vmem:[#allocation2 + $0x28] sm:$0xff] %vm1028_vm8, %v2824_v6 }
 0x10a   : > { %v2804_v10 = vunpack.i.h.bf16 %v2802_v29  ;;  %v2803_v13 = vunpack.i.l.bf16 %v2802_v29  ;;  %v2798_v24 = vunpack.i.l.bf16 %v2797_v56  ;;  %v2799_v39 = vunpack.i.h.bf16 %v2797_v56  ;;  %1039 = vst.msk [vmem:[#allocation2 + $0x50] sm:$0xff] %vm1028_vm8, %v2838_v8  ;;  %3016 = vrot.lane.b32.xlu2 %v4240_v34, %s3517_s26 }
 0x10b   : > { %1040 = vst.msk [vmem:[#allocation2 + $0x58] sm:$0xff] %vm1028_vm8, %v2839_v63 }
 0x10c   : > { %927 = vst.msk [vmem:[#allocation2 + $0xee] sm:$0xfc] %vm879_vm7, %v2804_v10 }
 0x10d   : > { %926 = vst.msk [vmem:[#allocation2 + $0xee] sm:$0x3] %vm883_vm5, %v2803_v13  ;;  %vm1925_vm5 = vcmask 220352  }
 0x10e   : > { %924 = vst.msk [vmem:[#allocation2 + $0xde] sm:$0xfc] %vm879_vm7, %v2798_v24  ;;  %vm2325_vm7 = vcmask 1043456  }
 0x10f   : > { %925 = vst.msk [vmem:[#allocation2 + $0xe6] sm:$0xff] %vm881_vm6, %v2799_v39  ;;  %3026 = vrot.lane.b32.xlu1 %v4101_v5, %s3517_s26  ;;  %3021 = vrot.lane.b32.xlu0 %v4221_v40, %s3517_s26  ;;  %v2852_v40 = vpop.permute.xlu2 %2851  ;;  %vm1927_vm6 = vcmask 214208  }
 0x110   : > { %v2854_v30 = vunpack.i.h.bf16 %v2852_v40  ;;  %v2853_v60 = vunpack.i.l.bf16 %v2852_v40 }
 0x111   : > { %v2817_v11 = vpop.permute.xlu1 %2816  ;;  %v2812_v57 = vpop.permute.xlu0 %2811 }
 0x112   : > { %v2818_v4 = vunpack.i.l.bf16 %v2817_v11  ;;  %v2814_v23 = vunpack.i.h.bf16 %v2812_v57  ;;  %v2813_v7 = vunpack.i.l.bf16 %v2812_v57  ;;  %v2819_v19 = vunpack.i.h.bf16 %v2817_v11  ;;  %1045 = vst.msk [vmem:[#allocation2 + $0x80] sm:$0xff] %vm1028_vm8, %v2853_v60  ;;  %3031 = vrot.lane.b32.xlu2 %v4265_v22, %s3517_s26 }
 0x113   : > { %1046 = vst.msk [vmem:[#allocation2 + $0x88] sm:$0xff] %vm1028_vm8, %v2854_v30  ;;  %v3080_v60 = vpack.i.bf16 %v3843_v41, %v3809_v26 }
 0x114   : > { %1030 = vst.msk [vmem:[#allocation2 + $0x8] sm:$0xff] %vm1028_vm8, %v2814_v23 }
 0x115   : > { %1031 = vst.msk [vmem:[#allocation2 + $0x10] sm:$0xff] %vm1028_vm8, %v2818_v4 }
 0x116   : > { %1029 = vst.msk [vmem:[#allocation2] sm:$0xff] %vm1028_vm8, %v2813_v7 }
 0x117   : > { %3041 = vrot.lane.b32.xlu1 %v4071_v25, %s3517_s26  ;;  %3036 = vrot.lane.b32.xlu0 %v4246_v47, %s3517_s26  ;;  %1032 = vst.msk [vmem:[#allocation2 + $0x18] sm:$0xff] %vm1028_vm8, %v2819_v19  ;;  %v2867_v47 = vpop.permute.xlu2 %2866 }
 0x118   : > { %v2869_v24 = vunpack.i.h.bf16 %v2867_v47  ;;  %v2868_v39 = vunpack.i.l.bf16 %v2867_v47 }
 0x119   : > { %v2832_v29 = vpop.permute.xlu1 %2831  ;;  %v2827_v56 = vpop.permute.xlu0 %2826 }
 0x11a   : > { %v2833_v37 = vunpack.i.l.bf16 %v2832_v29  ;;  %v2829_v10 = vunpack.i.h.bf16 %v2827_v56  ;;  %v2828_v34 = vunpack.i.l.bf16 %v2827_v56  ;;  %v2834_v13 = vunpack.i.h.bf16 %v2832_v29  ;;  %1051 = vst.msk [vmem:[#allocation2 + $0xb0] sm:$0xff] %vm1028_vm8, %v2868_v39  ;;  %3046 = vrot.lane.b32.xlu2 %v4289_v59, %s3517_s26 }
 0x11b   : > { %1052 = vst.msk [vmem:[#allocation2 + $0xb8] sm:$0xff] %vm1028_vm8, %v2869_v24 }
 0x11c   : > { %1035 = vst.msk [vmem:[#allocation2 + $0x30] sm:$0xff] %vm1028_vm8, %v2828_v34 }
 0x11d   : > { %1036 = vst.msk [vmem:[#allocation2 + $0x38] sm:$0xff] %vm1028_vm8, %v2829_v10 }
 0x11e   : > { %1037 = vst.msk [vmem:[#allocation2 + $0x40] sm:$0xff] %vm1028_vm8, %v2833_v37 }
 0x11f   : > { %3056 = vrot.lane.b32.xlu1 %v4109_v27, %s3517_s26  ;;  %3051 = vrot.lane.b32.xlu0 %v4272_v14, %s3517_s26  ;;  %1038 = vst.msk [vmem:[#allocation2 + $0x48] sm:$0xff] %vm1028_vm8, %v2834_v13  ;;  %v2882_v11 = vpop.permute.xlu2 %2881 }
 0x120   : > { %v2884_v57 = vunpack.i.h.bf16 %v2882_v11  ;;  %v2883_v4 = vunpack.i.l.bf16 %v2882_v11 }
 0x121   : > { %v2847_v38 = vpop.permute.xlu1 %2846  ;;  %v2842_v6 = vpop.permute.xlu0 %2841 }
 0x122   : > { %v2848_v62 = vunpack.i.l.bf16 %v2847_v38  ;;  %v2844_v63 = vunpack.i.h.bf16 %v2842_v6  ;;  %v2843_v22 = vunpack.i.l.bf16 %v2842_v6  ;;  %v2849_v8 = vunpack.i.h.bf16 %v2847_v38  ;;  %1057 = vst.msk [vmem:[#allocation2 + $0xe0] sm:$0xff] %vm1028_vm8, %v2883_v4  ;;  %3061 = vrot.lane.b32.xlu2 %v4311_v9, %s3517_s26 }
 0x123   : > { %1058 = vst.msk [vmem:[#allocation2 + $0xe8] sm:$0xff] %vm1028_vm8, %v2884_v57 }
 0x124   : > { %1041 = vst.msk [vmem:[#allocation2 + $0x60] sm:$0xff] %vm1028_vm8, %v2843_v22 }
 0x125   : > { %1042 = vst.msk [vmem:[#allocation2 + $0x68] sm:$0xff] %vm1028_vm8, %v2844_v63 }
 0x126   : > { %1043 = vst.msk [vmem:[#allocation2 + $0x70] sm:$0xff] %vm1028_vm8, %v2848_v62 }
 0x127   : > { %3071 = vrot.lane.b32.xlu1 %v4155_v18, %s3517_s26  ;;  %3066 = vrot.lane.b32.xlu0 %v4295_v16, %s3517_s26  ;;  %1044 = vst.msk [vmem:[#allocation2 + $0x78] sm:$0xff] %vm1028_vm8, %v2849_v8  ;;  %v2897_v16 = vpop.permute.xlu2 %2896 }
 0x128   : > { %v2899_v26 = vunpack.i.h.bf16 %v2897_v16  ;;  %v2898_v29 = vunpack.i.l.bf16 %v2897_v16 }
 0x129   : > { %v2862_v23 = vpop.permute.xlu1 %2861  ;;  %v2857_v7 = vpop.permute.xlu0 %2856 }
 0x12a   : > { %v2863_v19 = vunpack.i.l.bf16 %v2862_v23  ;;  %v2859_v40 = vunpack.i.h.bf16 %v2857_v7  ;;  %v2858_v59 = vunpack.i.l.bf16 %v2857_v7  ;;  %v2864_v30 = vunpack.i.h.bf16 %v2862_v23  ;;  %1211 = vst.msk [vmem:[#allocation2 + $0xf] sm:$0x1] %vm1210_vm9, %v2898_v29  ;;  %3076 = vrot.lane.b32.xlu2 %v4331_v45, %s3517_s26 }
 0x12b   : > { %1212 = vst.msk [vmem:[#allocation2 + $0xf] sm:$0xfe] %vm1206_vm10, %v2899_v26 }
 0x12c   : > { %1047 = vst.msk [vmem:[#allocation2 + $0x90] sm:$0xff] %vm1028_vm8, %v2858_v59 }
 0x12d   : > { %1048 = vst.msk [vmem:[#allocation2 + $0x98] sm:$0xff] %vm1028_vm8, %v2859_v40 }
 0x12e   : > { %1049 = vst.msk [vmem:[#allocation2 + $0xa0] sm:$0xff] %vm1028_vm8, %v2863_v19 }
 0x12f   : > { %3086 = vrot.lane.b32.xlu1 %v3678_v21, %s3518_s10  ;;  %3081 = vrot.lane.b32.xlu0 %v3080_v60, %s3517_s26  ;;  %1050 = vst.msk [vmem:[#allocation2 + $0xa8] sm:$0xff] %vm1028_vm8, %v2864_v30  ;;  %v2912_v47 = vpop.permute.xlu2 %2911 }
 0x130   : > { %v2914_v24 = vunpack.i.h.bf16 %v2912_v47  ;;  %v2913_v39 = vunpack.i.l.bf16 %v2912_v47 }
 0x131   : > { %v2877_v56 = vpop.permute.xlu1 %2876  ;;  %v2872_v37 = vpop.permute.xlu0 %2871 }
 0x132   : > { %v2878_v9 = vunpack.i.l.bf16 %v2877_v56  ;;  %v2874_v10 = vunpack.i.h.bf16 %v2872_v37  ;;  %v2873_v34 = vunpack.i.l.bf16 %v2872_v37  ;;  %v2879_v13 = vunpack.i.h.bf16 %v2877_v56  ;;  %1217 = vst.msk [vmem:[#allocation2 + $0x2f] sm:$0x1] %vm1210_vm9, %v2913_v39  ;;  %3091 = vrot.lane.b32.xlu2 %v3678_v21, %s3520_s13 }
 0x133   : > { %1218 = vst.msk [vmem:[#allocation2 + $0x2f] sm:$0xfe] %vm1206_vm10, %v2914_v24  ;;  %v3135_v24 = vpack.i.bf16 %v3770_v55, %v3691_v28  ;;  %v5094_v28 = vld [vmem:[#allocation14_spill] sm:$0xff] }
 0x134   : > { %1053 = vst.msk [vmem:[#allocation2 + $0xc0] sm:$0xff] %vm1028_vm8, %v2873_v34 }
 0x135   : > { %1054 = vst.msk [vmem:[#allocation2 + $0xc8] sm:$0xff] %vm1028_vm8, %v2874_v10 }
 0x136   : > { %1055 = vst.msk [vmem:[#allocation2 + $0xd0] sm:$0xff] %vm1028_vm8, %v2878_v9 }
 0x137   : > { %1056 = vst.msk [vmem:[#allocation2 + $0xd8] sm:$0xff] %vm1028_vm8, %v2879_v13  ;;  %3101 = vrot.lane.b32.xlu1 %v3678_v21, %s3519_s12  ;;  %3096 = vrot.lane.b32.xlu0 %v3674_v20, %s3520_s13  ;;  %v2927_v8 = vpop.permute.xlu2 %2926 }
 0x138   : > { %v2929_v11 = vunpack.i.h.bf16 %v2927_v8  ;;  %v2928_v57 = vunpack.i.l.bf16 %v2927_v8 }
 0x139   : > { %v2892_v38 = vpop.permute.xlu1 %2891  ;;  %v2887_v6 = vpop.permute.xlu0 %2886 }
 0x13a   : > { %v2894_v62 = vunpack.i.h.bf16 %v2892_v38  ;;  %v2893_v45 = vunpack.i.l.bf16 %v2892_v38  ;;  %v2888_v63 = vunpack.i.l.bf16 %v2887_v6  ;;  %v2889_v22 = vunpack.i.h.bf16 %v2887_v6  ;;  %1223 = vst.msk [vmem:[#allocation2 + $0x4f] sm:$0x1] %vm1210_vm9, %v2928_v57  ;;  %3106 = vrot.lane.b32.xlu2 %v3674_v20, %s3519_s12 }
 0x13b   : > { %1224 = vst.msk [vmem:[#allocation2 + $0x4f] sm:$0xfe] %vm1206_vm10, %v2929_v11 }
 0x13c   : > { %1207 = vst.msk [vmem:[#allocation2 - $0x1] sm:$0xfe] %vm1206_vm10, %v2893_v45 }
 0x13d   : > { %1209 = vst.msk [vmem:[#allocation2 + $0x7] sm:$0xff] %vm1208_vm11, %v2894_v62 }
 0x13e   : > { %1059 = vst.msk [vmem:[#allocation2 + $0xf0] sm:$0xff] %vm1028_vm8, %v2888_v63 }
 0x13f   : > { %1060 = vst.msk [vmem:[#allocation2 + $0xf8] sm:$0xff] %vm1028_vm8, %v2889_v22  ;;  %3116 = vrot.lane.b32.xlu1 %v3706_v32, %s3520_s13  ;;  %3111 = vrot.lane.b32.xlu0 %v4101_v5, %s3518_s10  ;;  %v5093_v5 = vld [vmem:[#allocation8_spill] sm:$0xff]  ;;  %v2942_v59 = vpop.permute.xlu2 %2941  ;;  %vm2321_vm8 = vcmask 162816  }
 0x140   : > { %v2944_v30 = vunpack.i.h.bf16 %v2942_v59  ;;  %v2943_v60 = vunpack.i.l.bf16 %v2942_v59 }
 0x141   : > { %v2907_v4 = vpop.permute.xlu1 %2906  ;;  %v2902_v23 = vpop.permute.xlu0 %2901 }
 0x142   : > { %v2909_v7 = vunpack.i.h.bf16 %v2907_v4  ;;  %v2908_v19 = vunpack.i.l.bf16 %v2907_v4  ;;  %v2903_v40 = vunpack.i.l.bf16 %v2902_v23  ;;  %v2904_v21 = vunpack.i.h.bf16 %v2902_v23  ;;  %1229 = vst.msk [vmem:[#allocation2 + $0x6f] sm:$0x1] %vm1210_vm9, %v2943_v60  ;;  %3121 = vrot.lane.b32.xlu2 %v3706_v32, %s3519_s12  ;;  %v5095_v60 = vld [vmem:[#allocation6_spill] sm:$0xff] }
 0x143   : > { %1230 = vst.msk [vmem:[#allocation2 + $0x6f] sm:$0xfe] %vm1206_vm10, %v2944_v30 }
 0x144   : > { %1215 = vst.msk [vmem:[#allocation2 + $0x1f] sm:$0xfe] %vm1206_vm10, %v2908_v19 }
 0x145   : > { %1216 = vst.msk [vmem:[#allocation2 + $0x27] sm:$0xff] %vm1208_vm11, %v2909_v7 }
 0x146   : > { %1213 = vst.msk [vmem:[#allocation2 + $0x17] sm:$0xff] %vm1208_vm11, %v2903_v40 }
 0x147   : > { %1214 = vst.msk [vmem:[#allocation2 + $0x1f] sm:$0x1] %vm1210_vm9, %v2904_v21  ;;  %3131 = vrot.lane.b32.xlu1 %v5093_v5, %s3520_s13  ;;  %3126 = vrot.lane.b32.xlu0 %v5093_v5, %s3518_s10  ;;  %v2957_v9 = vpop.permute.xlu2 %2956 }
 0x148   : > { %v2959_v10 = vunpack.i.h.bf16 %v2957_v9  ;;  %v2958_v34 = vunpack.i.l.bf16 %v2957_v9 }
 0x149   : > { %v2922_v16 = vpop.permute.xlu1 %2921  ;;  %v2917_v26 = vpop.permute.xlu0 %2916 }
 0x14a   : > { %v2924_v29 = vunpack.i.h.bf16 %v2922_v16  ;;  %v2923_v56 = vunpack.i.l.bf16 %v2922_v16  ;;  %v2918_v37 = vunpack.i.l.bf16 %v2917_v26  ;;  %v2919_v20 = vunpack.i.h.bf16 %v2917_v26  ;;  %1235 = vst.msk [vmem:[#allocation2 + $0x8f] sm:$0x1] %vm1210_vm9, %v2958_v34  ;;  %3136 = vrot.lane.b32.xlu2 %v3135_v24, %s3520_s13 }
 0x14b   : > { %1236 = vst.msk [vmem:[#allocation2 + $0x8f] sm:$0xfe] %vm1206_vm10, %v2959_v10  ;;  %v3190_v16 = vpack.i.bf16 %v5095_v60, %v5091_v3 }
 0x14c   : > { %1221 = vst.msk [vmem:[#allocation2 + $0x3f] sm:$0xfe] %vm1206_vm10, %v2923_v56 }
 0x14d   : > { %1222 = vst.msk [vmem:[#allocation2 + $0x47] sm:$0xff] %vm1208_vm11, %v2924_v29 }
 0x14e   : > { %1219 = vst.msk [vmem:[#allocation2 + $0x37] sm:$0xff] %vm1208_vm11, %v2918_v37 }
 0x14f   : > { %1220 = vst.msk [vmem:[#allocation2 + $0x3f] sm:$0x1] %vm1210_vm9, %v2919_v20  ;;  %3146 = vrot.lane.b32.xlu1 %v5093_v5, %s3519_s12  ;;  %3141 = vrot.lane.b32.xlu0 %v4155_v18, %s3518_s10  ;;  %v2972_v55 = vpop.permute.xlu2 %2971 }
 0x150   : > { %v2974_v18 = vunpack.i.h.bf16 %v2972_v55  ;;  %v2973_v62 = vunpack.i.l.bf16 %v2972_v55 }
 0x151   : > { %v2937_v13 = vpop.permute.xlu1 %2936  ;;  %v2932_v47 = vpop.permute.xlu0 %2931 }
 0x152   : > { %v2939_v39 = vunpack.i.h.bf16 %v2937_v13  ;;  %v2938_v32 = vunpack.i.l.bf16 %v2937_v13  ;;  %v2934_v38 = vunpack.i.h.bf16 %v2932_v47  ;;  %v2933_v6 = vunpack.i.l.bf16 %v2932_v47  ;;  %1241 = vst.msk [vmem:[#allocation2 + $0xaf] sm:$0x1] %vm1210_vm9, %v2973_v62  ;;  %3151 = vrot.lane.b32.xlu2 %v3135_v24, %s3519_s12  ;;  %v5096_v47 = vld [vmem:[#allocation9_spill] sm:$0xff] }
 0x153   : > { %1242 = vst.msk [vmem:[#allocation2 + $0xaf] sm:$0xfe] %vm1206_vm10, %v2974_v18 }
 0x154   : > { %1227 = vst.msk [vmem:[#allocation2 + $0x5f] sm:$0xfe] %vm1206_vm10, %v2938_v32 }
 0x155   : > { %1228 = vst.msk [vmem:[#allocation2 + $0x67] sm:$0xff] %vm1208_vm11, %v2939_v39 }
 0x156   : > { %1226 = vst.msk [vmem:[#allocation2 + $0x5f] sm:$0x1] %vm1210_vm9, %v2934_v38 }
 0x157   : > { %1225 = vst.msk [vmem:[#allocation2 + $0x57] sm:$0xff] %vm1208_vm11, %v2933_v6  ;;  %3161 = vrot.lane.b32.xlu1 %v5094_v28, %s3519_s12  ;;  %3156 = vrot.lane.b32.xlu0 %v5094_v28, %s3520_s13  ;;  %v2987_v4 = vpop.permute.xlu2 %2986 }
 0x158   : > { %v2989_v23 = vunpack.i.h.bf16 %v2987_v4  ;;  %v2988_v7 = vunpack.i.l.bf16 %v2987_v4 }
 0x159   : > { %v2952_v45 = vpop.permute.xlu1 %2951  ;;  %v2947_v63 = vpop.permute.xlu0 %2946 }
 0x15a   : > { %v2954_v22 = vunpack.i.h.bf16 %v2952_v45  ;;  %v2953_v8 = vunpack.i.l.bf16 %v2952_v45  ;;  %v2949_v11 = vunpack.i.h.bf16 %v2947_v63  ;;  %v2948_v57 = vunpack.i.l.bf16 %v2947_v63  ;;  %1247 = vst.msk [vmem:[#allocation2 + $0xcf] sm:$0x1] %vm1210_vm9, %v2988_v7  ;;  %3166 = vrot.lane.b32.xlu2 %v4338_v35, %s3517_s26 }
 0x15b   : > { %1248 = vst.msk [vmem:[#allocation2 + $0xcf] sm:$0xfe] %vm1206_vm10, %v2989_v23  ;;  %v3220_v45 = vpack.i.bf16 %v3878_v49, %v5085_v2 }
 0x15c   : > { %1233 = vst.msk [vmem:[#allocation2 + $0x7f] sm:$0xfe] %vm1206_vm10, %v2953_v8 }
 0x15d   : > { %1234 = vst.msk [vmem:[#allocation2 + $0x87] sm:$0xff] %vm1208_vm11, %v2954_v22 }
 0x15e   : > { %1232 = vst.msk [vmem:[#allocation2 + $0x7f] sm:$0x1] %vm1210_vm9, %v2949_v11 }
 0x15f   : > { %1231 = vst.msk [vmem:[#allocation2 + $0x77] sm:$0xff] %vm1208_vm11, %v2948_v57  ;;  %3176 = vrot.lane.b32.xlu1 %v4163_v42, %s3520_s13  ;;  %3171 = vrot.lane.b32.xlu0 %v4163_v42, %s3518_s10  ;;  %v3002_v26 = vpop.permute.xlu2 %3001 }
 0x160   : > { %v3004_v29 = vunpack.i.h.bf16 %v3002_v26  ;;  %v3003_v56 = vunpack.i.l.bf16 %v3002_v26 }
 0x161   : > { %v2967_v19 = vpop.permute.xlu1 %2966  ;;  %v2962_v40 = vpop.permute.xlu0 %2961 }
 0x162   : > { %v2969_v21 = vunpack.i.h.bf16 %v2967_v19  ;;  %v2968_v5 = vunpack.i.l.bf16 %v2967_v19  ;;  %v2963_v59 = vunpack.i.l.bf16 %v2962_v40  ;;  %v2964_v30 = vunpack.i.h.bf16 %v2962_v40  ;;  %1253 = vst.msk [vmem:[#allocation2 + $0xef] sm:$0x1] %vm1210_vm9, %v3003_v56  ;;  %3181 = vrot.lane.b32.xlu2 %v3190_v16, %s3520_s13 }
 0x163   : > { %1254 = vst.msk [vmem:[#allocation2 + $0xef] sm:$0xfe] %vm1206_vm10, %v3004_v29 }
 0x164   : > { %1239 = vst.msk [vmem:[#allocation2 + $0x9f] sm:$0xfe] %vm1206_vm10, %v2968_v5 }
 0x165   : > { %1240 = vst.msk [vmem:[#allocation2 + $0xa7] sm:$0xff] %vm1208_vm11, %v2969_v21 }
 0x166   : > { %1237 = vst.msk [vmem:[#allocation2 + $0x97] sm:$0xff] %vm1208_vm11, %v2963_v59 }
 0x167   : > { %1238 = vst.msk [vmem:[#allocation2 + $0x9f] sm:$0x1] %vm1210_vm9, %v2964_v30  ;;  %3191 = vrot.lane.b32.xlu1 %v3190_v16, %s3519_s12  ;;  %3186 = vrot.lane.b32.xlu0 %v4163_v42, %s3519_s12  ;;  %v3017_v24 = vpop.permute.xlu2 %3016 }
 0x168   : > { %v3019_v39 = vunpack.i.h.bf16 %v3017_v24  ;;  %v3018_v32 = vunpack.i.l.bf16 %v3017_v24 }
 0x169   : > { %v2982_v37 = vpop.permute.xlu1 %2981  ;;  %v2977_v20 = vpop.permute.xlu0 %2976 }
 0x16a   : > { %v2984_v9 = vunpack.i.h.bf16 %v2982_v37  ;;  %v2983_v10 = vunpack.i.l.bf16 %v2982_v37  ;;  %v2979_v34 = vunpack.i.h.bf16 %v2977_v20  ;;  %v2978_v13 = vunpack.i.l.bf16 %v2977_v20  ;;  %1406 = vst.msk [vmem:[#allocation2 + $0xe] sm:$0x3] %vm1405_vm12, %v3018_v32  ;;  %3196 = vrot.lane.b32.xlu2 %v4071_v25, %s3518_s10 }
 0x16b   : > { %1407 = vst.msk [vmem:[#allocation2 + $0xe] sm:$0xfc] %vm1401_vm13, %v3019_v39  ;;  %v3240_v20 = vpack.i.bf16 %v5085_v2, %v5091_v3  ;;  %v2468_v3 = vld [vmem:[%s5019_s2 + $0x8] sm:$0xff] }
 0x16c   : > { %1245 = vst.msk [vmem:[#allocation2 + $0xbf] sm:$0xfe] %vm1206_vm10, %v2983_v10  ;;  %2096 = vmatpush.bf16.msra.mxu0 %v2468_v3  ;;  %2514 = vmatpush.bf16.msra.mxu2 %v2468_v3 }
 0x16d   : > { %1246 = vst.msk [vmem:[#allocation2 + $0xc7] sm:$0xff] %vm1208_vm11, %v2984_v9  ;;  %2515 = vmatpush.bf16.msra.mxu3 %v2468_v3  ;;  %2513 = vmatpush.bf16.msra.mxu1 %v2468_v3 }
 0x16e   : > { %1244 = vst.msk [vmem:[#allocation2 + $0xbf] sm:$0x1] %vm1210_vm9, %v2979_v34 }
 0x16f   : > { %1243 = vst.msk [vmem:[#allocation2 + $0xb7] sm:$0xff] %vm1208_vm11, %v2978_v13  ;;  %3206 = vrot.lane.b32.xlu1 %v3823_v46, %s3518_s10  ;;  %3201 = vrot.lane.b32.xlu0 %v5096_v47, %s3520_s13  ;;  %v3032_v63 = vpop.permute.xlu2 %3031 }
 0x170   : > { %v3034_v22 = vunpack.i.h.bf16 %v3032_v63  ;;  %v3033_v8 = vunpack.i.l.bf16 %v3032_v63 }
 0x171   : > { %v2997_v38 = vpop.permute.xlu1 %2996  ;;  %v2992_v6 = vpop.permute.xlu0 %2991 }
 0x172   : > { %v2999_v28 = vunpack.i.h.bf16 %v2997_v38  ;;  %v2998_v55 = vunpack.i.l.bf16 %v2997_v38  ;;  %v2994_v18 = vunpack.i.h.bf16 %v2992_v6  ;;  %v2993_v62 = vunpack.i.l.bf16 %v2992_v6  ;;  %1412 = vst.msk [vmem:[#allocation2 + $0x2e] sm:$0x3] %vm1405_vm12, %v3033_v8  ;;  %3211 = vrot.lane.b32.xlu2 %v5096_v47, %s3519_s12 }
 0x173   : > { %1413 = vst.msk [vmem:[#allocation2 + $0x2e] sm:$0xfc] %vm1401_vm13, %v3034_v22  ;;  %v2467_v22 = vld [vmem:[%s5019_s2] sm:$0xff] }
 0x174   : > { %1251 = vst.msk [vmem:[#allocation2 + $0xdf] sm:$0xfe] %vm1206_vm10, %v2998_v55  ;;  %2097 = vmatpush.bf16.msra.mxu0 %v2467_v22  ;;  %2517 = vmatpush.bf16.msra.mxu2 %v2467_v22  ;;  %vm2354_vm10 = vcmask 516096  }
 0x175   : > { %1252 = vst.msk [vmem:[#allocation2 + $0xe7] sm:$0xff] %vm1208_vm11, %v2999_v28  ;;  %2518 = vmatpush.bf16.msra.mxu3 %v2467_v22  ;;  %2516 = vmatpush.bf16.msra.mxu1 %v2467_v22 }
 0x176   : > { %1250 = vst.msk [vmem:[#allocation2 + $0xdf] sm:$0x1] %vm1210_vm9, %v2994_v18 }
 0x177   : > { %1249 = vst.msk [vmem:[#allocation2 + $0xd7] sm:$0xff] %vm1208_vm11, %v2993_v62  ;;  %3221 = vrot.lane.b32.xlu1 %v3220_v45, %s3520_s13  ;;  %3216 = vrot.lane.b32.xlu0 %v3823_v46, %s3520_s13  ;;  %v3047_v7 = vpop.permute.xlu2 %3046 }
 0x178   : > { %v3049_v19 = vunpack.i.h.bf16 %v3047_v7  ;;  %v3048_v40 = vunpack.i.l.bf16 %v3047_v7 }
 0x179   : > { %v3012_v49 = vpop.permute.xlu1 %3011  ;;  %v3007_v11 = vpop.permute.xlu0 %3006 }
 0x17a   : > { %v3014_v57 = vunpack.i.h.bf16 %v3012_v49  ;;  %v3013_v4 = vunpack.i.l.bf16 %v3012_v49  ;;  %v3008_v23 = vunpack.i.l.bf16 %v3007_v11  ;;  %v3009_v25 = vunpack.i.h.bf16 %v3007_v11  ;;  %1418 = vst.msk [vmem:[#allocation2 + $0x4e] sm:$0x3] %vm1405_vm12, %v3048_v40  ;;  %3226 = vrot.lane.b32.xlu2 %v3823_v46, %s3519_s12 }
 0x17b   : > { %1419 = vst.msk [vmem:[#allocation2 + $0x4e] sm:$0xfc] %vm1401_vm13, %v3049_v19 }
 0x17c   : > { %1402 = vst.msk [vmem:[#allocation2 - $0x2] sm:$0xfc] %vm1401_vm13, %v3013_v4 }
 0x17d   : > { %1404 = vst.msk [vmem:[#allocation2 + $0x6] sm:$0xff] %vm1403_vm14, %v3014_v57 }
 0x17e   : > { %1255 = vst.msk [vmem:[#allocation2 + $0xf7] sm:$0xff] %vm1208_vm11, %v3008_v23 }
 0x17f   : > { %1256 = vst.msk [vmem:[#allocation2 + $0xff] sm:$0x1] %vm1210_vm9, %v3009_v25  ;;  %3236 = vrot.lane.b32.xlu1 %v4163_v42, %s3517_s26  ;;  %3231 = vrot.lane.b32.xlu0 %v3220_v45, %s3519_s12  ;;  %v3062_v42 = vpop.permute.xlu2 %3061  ;;  %v3310_v25 = vpack.i.bf16 %v3876_v0, %v5090_v44 }
 0x180   : > { %v3064_v26 = vunpack.i.h.bf16 %v3062_v42  ;;  %v3063_v29 = vunpack.i.l.bf16 %v3062_v42 }
 0x181   : > { %v3027_v21 = vpop.permute.xlu1 %3026  ;;  %v3022_v5 = vpop.permute.xlu0 %3021 }
 0x182   : > { %v3029_v59 = vunpack.i.h.bf16 %v3027_v21  ;;  %v3028_v30 = vunpack.i.l.bf16 %v3027_v21  ;;  %v3023_v60 = vunpack.i.l.bf16 %v3022_v5  ;;  %v3024_v16 = vunpack.i.h.bf16 %v3022_v5  ;;  %1424 = vst.msk [vmem:[#allocation2 + $0x6e] sm:$0x3] %vm1405_vm12, %v3063_v29  ;;  %3241 = vrot.lane.b32.xlu2 %v3240_v20, %s3517_s26 }
 0x183   : > { %1425 = vst.msk [vmem:[#allocation2 + $0x6e] sm:$0xfc] %vm1401_vm13, %v3064_v26 }
 0x184   : > { %1410 = vst.msk [vmem:[#allocation2 + $0x1e] sm:$0xfc] %vm1401_vm13, %v3028_v30 }
 0x185   : > { %1411 = vst.msk [vmem:[#allocation2 + $0x26] sm:$0xff] %vm1403_vm14, %v3029_v59 }
 0x186   : > { %1408 = vst.msk [vmem:[#allocation2 + $0x16] sm:$0xff] %vm1403_vm14, %v3023_v60 }
 0x187   : > { %1409 = vst.msk [vmem:[#allocation2 + $0x1e] sm:$0x3] %vm1405_vm12, %v3024_v16  ;;  %3251 = vrot.lane.b32.xlu1 %v4356_v1, %s3520_s13  ;;  %3246 = vrot.lane.b32.xlu0 %v3895_v54, %s3518_s10  ;;  %v3077_v2 = vpop.permute.xlu2 %3076 }
 0x188   : > { %v3079_v13 = vunpack.i.h.bf16 %v3077_v2  ;;  %v3078_v47 = vunpack.i.l.bf16 %v3077_v2 }
 0x189   : > { %v3042_v56 = vpop.permute.xlu1 %3041  ;;  %v3037_v37 = vpop.permute.xlu0 %3036 }
 0x18a   : > { %v3044_v9 = vunpack.i.h.bf16 %v3042_v56  ;;  %v3043_v46 = vunpack.i.l.bf16 %v3042_v56  ;;  %v3038_v10 = vunpack.i.l.bf16 %v3037_v37  ;;  %v3039_v34 = vunpack.i.h.bf16 %v3037_v37  ;;  %1430 = vst.msk [vmem:[#allocation2 + $0x8e] sm:$0x3] %vm1405_vm12, %v3078_v47  ;;  %3256 = vrot.lane.b32.xlu2 %v4109_v27, %s3518_s10 }
 0x18b   : > { %1431 = vst.msk [vmem:[#allocation2 + $0x8e] sm:$0xfc] %vm1401_vm13, %v3079_v13  ;;  %v3330_v13 = vpack.i.bf16 %v3805_v15, %v3870_v12 }
 0x18c   : > { %1416 = vst.msk [vmem:[#allocation2 + $0x3e] sm:$0xfc] %vm1401_vm13, %v3043_v46 }
 0x18d   : > { %1417 = vst.msk [vmem:[#allocation2 + $0x46] sm:$0xff] %vm1403_vm14, %v3044_v9 }
 0x18e   : > { %1414 = vst.msk [vmem:[#allocation2 + $0x36] sm:$0xff] %vm1403_vm14, %v3038_v10  ;;  %v5097_v10 = vld [vmem:[#allocation19_spill] sm:$0xff] }
 0x18f   : > { %1415 = vst.msk [vmem:[#allocation2 + $0x3e] sm:$0x3] %vm1405_vm12, %v3039_v34  ;;  %3266 = vrot.lane.b32.xlu1 %v4109_v27, %s3520_s13  ;;  %3261 = vrot.lane.b32.xlu0 %v4356_v1, %s3519_s12  ;;  %v3280_v1 = vpack.i.bf16 %v3736_v43, %v5084_v33  ;;  %v3092_v55 = vpop.permute.xlu2 %3091 }
 0x190   : > { %v3093_v7 = vunpack.i.l.bf16 %v3092_v55  ;;  %v3094_v19 = vunpack.i.h.bf16 %v3092_v55 }
 0x191   : > { %v3057_v24 = vpop.permute.xlu1 %3056  ;;  %v3052_v39 = vpop.permute.xlu0 %3051 }
 0x192   : > { %v3059_v32 = vunpack.i.h.bf16 %v3057_v24  ;;  %v3058_v38 = vunpack.i.l.bf16 %v3057_v24  ;;  %v3053_v6 = vunpack.i.l.bf16 %v3052_v39  ;;  %v3054_v28 = vunpack.i.h.bf16 %v3052_v39  ;;  %3271 = vrot.lane.b32.xlu2 %v3280_v1, %s3520_s13 }
 0x194   : > { %1422 = vst.msk [vmem:[#allocation2 + $0x5e] sm:$0xfc] %vm1401_vm13, %v3058_v38 }
 0x195   : > { %1423 = vst.msk [vmem:[#allocation2 + $0x66] sm:$0xff] %vm1403_vm14, %v3059_v32 }
 0x196   : > { %1420 = vst.msk [vmem:[#allocation2 + $0x56] sm:$0xff] %vm1403_vm14, %v3053_v6 }
 0x197   : > { %1421 = vst.msk [vmem:[#allocation2 + $0x5e] sm:$0x3] %vm1405_vm12, %v3054_v28  ;;  %3281 = vrot.lane.b32.xlu1 %v3280_v1, %s3519_s12  ;;  %3276 = vrot.lane.b32.xlu0 %v4109_v27, %s3519_s12  ;;  %v4628_v27 = vpop.permute.xlu2 %3106 }
 0x198   : > { %v3108_v59 = vunpack.i.l.bf16 %v4628_v27  ;;  %v3109_v9 = vunpack.i.h.bf16 %v4628_v27 }
 0x199   : > { %v3072_v18 = vpop.permute.xlu1 %3071  ;;  %v3067_v62 = vpop.permute.xlu0 %3066 }
 0x19a   : > { %v3074_v43 = vunpack.i.h.bf16 %v3072_v18  ;;  %v3073_v33 = vunpack.i.l.bf16 %v3072_v18  ;;  %v3068_v45 = vunpack.i.l.bf16 %v3067_v62  ;;  %v3069_v63 = vunpack.i.h.bf16 %v3067_v62  ;;  %3286 = vrot.lane.b32.xlu2 %v3753_v48, %s3518_s10 }
 0x19c   : > { %1428 = vst.msk [vmem:[#allocation2 + $0x7e] sm:$0xfc] %vm1401_vm13, %v3073_v33  ;;  %v3370_v33 = vpack.i.bf16 %v3843_v41, %v5083_v31 }
 0x19d   : > { %1429 = vst.msk [vmem:[#allocation2 + $0x86] sm:$0xff] %vm1403_vm14, %v3074_v43 }
 0x19e   : > { %1426 = vst.msk [vmem:[#allocation2 + $0x76] sm:$0xff] %vm1403_vm14, %v3068_v45 }
 0x19f   : > { %1427 = vst.msk [vmem:[#allocation2 + $0x7e] sm:$0x3] %vm1405_vm12, %v3069_v63  ;;  %3296 = vrot.lane.b32.xlu1 %v4133_v53, %s3518_s10  ;;  %3291 = vrot.lane.b32.xlu0 %v4272_v14, %s3520_s13  ;;  %v3122_v0 = vpop.permute.xlu2 %3121 }
 0x1a0   : > { %v3124_v46 = vunpack.i.h.bf16 %v3122_v0 }
 0x1a1   : > { %v3087_v8 = vpop.permute.xlu1 %3086  ;;  %v3082_v49 = vpop.permute.xlu0 %3081 }
 0x1a2   : > { %v3089_v11 = vunpack.i.h.bf16 %v3087_v8  ;;  %v3088_v57 = vunpack.i.l.bf16 %v3087_v8  ;;  %v3084_v4 = vunpack.i.h.bf16 %v3082_v49  ;;  %v3083_v23 = vunpack.i.l.bf16 %v3082_v49  ;;  %3301 = vrot.lane.b32.xlu2 %v4272_v14, %s3519_s12 }
 0x1a4   : > { %1551 = vst.msk [vmem:[#allocation2] sm:$0xff] %vm1550_vm15, %v3088_v57 }
 0x1a5   : > { %1552 = vst.msk [vmem:[#allocation2 + $0x8] sm:$0xff] %vm1550_vm15, %v3089_v11 }
 0x1a6   : > { %1437 = vst.msk [vmem:[#allocation2 + $0xae] sm:$0xfc] %vm1401_vm13, %v3084_v4 }
 0x1a7   : > { %1432 = vst.msk [vmem:[#allocation2 + $0x96] sm:$0xff] %vm1403_vm14, %v3083_v23  ;;  %3311 = vrot.lane.b32.xlu1 %v3310_v25, %s3520_s13  ;;  %3306 = vrot.lane.b32.xlu0 %v4133_v53, %s3520_s13  ;;  %v4653_v30 = vpop.permute.xlu2 %3136 }
 0x1a8   : > { %1729 = vst.msk [vmem:[#allocation2 - $0x1] sm:$0xfe] %vm1728_vm1, %v3093_v7  ;;  %v3138_v47 = vunpack.i.l.bf16 %v4653_v30  ;;  %v3139_v27 = vunpack.i.h.bf16 %v4653_v30 }
 0x1a9   : > { %v3102_v44 = vpop.permute.xlu1 %3101  ;;  %v3097_v40 = vpop.permute.xlu0 %3096  ;;  %1731 = vst.msk [vmem:[#allocation2 + $0x7] sm:$0xff] %vm1730_vm2, %v3094_v19 }
 0x1aa   : > { %v3104_v21 = vunpack.i.h.bf16 %v3102_v44  ;;  %v3103_v48 = vunpack.i.l.bf16 %v3102_v44  ;;  %v3098_v5 = vunpack.i.l.bf16 %v3097_v40  ;;  %v3099_v56 = vunpack.i.h.bf16 %v3097_v40  ;;  %3316 = vrot.lane.b32.xlu2 %v4133_v53, %s3519_s12 }
 0x1ac   : > { %1924 = vst.msk [vmem:[#allocation2 - $0x2] sm:$0xfc] %vm1923_vm3, %v3103_v48 }
 0x1ad   : > { %1733 = vst.msk [vmem:[#allocation2 + $0xf] sm:$0x1] %vm1732_vm4, %v3098_v5 }
 0x1ae   : > { %1926 = vst.msk [vmem:[#allocation2 + $0x6] sm:$0xff] %vm1925_vm5, %v3104_v21 }
 0x1af   : > { %1928 = vst.msk [vmem:[#allocation2 + $0xe] sm:$0x3] %vm1927_vm6, %v3108_v59  ;;  %3326 = vrot.lane.b32.xlu1 %v3895_v54, %s3517_s26  ;;  %3321 = vrot.lane.b32.xlu0 %v3310_v25, %s3519_s12  ;;  %v3123_v54 = vunpack.i.l.bf16 %v3122_v0  ;;  %v3152_v2 = vpop.permute.xlu2 %3151 }
 0x1b0   : > { %v3153_v6 = vunpack.i.l.bf16 %v3152_v2  ;;  %v3154_v45 = vunpack.i.h.bf16 %v3152_v2 }
 0x1b1   : > { %v3117_v60 = vpop.permute.xlu1 %3116  ;;  %v3112_v16 = vpop.permute.xlu0 %3111 }
 0x1b2   : > { %v3114_v42 = vunpack.i.h.bf16 %v3112_v16  ;;  %v3113_v26 = vunpack.i.l.bf16 %v3112_v16  ;;  %v3118_v29 = vunpack.i.l.bf16 %v3117_v60  ;;  %v3119_v37 = vunpack.i.h.bf16 %v3117_v60  ;;  %3331 = vrot.lane.b32.xlu2 %v3330_v13, %s3517_s26 }
 0x1b4   : > { %1553 = vst.msk [vmem:[#allocation2 + $0x10] sm:$0xff] %vm1550_vm15, %v3113_v26  ;;  %v5098_v26 = vld [vmem:[#allocation17_spill] sm:$0xff] }
 0x1b5   : > { %1554 = vst.msk [vmem:[#allocation2 + $0x18] sm:$0xff] %vm1550_vm15, %v3114_v42  ;;  %v1974_v14 = vld [vmem:[#allocation2] sm:$0xff] }
 0x1b6   : > { %1734 = vst.msk [vmem:[#allocation2 + $0xf] sm:$0xfe] %vm1728_vm1, %v3099_v56  ;;  %v1975_v20 = vld [vmem:[#allocation2 + $0x8] sm:$0xff] }
 0x1b7   : > { %1735 = vst.msk [vmem:[#allocation2 + $0x17] sm:$0xff] %vm1730_vm2, %v3118_v29  ;;  %3341 = vrot.lane.b32.xlu1 %v5097_v10, %s3520_s13  ;;  %3336 = vrot.lane.b32.xlu0 %v4214_v58, %s3518_s10  ;;  %v2006_v34 = vpack.c.bf16 %v1975_v20, %v1974_v14  ;;  %v3167_v12 = vpop.permute.xlu2 %3166 }
 0x1b8   : > { %1736 = vst.msk [vmem:[#allocation2 + $0x1f] sm:$0x1] %vm1732_vm4, %v3119_v37  ;;  %v3169_v15 = vunpack.i.h.bf16 %v3167_v12  ;;  %v3168_v28 = vunpack.i.l.bf16 %v3167_v12 }
 0x1b9   : > { %1929 = vst.msk [vmem:[#allocation2 + $0xe] sm:$0xfc] %vm1923_vm3, %v3109_v9  ;;  %2446 = vmatmul.msk.bf16.vlgmr.msra.gmra.mxu0 %vm426_vm0, %v2006_v34  ;;  %v3132_v53 = vpop.permute.xlu1 %3131  ;;  %v3127_v3 = vpop.permute.xlu0 %3126 }
 0x1ba   : > { %1930 = vst.msk [vmem:[#allocation2 + $0x16] sm:$0xff] %vm1925_vm5, %v3123_v54  ;;  %v3129_v24 = vunpack.i.h.bf16 %v3127_v3  ;;  %v3128_v39 = vunpack.i.l.bf16 %v3127_v3  ;;  %v3133_v32 = vunpack.i.l.bf16 %v3132_v53  ;;  %v3134_v38 = vunpack.i.h.bf16 %v3132_v53  ;;  %3346 = vrot.lane.b32.xlu2 %v3789_v61, %s3518_s10 }
 0x1bb   : > { %1931 = vst.msk [vmem:[#allocation2 + $0x1e] sm:$0x3] %vm1927_vm6, %v3124_v46 }
 0x1bc   : > { %1555 = vst.msk [vmem:[#allocation2 + $0x20] sm:$0xff] %vm1550_vm15, %v3128_v39 }
 0x1bd   : > { %1556 = vst.msk [vmem:[#allocation2 + $0x28] sm:$0xff] %vm1550_vm15, %v3129_v24 }
 0x1be   : > { %1739 = vst.msk [vmem:[#allocation2 + $0x2f] sm:$0x1] %vm1732_vm4, %v3138_v47 }
 0x1bf   : > { %1737 = vst.msk [vmem:[#allocation2 + $0x1f] sm:$0xfe] %vm1728_vm1, %v3133_v32  ;;  %3356 = vrot.lane.b32.xlu1 %v3789_v61, %s3520_s13  ;;  %3351 = vrot.lane.b32.xlu0 %v5097_v10, %s3519_s12  ;;  %v3182_v31 = vpop.permute.xlu2 %3181 }
 0x1c0   : > { %1738 = vst.msk [vmem:[#allocation2 + $0x27] sm:$0xff] %vm1730_vm2, %v3134_v38  ;;  %v3183_v40 = vunpack.i.l.bf16 %v3182_v31  ;;  %v3184_v16 = vunpack.i.h.bf16 %v3182_v31 }
 0x1c1   : > { %1934 = vst.msk [vmem:[#allocation2 + $0x2e] sm:$0x3] %vm1927_vm6, %v3153_v6  ;;  %v3147_v1 = vpop.permute.xlu1 %3146  ;;  %v3142_v55 = vpop.permute.xlu0 %3141  ;;  %v1976_v63 = vld [vmem:[#allocation2 + $0x10] sm:$0xff] }
 0x1c2   : > { %v3149_v18 = vunpack.i.h.bf16 %v3147_v1  ;;  %v3148_v62 = vunpack.i.l.bf16 %v3147_v1  ;;  %v3143_v43 = vunpack.i.l.bf16 %v3142_v55  ;;  %1438 = vst.msk [vmem:[#allocation2 + $0xb6] sm:$0xff] %vm1403_vm14, %v3168_v28  ;;  %v1977_v22 = vld [vmem:[#allocation2 + $0x18] sm:$0xff]  ;;  %v3144_v8 = vunpack.i.h.bf16 %v3142_v55  ;;  %3361 = vrot.lane.b32.xlu2 %v3370_v33, %s3520_s13 }
 0x1c3   : > { %1439 = vst.msk [vmem:[#allocation2 + $0xbe] sm:$0x3] %vm1405_vm12, %v3169_v15  ;;  %v2007_v41 = vpack.c.bf16 %v1977_v22, %v1976_v63 }
 0x1c4   : > { %1932 = vst.msk [vmem:[#allocation2 + $0x1e] sm:$0xfc] %vm1923_vm3, %v3148_v62 }
 0x1c5   : > { %1933 = vst.msk [vmem:[#allocation2 + $0x26] sm:$0xff] %vm1925_vm5, %v3149_v18 }
 0x1c6   : > { %1565 = vst.msk [vmem:[#allocation2 + $0x70] sm:$0xff] %vm1550_vm15, %v3143_v43 }
 0x1c7   : > { %1752 = vst.msk [vmem:[#allocation2 + $0x6f] sm:$0xfe] %vm1728_vm1, %v3139_v27  ;;  %3371 = vrot.lane.b32.xlu1 %v3370_v33, %s3519_s12  ;;  %3366 = vrot.lane.b32.xlu0 %v3789_v61, %s3519_s12  ;;  %v3197_v61 = vpop.permute.xlu2 %3196 }
 0x1c8   : > { %1947 = vst.msk [vmem:[#allocation2 + $0x6e] sm:$0xfc] %vm1923_vm3, %v3154_v45  ;;  %v3199_v7 = vunpack.i.h.bf16 %v3197_v61  ;;  %v3198_v19 = vunpack.i.l.bf16 %v3197_v61 }
 0x1c9   : > { %1566 = vst.msk [vmem:[#allocation2 + $0x78] sm:$0xff] %vm1550_vm15, %v3144_v8  ;;  %2447 = vmatmul.msk.bf16.gmra.mxu0 %vm426_vm0, %v2007_v41  ;;  %v3162_v49 = vpop.permute.xlu1 %3161  ;;  %v3157_v11 = vpop.permute.xlu0 %3156 }
 0x1ca   : > { %v3163_v57 = vunpack.i.l.bf16 %v3162_v49  ;;  %v3159_v4 = vunpack.i.h.bf16 %v3157_v11  ;;  %v3158_v23 = vunpack.i.l.bf16 %v3157_v11  ;;  %v3164_v25 = vunpack.i.h.bf16 %v3162_v49  ;;  %1557 = vst.msk [vmem:[#allocation2 + $0x30] sm:$0xff] %vm1550_vm15, %v3198_v19  ;;  %3376 = vrot.lane.b32.xlu2 %v5098_v26, %s3517_s26 }
 0x1cb   : > { %1558 = vst.msk [vmem:[#allocation2 + $0x38] sm:$0xff] %vm1550_vm15, %v3199_v7 }
 0x1cc   : > { %1753 = vst.msk [vmem:[#allocation2 + $0x77] sm:$0xff] %vm1730_vm2, %v3158_v23  ;;  %v1978_v30 = vld [vmem:[#allocation2 + $0x20] sm:$0xff]  ;;  %v1979_v60 = vld [vmem:[#allocation2 + $0x28] sm:$0xff] }
 0x1cd   : > { %1754 = vst.msk [vmem:[#allocation2 + $0x7f] sm:$0x1] %vm1732_vm4, %v3159_v4  ;;  %v2008_v56 = vpack.c.bf16 %v1979_v60, %v1978_v30 }
 0x1ce   : > { %1948 = vst.msk [vmem:[#allocation2 + $0x76] sm:$0xff] %vm1925_vm5, %v3163_v57 }
 0x1cf   : > { %1949 = vst.msk [vmem:[#allocation2 + $0x7e] sm:$0x3] %vm1927_vm6, %v3164_v25  ;;  %3386 = vrot.lane.b32.xlu1 %v4338_v35, %s3520_s13  ;;  %3381 = vrot.lane.b32.xlu0 %v3859_v17, %s3518_s10  ;;  %v4715_v17 = vld [vmem:[%s3624_s21 + $0xcc] sm:$0xff]   ;;  %v3212_v14 = vpop.permute.xlu2 %3211 }
 0x1d0   : > { %v423_v54 = vunpack.c.l.bf16 %v4715_v17  ;;  %1740 = vst.msk [vmem:[#allocation2 + $0x2f] sm:$0xfe] %vm1728_vm1, %v3184_v16  ;;  %v3213_v32 = vunpack.i.l.bf16 %v3212_v14  ;;  %v3214_v38 = vunpack.i.h.bf16 %v3212_v14  ;;  %v424_v1 = vunpack.c.h.bf16 %v4715_v17 }
 0x1d1   : > { %v3177_v0 = vpop.permute.xlu1 %3176  ;;  %v3172_v44 = vpop.permute.xlu0 %3171 }
 0x1d2   : > { %v3174_v21 = vunpack.i.h.bf16 %v3172_v44  ;;  %v3173_v48 = vunpack.i.l.bf16 %v3172_v44  ;;  %v3178_v5 = vunpack.i.l.bf16 %v3177_v0  ;;  %v3179_v59 = vunpack.i.h.bf16 %v3177_v0  ;;  %3391 = vrot.lane.b32.xlu2 %v4338_v35, %s3519_s12  ;;  %v4743_v35 = vld [vmem:[%s3624_s21 + $0xd4] sm:$0x1] }
 0x1d3   : > { %v425_v55 = vunpack.c.l.bf16 %v4743_v35  ;;  %v3440_v27 = vpack.i.bf16 %v424_v1, %v423_v54 }
 0x1d4   : > { %1573 = vst.msk [vmem:[#allocation2 + $0xb0] sm:$0xff] %vm1550_vm15, %v3173_v48 }
 0x1d5   : > { %1574 = vst.msk [vmem:[#allocation2 + $0xb8] sm:$0xff] %vm1550_vm15, %v3174_v21  ;;  %v1988_v42 = vld [vmem:[#allocation2 + $0x70] sm:$0xff]  ;;  %v3435_v22 = vpack.i.bf16 %v425_v55, %v424_v1 }
 0x1d6   : > { %1766 = vst.msk [vmem:[#allocation2 + $0xbf] sm:$0x1] %vm1732_vm4, %v3183_v40  ;;  %v1989_v29 = vld [vmem:[#allocation2 + $0x78] sm:$0xff] }
 0x1d7   : > { %1764 = vst.msk [vmem:[#allocation2 + $0xaf] sm:$0xfe] %vm1728_vm1, %v3178_v5  ;;  %3401 = vrot.lane.b32.xlu1 %v4392_v50, %s3517_s26  ;;  %3396 = vrot.lane.b32.xlu0 %v4214_v58, %s3517_s26  ;;  %v2013_v37 = vpack.c.bf16 %v1989_v29, %v1988_v42  ;;  %v3415_v58 = vpack.i.bf16 %v423_v54, %v4368_v51  ;;  %v3227_v2 = vpop.permute.xlu2 %3226 }
 0x1d8   : > { %1765 = vst.msk [vmem:[#allocation2 + $0xb7] sm:$0xff] %vm1730_vm2, %v3179_v59  ;;  %v3229_v8 = vunpack.i.h.bf16 %v3227_v2 }
 0x1d9   : > { %2448 = vmatmul.msk.bf16.gmra.mxu0 %vm426_vm0, %v2008_v56  ;;  %2453 = vmatmul.msk.bf16.vlgmr.msra.gmra.mxu2 %vm426_vm0, %v2013_v37  ;;  %v3192_v20 = vpop.permute.xlu1 %3191  ;;  %v3187_v9 = vpop.permute.xlu0 %3186 }
 0x1da   : > { %v3194_v46 = vunpack.i.h.bf16 %v3192_v20  ;;  %v3193_v50 = vunpack.i.l.bf16 %v3192_v20  ;;  %v3188_v10 = vunpack.i.l.bf16 %v3187_v9  ;;  %v3189_v34 = vunpack.i.h.bf16 %v3187_v9  ;;  %3406 = vrot.lane.b32.xlu2 %v4194_v52, %s3518_s10 }
 0x1dc   : > { %1935 = vst.msk [vmem:[#allocation2 + $0x2e] sm:$0xfc] %vm1923_vm3, %v3194_v46 }
 0x1dd   : > { %1961 = vst.msk [vmem:[#allocation2 + $0xbe] sm:$0x3] %vm1927_vm6, %v3193_v50 }
 0x1de   : > { %1959 = vst.msk [vmem:[#allocation2 + $0xae] sm:$0xfc] %vm1923_vm3, %v3188_v10 }
 0x1df   : > { %1960 = vst.msk [vmem:[#allocation2 + $0xb6] sm:$0xff] %vm1925_vm5, %v3189_v34  ;;  %3416 = vrot.lane.b32.xlu1 %v3415_v58, %s3520_s13  ;;  %3411 = vrot.lane.b32.xlu0 %v4194_v52, %s3520_s13  ;;  %v3242_v28 = vpop.permute.xlu2 %3241 }
 0x1e0   : > { %v3244_v18 = vunpack.i.h.bf16 %v3242_v28  ;;  %v3243_v62 = vunpack.i.l.bf16 %v3242_v28 }
 0x1e1   : > { %v3207_v53 = vpop.permute.xlu1 %3206  ;;  %v3202_v3 = vpop.permute.xlu0 %3201 }
 0x1e2   : > { %v3209_v13 = vunpack.i.h.bf16 %v3207_v53  ;;  %v3208_v47 = vunpack.i.l.bf16 %v3207_v53  ;;  %v3203_v24 = vunpack.i.l.bf16 %v3202_v3  ;;  %v3204_v39 = vunpack.i.h.bf16 %v3202_v3  ;;  %1433 = vst.msk [vmem:[#allocation2 + $0x9e] sm:$0x3] %vm1405_vm12, %v3244_v18  ;;  %3421 = vrot.lane.b32.xlu2 %v4194_v52, %s3519_s12 }
 0x1e3   : > { %1442 = vst.msk [vmem:[#allocation2 + $0xce] sm:$0x3] %vm1405_vm12, %v3243_v62 }
 0x1e4   : > { %1567 = vst.msk [vmem:[#allocation2 + $0x80] sm:$0xff] %vm1550_vm15, %v3208_v47 }
 0x1e5   : > { %1568 = vst.msk [vmem:[#allocation2 + $0x88] sm:$0xff] %vm1550_vm15, %v3209_v13 }
 0x1e6   : > { %1741 = vst.msk [vmem:[#allocation2 + $0x37] sm:$0xff] %vm1730_vm2, %v3203_v24  ;;  %v1996_v6 = vld [vmem:[#allocation2 + $0xb0] sm:$0xff]  ;;  %v1997_v12 = vld [vmem:[#allocation2 + $0xb8] sm:$0xff] }
 0x1e7   : > { %1742 = vst.msk [vmem:[#allocation2 + $0x3f] sm:$0x1] %vm1732_vm4, %v3204_v39  ;;  %v2017_v15 = vpack.c.bf16 %v1997_v12, %v1996_v6  ;;  %3426 = vrot.lane.b32.xlu1 %v4377_v36, %s3517_s26  ;;  %1867 = vrot.lane.b32.xlu0 %v4368_v51, %s3519_s12  ;;  %v3228_v51 = vunpack.i.l.bf16 %v3227_v2  ;;  %v3257_v31 = vpop.permute.xlu2 %3256  ;;  %s2369_s26 = sshll.u32 %s2365_s22, 4  ;;  %s2370_s26 = int_to_ptr.hbm [resolvable:$true] %s2369_s26 }
 0x1e8   : > { %1936 = vst.msk [vmem:[#allocation2 + $0x36] sm:$0xff] %vm1925_vm5, %v3213_v32  ;;  %v3259_v11 = vunpack.i.h.bf16 %v3257_v31  ;;  %v3258_v57 = vunpack.i.l.bf16 %v3257_v31 }
 0x1e9   : > { %1937 = vst.msk [vmem:[#allocation2 + $0x3e] sm:$0x3] %vm1927_vm6, %v3214_v38  ;;  %2457 = vmatmul.msk.bf16.vlgmr.msra.gmra.mxu3 %vm426_vm0, %v2017_v15  ;;  %v3222_v43 = vpop.permute.xlu1 %3221  ;;  %v3217_v33 = vpop.permute.xlu0 %3216 }
 0x1ea   : > { %v3223_v45 = vunpack.i.l.bf16 %v3222_v43  ;;  %v3219_v36 = vunpack.i.h.bf16 %v3217_v33  ;;  %v3218_v63 = vunpack.i.l.bf16 %v3217_v33  ;;  %1561 = vst.msk [vmem:[#allocation2 + $0x50] sm:$0xff] %vm1550_vm15, %v3258_v57  ;;  %3431 = vrot.lane.b32.xlu2 %v3440_v27, %s3518_s10  ;;  %v3224_v59 = vunpack.i.h.bf16 %v3222_v43  ;;  %s2357_s10 = scalar_lea.sflag [#allocation4], %s307_s19 }
 0x1eb   : > { %1562 = vst.msk [vmem:[#allocation2 + $0x58] sm:$0xff] %vm1550_vm15, %v3259_v11 }
 0x1ec   : > { %1757 = vst.msk [vmem:[#allocation2 + $0x8f] sm:$0x1] %vm1732_vm4, %v3223_v45 }
 0x1ed   : > { %1755 = vst.msk [vmem:[#allocation2 + $0x7f] sm:$0xfe] %vm1728_vm1, %v3218_v63 }
 0x1ee   : > { %1756 = vst.msk [vmem:[#allocation2 + $0x87] sm:$0xff] %vm1730_vm2, %v3219_v36 }
 0x1ef   : > { %1950 = vst.msk [vmem:[#allocation2 + $0x7e] sm:$0xfc] %vm1923_vm3, %v3228_v51  ;;  %v1980_v41 = vld [vmem:[#allocation2 + $0x30] sm:$0xff]  ;;  %3436 = vrot.lane.b32.xlu0 %v3435_v22, %s3520_s13  ;;  %3441 = vrot.lane.b32.xlu1 %v3440_v27, %s3519_s12  ;;  %v3272_v19 = vpop.permute.xlu2 %3271 }
 0x1f0   : > { %1951 = vst.msk [vmem:[#allocation2 + $0x86] sm:$0xff] %vm1925_vm5, %v3229_v8  ;;  %v1981_v49 = vld [vmem:[#allocation2 + $0x38] sm:$0xff]  ;;  %v3273_v0 = vunpack.i.l.bf16 %v3272_v19  ;;  %v3274_v50 = vunpack.i.h.bf16 %v3272_v19 }
 0x1f1   : > { %v2009_v4 = vpack.c.bf16 %v1981_v49, %v1980_v41  ;;  %v3237_v23 = vpop.permute.xlu1 %3236  ;;  %v3232_v25 = vpop.permute.xlu0 %3231 }
 0x1f2   : > { %v3239_v61 = vunpack.i.h.bf16 %v3237_v23  ;;  %v3238_v52 = vunpack.i.l.bf16 %v3237_v23  ;;  %v3233_v7 = vunpack.i.l.bf16 %v3232_v25  ;;  %1748 = vst.msk [vmem:[#allocation2 + $0x5f] sm:$0x1] %vm1732_vm4, %v3273_v0  ;;  %1873 = vrot.lane.b32.xlu2 %v425_v55, %s3519_s12  ;;  %v3234_v16 = vunpack.i.h.bf16 %v3232_v25  ;;  %s3462_s12 = sshra.s32 %s2370_s26, 4  ;;  %s3463_s12 = int_to_ptr.hbm [resolvable:$true] %s3462_s12 }
 0x1f3   : > { %2449 = vmatmul.msk.bf16.gmra.mxu0 %vm426_vm0, %v2009_v4  ;;  %s3464_s9 = scalar_lea.hbm %s3463_s12, 1  ;;  %p3469_p0 = scmp.lt.s32.totalorder %s3463_s12, %s5025_s8 }
 0x1f4   : > { %1440 = vst.msk [vmem:[#allocation2 + $0xbe] sm:$0xfc] %vm1401_vm13, %v3238_v52  ;;  %p3465_p11 = scmp.ne.s32.totalorder %s3463_s12, %s3464_s9  ;;  %p3470_p1 = scmp.lt.s32.totalorder %s3468_s20, %s3464_s9 }
 0x1f5   : > { %1441 = vst.msk [vmem:[#allocation2 + $0xc6] sm:$0xff] %vm1403_vm14, %v3239_v61 }
 0x1f6   : > { %1952 = vst.msk [vmem:[#allocation2 + $0x8e] sm:$0x3] %vm1927_vm6, %v3233_v7  ;;  %p3466_p12 = pnand %p3465_p11, %p3606_p5  ;;  %p3471_p2 = por %p3470_p1, %p3469_p0 }
 0x1f7   : > { %v1990_v60 = vld [vmem:[#allocation2 + $0x80] sm:$0xff]  ;;  %v3287_v26 = vpop.permute.xlu2 %3286 }
 0x1f8   : > { %v3289_v29 = vunpack.i.h.bf16 %v3287_v26  ;;  %v3288_v56 = vunpack.i.l.bf16 %v3287_v26  ;;  %p3467_p13 = pneg %p3466_p12 }
 0x1f9   : > { %v3252_v44 = vpop.permute.xlu1 %3251  ;;  %v3247_v40 = vpop.permute.xlu0 %3246 }
 0x1fa   : > { %v3249_v21 = vunpack.i.h.bf16 %v3247_v40  ;;  %v3248_v48 = vunpack.i.l.bf16 %v3247_v40  ;;  %v3254_v5 = vunpack.i.h.bf16 %v3252_v44  ;;  %v3253_v30 = vunpack.i.l.bf16 %v3252_v44  ;;  %1559 = vst.msk [vmem:[#allocation2 + $0x40] sm:$0xff] %vm1550_vm15, %v3288_v56  ;;  %p3472_p3 = pnand %p3471_p2, %p3467_p13 }
 0x1fb   : > { %1560 = vst.msk [vmem:[#allocation2 + $0x48] sm:$0xff] %vm1550_vm15, %v3289_v29 }
 0x1fc   : > { %1575 = vst.msk [vmem:[#allocation2 + $0xc0] sm:$0xff] %vm1550_vm15, %v3248_v48 }
 0x1fd   : > { %1576 = vst.msk [vmem:[#allocation2 + $0xc8] sm:$0xff] %vm1550_vm15, %v3249_v21  ;;  %v1991_v17 = vld [vmem:[#allocation2 + $0x88] sm:$0xff] }
 0x1fe   : > { %1767 = vst.msk [vmem:[#allocation2 + $0xbf] sm:$0xfe] %vm1728_vm1, %v3224_v59  ;;  %v2014_v42 = vpack.c.bf16 %v1991_v17, %v1990_v60 }
 0x1ff   : > { %1769 = vst.msk [vmem:[#allocation2 + $0xcf] sm:$0x1] %vm1732_vm4, %v3254_v5  ;;  %v3302_v10 = vpop.permute.xlu2 %3301 }
 0x200   : > { %1962 = vst.msk [vmem:[#allocation2 + $0xbe] sm:$0xfc] %vm1923_vm3, %v3234_v16  ;;  %2454 = vmatmul.msk.bf16.gmra.mxu2 %vm426_vm0, %v2014_v42  ;;  %v3303_v1 = vunpack.i.l.bf16 %v3302_v10  ;;  %v3304_v55 = vunpack.i.h.bf16 %v3302_v10 }
 0x201   : > { %1768 = vst.msk [vmem:[#allocation2 + $0xc7] sm:$0xff] %vm1730_vm2, %v3253_v30  ;;  %v3267_v37 = vpop.permute.xlu1 %3266  ;;  %v3262_v14 = vpop.permute.xlu0 %3261 }
 0x202   : > { %v3269_v54 = vunpack.i.h.bf16 %v3267_v37  ;;  %v3268_v20 = vunpack.i.l.bf16 %v3267_v37  ;;  %v3263_v9 = vunpack.i.l.bf16 %v3262_v14  ;;  %v3264_v46 = vunpack.i.h.bf16 %v3262_v14  ;;  %1743 = vst.msk [vmem:[#allocation2 + $0x3f] sm:$0xfe] %vm1728_vm1, %v3274_v50 }
 0x204   : > { %1746 = vst.msk [vmem:[#allocation2 + $0x4f] sm:$0xfe] %vm1728_vm1, %v3268_v20 }
 0x205   : > { %1747 = vst.msk [vmem:[#allocation2 + $0x57] sm:$0xff] %vm1730_vm2, %v3269_v54 }
 0x206   : > { %1963 = vst.msk [vmem:[#allocation2 + $0xc6] sm:$0xff] %vm1925_vm5, %v3263_v9 }
 0x207   : > { %1964 = vst.msk [vmem:[#allocation2 + $0xce] sm:$0x3] %vm1927_vm6, %v3264_v46  ;;  %v3317_v32 = vpop.permute.xlu2 %3316 }
 0x208   : > { %v3318_v41 = vunpack.i.l.bf16 %v3317_v32  ;;  %v3319_v31 = vunpack.i.h.bf16 %v3317_v32 }
 0x209   : > { %v3282_v34 = vpop.permute.xlu1 %3281  ;;  %v3277_v58 = vpop.permute.xlu0 %3276 }
 0x20a   : > { %v3284_v2 = vunpack.i.h.bf16 %v3282_v34  ;;  %v3283_v53 = vunpack.i.l.bf16 %v3282_v34  ;;  %v3278_v3 = vunpack.i.l.bf16 %v3277_v58  ;;  %v3279_v13 = vunpack.i.h.bf16 %v3277_v58 }
 0x20c   : > { %1938 = vst.msk [vmem:[#allocation2 + $0x3e] sm:$0xfc] %vm1923_vm3, %v3284_v2 }
 0x20d   : > { %1943 = vst.msk [vmem:[#allocation2 + $0x5e] sm:$0x3] %vm1927_vm6, %v3283_v53  ;;  %v1998_v47 = vld [vmem:[#allocation2 + $0xc0] sm:$0xff] }
 0x20e   : > { %1941 = vst.msk [vmem:[#allocation2 + $0x4e] sm:$0xfc] %vm1923_vm3, %v3278_v3  ;;  %v1999_v24 = vld [vmem:[#allocation2 + $0xc8] sm:$0xff] }
 0x20f   : > { %1942 = vst.msk [vmem:[#allocation2 + $0x56] sm:$0xff] %vm1925_vm5, %v3279_v13  ;;  %v2018_v39 = vpack.c.bf16 %v1999_v24, %v1998_v47  ;;  %v3332_v33 = vpop.permute.xlu2 %3331 }
 0x210   : > { %v3334_v45 = vunpack.i.h.bf16 %v3332_v33  ;;  %v3333_v36 = vunpack.i.l.bf16 %v3332_v33 }
 0x211   : > { %2458 = vmatmul.msk.bf16.gmra.mxu3 %vm426_vm0, %v2018_v39  ;;  %v3297_v35 = vpop.permute.xlu1 %3296  ;;  %v3292_v38 = vpop.permute.xlu0 %3291 }
 0x212   : > { %v3299_v6 = vunpack.i.h.bf16 %v3297_v35  ;;  %v3298_v12 = vunpack.i.l.bf16 %v3297_v35  ;;  %v3293_v15 = vunpack.i.l.bf16 %v3292_v38  ;;  %v3294_v28 = vunpack.i.h.bf16 %v3292_v38  ;;  %1434 = vst.msk [vmem:[#allocation2 + $0x9e] sm:$0xfc] %vm1401_vm13, %v3334_v45 }
 0x213   : > { %1445 = vst.msk [vmem:[#allocation2 + $0xde] sm:$0x3] %vm1405_vm12, %v3333_v36 }
 0x214   : > { %1569 = vst.msk [vmem:[#allocation2 + $0x90] sm:$0xff] %vm1550_vm15, %v3298_v12 }
 0x215   : > { %1570 = vst.msk [vmem:[#allocation2 + $0x98] sm:$0xff] %vm1550_vm15, %v3299_v6 }
 0x216   : > { %1744 = vst.msk [vmem:[#allocation2 + $0x47] sm:$0xff] %vm1730_vm2, %v3293_v15  ;;  %v1984_v18 = vld [vmem:[#allocation2 + $0x50] sm:$0xff]  ;;  %v1985_v62 = vld [vmem:[#allocation2 + $0x58] sm:$0xff] }
 0x217   : > { %1745 = vst.msk [vmem:[#allocation2 + $0x4f] sm:$0x1] %vm1732_vm4, %v3294_v28  ;;  %v2011_v43 = vpack.c.bf16 %v1985_v62, %v1984_v18  ;;  %v3347_v11 = vpop.permute.xlu2 %3346 }
 0x218   : > { %1939 = vst.msk [vmem:[#allocation2 + $0x46] sm:$0xff] %vm1925_vm5, %v3303_v1  ;;  %v3349_v4 = vunpack.i.h.bf16 %v3347_v11  ;;  %v3348_v23 = vunpack.i.l.bf16 %v3347_v11  ;;  %v2319_v1 = vld [vmem:[%s5023_s6 + $0x10] sm:$0xf] }
 0x219   : > { %1940 = vst.msk [vmem:[#allocation2 + $0x4e] sm:$0x3] %vm1927_vm6, %v3304_v55  ;;  %2451 = vmatmul.msk.bf16.vlgmr.msra.gmra.mxu1 %vm426_vm0, %v2011_v43  ;;  %v3312_v63 = vpop.permute.xlu1 %3311  ;;  %v3307_v51 = vpop.permute.xlu0 %3306  ;;  %2463 = vmatpush.msk.msrb.mxu2 %vm2325_vm7, %v2319_v1 }
 0x21a   : > { %v3313_v22 = vunpack.i.l.bf16 %v3312_v63  ;;  %v3309_v27 = vunpack.i.h.bf16 %v3307_v51  ;;  %v3308_v8 = vunpack.i.l.bf16 %v3307_v51  ;;  %1563 = vst.msk [vmem:[#allocation2 + $0x60] sm:$0xff] %vm1550_vm15, %v3348_v23  ;;  %v3314_v60 = vunpack.i.h.bf16 %v3312_v63 }
 0x21b   : > { %1564 = vst.msk [vmem:[#allocation2 + $0x68] sm:$0xff] %vm1550_vm15, %v3349_v4 }
 0x21c   : > { %1760 = vst.msk [vmem:[#allocation2 + $0x9f] sm:$0x1] %vm1732_vm4, %v3313_v22 }
 0x21d   : > { %1758 = vst.msk [vmem:[#allocation2 + $0x8f] sm:$0xfe] %vm1728_vm1, %v3308_v8 }
 0x21e   : > { %1759 = vst.msk [vmem:[#allocation2 + $0x97] sm:$0xff] %vm1730_vm2, %v3309_v27 }
 0x21f   : > { %1953 = vst.msk [vmem:[#allocation2 + $0x8e] sm:$0xfc] %vm1923_vm3, %v3318_v41  ;;  %v1982_v49 = vld [vmem:[#allocation2 + $0x40] sm:$0xff]  ;;  %v4818_v44 = vpop.permute.xlu2 %3361 }
 0x220   : > { %1954 = vst.msk [vmem:[#allocation2 + $0x96] sm:$0xff] %vm1925_vm5, %v3319_v31  ;;  %v1983_v57 = vld [vmem:[#allocation2 + $0x48] sm:$0xff]  ;;  %v3363_v40 = vunpack.i.l.bf16 %v4818_v44  ;;  %v3364_v28 = vunpack.i.h.bf16 %v4818_v44 }
 0x221   : > { %v2010_v25 = vpack.c.bf16 %v1983_v57, %v1982_v49  ;;  %v3327_v61 = vpop.permute.xlu1 %3326  ;;  %v3322_v52 = vpop.permute.xlu0 %3321 }
 0x222   : > { %v3329_v7 = vunpack.i.h.bf16 %v3327_v61  ;;  %v3328_v19 = vunpack.i.l.bf16 %v3327_v61  ;;  %v3323_v0 = vunpack.i.l.bf16 %v3322_v52  ;;  %1751 = vst.msk [vmem:[#allocation2 + $0x6f] sm:$0x1] %vm1732_vm4, %v3363_v40  ;;  %v3324_v26 = vunpack.i.h.bf16 %v3322_v52 }
 0x223   : > { %2450 = vmatmul.msk.bf16.gmra.mxu0 %vm426_vm0, %v2010_v25 }
 0x224   : > { %1443 = vst.msk [vmem:[#allocation2 + $0xce] sm:$0xfc] %vm1401_vm13, %v3328_v19 }
 0x225   : > { %1444 = vst.msk [vmem:[#allocation2 + $0xd6] sm:$0xff] %vm1403_vm14, %v3329_v7 }
 0x226   : > { %1955 = vst.msk [vmem:[#allocation2 + $0x9e] sm:$0x3] %vm1927_vm6, %v3323_v0 }
 0x227   : > { %v1992_v16 = vld [vmem:[#allocation2 + $0x90] sm:$0xff]  ;;  %v3377_v56 = vpop.permute.xlu2 %3376 }
 0x228   : > { %v3379_v37 = vunpack.i.h.bf16 %v3377_v56  ;;  %v3378_v14 = vunpack.i.l.bf16 %v3377_v56 }
 0x229   : > { %v3342_v21 = vpop.permute.xlu1 %3341  ;;  %v3337_v48 = vpop.permute.xlu0 %3336 }
 0x22a   : > { %v3339_v5 = vunpack.i.h.bf16 %v3337_v48  ;;  %v3338_v59 = vunpack.i.l.bf16 %v3337_v48  ;;  %v3344_v30 = vunpack.i.h.bf16 %v3342_v21  ;;  %v3343_v17 = vunpack.i.l.bf16 %v3342_v21  ;;  %1435 = vst.msk [vmem:[#allocation2 + $0xa6] sm:$0xff] %vm1403_vm14, %v3378_v14 }
 0x22b   : > { %1436 = vst.msk [vmem:[#allocation2 + $0xae] sm:$0x3] %vm1405_vm12, %v3379_v37 }
 0x22c   : > { %1577 = vst.msk [vmem:[#allocation2 + $0xd0] sm:$0xff] %vm1550_vm15, %v3338_v59 }
 0x22d   : > { %1578 = vst.msk [vmem:[#allocation2 + $0xd8] sm:$0xff] %vm1550_vm15, %v3339_v5  ;;  %v1993_v42 = vld [vmem:[#allocation2 + $0x98] sm:$0xff]  ;;  %v2318_v5 = vld [vmem:[%s5023_s6 + $0x8] sm:$0xff] }
 0x22e   : > { %1770 = vst.msk [vmem:[#allocation2 + $0xcf] sm:$0xfe] %vm1728_vm1, %v3314_v60  ;;  %v2015_v29 = vpack.c.bf16 %v1993_v42, %v1992_v16  ;;  %2343 = vmatpush.msrb.mxu2 %v2318_v5 }
 0x22f   : > { %1772 = vst.msk [vmem:[#allocation2 + $0xdf] sm:$0x1] %vm1732_vm4, %v3344_v30  ;;  %v3392_v34 = vpop.permute.xlu2 %3391 }
 0x230   : > { %1965 = vst.msk [vmem:[#allocation2 + $0xce] sm:$0xfc] %vm1923_vm3, %v3324_v26  ;;  %2455 = vmatmul.msk.bf16.gmra.mxu2 %vm426_vm0, %v2015_v29  ;;  %v3393_v33 = vunpack.i.l.bf16 %v3392_v34  ;;  %v3394_v36 = vunpack.i.h.bf16 %v3392_v34 }
 0x231   : > { %1771 = vst.msk [vmem:[#allocation2 + $0xd7] sm:$0xff] %vm1730_vm2, %v3343_v17  ;;  %v3357_v54 = vpop.permute.xlu1 %3356  ;;  %v3352_v20 = vpop.permute.xlu0 %3351 }
 0x232   : > { %v3359_v9 = vunpack.i.h.bf16 %v3357_v54  ;;  %v3358_v46 = vunpack.i.l.bf16 %v3357_v54  ;;  %v3353_v50 = vunpack.i.l.bf16 %v3352_v20  ;;  %v3354_v10 = vunpack.i.h.bf16 %v3352_v20 }
 0x234   : > { %1749 = vst.msk [vmem:[#allocation2 + $0x5f] sm:$0xfe] %vm1728_vm1, %v3358_v46 }
 0x235   : > { %1750 = vst.msk [vmem:[#allocation2 + $0x67] sm:$0xff] %vm1730_vm2, %v3359_v9 }
 0x236   : > { %1966 = vst.msk [vmem:[#allocation2 + $0xd6] sm:$0xff] %vm1925_vm5, %v3353_v50  ;;  %v2099_v20 = vpop.f32.mrf.mxu0 }
 0x237   : > { %1967 = vst.msk [vmem:[#allocation2 + $0xde] sm:$0x3] %vm1927_vm6, %v3354_v10  ;;  %v3407_v15 = vpop.permute.xlu2 %3406  ;;  %v2317_v10 = vld [vmem:[%s5023_s6] sm:$0xff] }
 0x238   : > { %v3408_v31 = vunpack.i.l.bf16 %v3407_v15  ;;  %v3409_v49 = vunpack.i.h.bf16 %v3407_v15  ;;  %2344 = vmatpush.msrb.mxu2 %v2317_v10 }
 0x239   : > { %v3372_v58 = vpop.permute.xlu1 %3371  ;;  %v3367_v2 = vpop.permute.xlu0 %3366 }
 0x23a   : > { %v3373_v53 = vunpack.i.l.bf16 %v3372_v58  ;;  %v3369_v3 = vunpack.i.h.bf16 %v3367_v2  ;;  %v3368_v13 = vunpack.i.l.bf16 %v3367_v2  ;;  %v3374_v43 = vunpack.i.h.bf16 %v3372_v58 }
 0x23c   : > { %1946 = vst.msk [vmem:[#allocation2 + $0x6e] sm:$0x3] %vm1927_vm6, %v3373_v53 }
 0x23d   : > { %1944 = vst.msk [vmem:[#allocation2 + $0x5e] sm:$0xfc] %vm1923_vm3, %v3368_v13  ;;  %v2000_v47 = vld [vmem:[#allocation2 + $0xd0] sm:$0xff] }
 0x23e   : > { %1945 = vst.msk [vmem:[#allocation2 + $0x66] sm:$0xff] %vm1925_vm5, %v3369_v3  ;;  %v2001_v24 = vld [vmem:[#allocation2 + $0xd8] sm:$0xff]  ;;  %v2101_v34 = vpop.f32.mrf.mxu0 }
 0x23f   : > { %v2019_v39 = vpack.c.bf16 %v2001_v24, %v2000_v47  ;;  %v3422_v11 = vpop.permute.xlu2 %3421  ;;  %v2316_v47 = vld [vmem:[%s316_s18] sm:$0x1]  ;;  %s3522_s18 = smov 32  }
 0x240   : > { %v3423_v0 = vunpack.i.l.bf16 %v3422_v11  ;;  %v3424_v44 = vunpack.i.h.bf16 %v3422_v11 }
 0x241   : > { %2459 = vmatmul.msk.bf16.gmra.mxu3 %vm426_vm0, %v2019_v39  ;;  %v3387_v32 = vpop.permute.xlu1 %3386  ;;  %v3382_v35 = vpop.permute.xlu0 %3381 }
 0x242   : > { %v3384_v38 = vunpack.i.h.bf16 %v3382_v35  ;;  %v3383_v6 = vunpack.i.l.bf16 %v3382_v35  ;;  %v3389_v12 = vunpack.i.h.bf16 %v3387_v32  ;;  %v3388_v55 = vunpack.i.l.bf16 %v3387_v32 }
 0x244   : > { %1571 = vst.msk [vmem:[#allocation2 + $0xa0] sm:$0xff] %vm1550_vm15, %v3383_v6  ;;  %v4890_v6 = vld [vmem:[%s5020_s3] ss:$0 sm:$0xff] }
 0x245   : > { %1572 = vst.msk [vmem:[#allocation2 + $0xa8] sm:$0xff] %vm1550_vm15, %v3384_v38  ;;  %v1986_v18 = vld [vmem:[#allocation2 + $0x60] sm:$0xff]  ;;  %v1987_v62 = vld [vmem:[#allocation2 + $0x68] sm:$0xff] }
 0x246   : > { %1761 = vst.msk [vmem:[#allocation2 + $0x9f] sm:$0xfe] %vm1728_vm1, %v3364_v28  ;;  %v2012_v45 = vpack.c.bf16 %v1987_v62, %v1986_v18  ;;  %v2104_v3 = vpop.f32.mrf.mxu0  ;;  %v2100_v28 = vadd.f32 %v4890_v6, %v2099_v20 }
 0x247   : > { %1763 = vst.msk [vmem:[#allocation2 + $0xaf] sm:$0x1] %vm1732_vm4, %v3389_v12  ;;  %v3432_v40 = vpop.permute.xlu2 %3431  ;;  %v2102_v12 = vadd.f32 %v4890_v6, %v2101_v34  ;;  %v2105_v1 = vadd.f32 %v4890_v6, %v2104_v3 }
 0x248   : > { %1956 = vst.msk [vmem:[#allocation2 + $0x9e] sm:$0xfc] %vm1923_vm3, %v3374_v43  ;;  %2452 = vmatmul.msk.bf16.gmra.mxu1 %vm426_vm0, %v2012_v45  ;;  %v3433_v60 = vunpack.i.l.bf16 %v3432_v40  ;;  %v3434_v17 = vunpack.i.h.bf16 %v3432_v40 }
 0x249   : > { %1762 = vst.msk [vmem:[#allocation2 + $0xa7] sm:$0xff] %vm1730_vm2, %v3388_v55  ;;  %v3402_v63 = vpop.permute.xlu1 %3401  ;;  %v3397_v51 = vpop.permute.xlu0 %3396  ;;  %v2180_v18 = vmax.f32 %v2102_v12, 0.0  ;;  %v2181_v45 = vmax.f32 %v2105_v1, 0.0 }
 0x24a   : > { %1957 = vst.msk [vmem:[#allocation2 + $0xa6] sm:$0xff] %vm1925_vm5, %v3393_v33  ;;  %v3404_v22 = vunpack.i.h.bf16 %v3402_v63  ;;  %v3403_v27 = vunpack.i.l.bf16 %v3402_v63  ;;  %v3398_v8 = vunpack.i.l.bf16 %v3397_v51  ;;  %v3399_v41 = vunpack.i.h.bf16 %v3397_v51 }
 0x24b   : > { %1958 = vst.msk [vmem:[#allocation2 + $0xae] sm:$0x3] %vm1927_vm6, %v3394_v36  ;;  %v2179_v33 = vmax.f32 %v2100_v28, 0.0  ;;  %v2212_v51 = vsel %vm426_vm0, %v2180_v18, 0.0 }
 0x24c   : > { %1448 = vst.msk [vmem:[#allocation2 + $0xee] sm:$0x3] %vm1405_vm12, %v3403_v27 }
 0x24d   : > { %1449 = vst.msk [vmem:[#allocation2 + $0xee] sm:$0xfc] %vm1401_vm13, %v3404_v22 }
 0x24e   : > { %1446 = vst.msk [vmem:[#allocation2 + $0xde] sm:$0xfc] %vm1401_vm13, %v3398_v8  ;;  %v2106_v13 = vpop.f32.mrf.mxu0 }
 0x24f   : > { %1447 = vst.msk [vmem:[#allocation2 + $0xe6] sm:$0xff] %vm1403_vm14, %v3399_v41  ;;  %v1874_v50 = vpop.permute.xlu2 %1873  ;;  %v2107_v62 = vadd.f32 %v4890_v6, %v2106_v13  ;;  %v2211_v41 = vsel %vm426_vm0, %v2179_v33, 0.0 }
 0x250   : > { %1579 = vst.msk [vmem:[#allocation2 + $0xe0] sm:$0xff] %vm1550_vm15, %v3408_v31  ;;  %v2214_v31 = vsel %vm426_vm0, %v2181_v45, 0.0 }
 0x251   : > { %1580 = vst.msk [vmem:[#allocation2 + $0xe8] sm:$0xff] %vm1550_vm15, %v3409_v49  ;;  %v1994_v57 = vld [vmem:[#allocation2 + $0xa0] sm:$0xff]  ;;  %v3417_v4 = vpop.permute.xlu1 %3416  ;;  %v3412_v23 = vpop.permute.xlu0 %3411  ;;  %v2182_v22 = vmax.f32 %v2107_v62, 0.0 }
 0x252   : > { %v1995_v25 = vld [vmem:[#allocation2 + $0xa8] sm:$0xff]  ;;  %v3418_v61 = vunpack.i.l.bf16 %v3417_v4  ;;  %v3414_v52 = vunpack.i.h.bf16 %v3412_v23  ;;  %v3413_v7 = vunpack.i.l.bf16 %v3412_v23  ;;  %v3419_v16 = vunpack.i.h.bf16 %v3417_v4 }
 0x253   : > { %v2016_v19 = vpack.c.bf16 %v1995_v25, %v1994_v57  ;;  %v2213_v57 = vadd.f32 %v2212_v51, %v2211_v41  ;;  %v2216_v4 = vsel %vm426_vm0, %v2182_v22, 0.0 }
 0x254   : > { %1775 = vst.msk [vmem:[#allocation2 + $0xef] sm:$0x1] %vm1732_vm4, %v3418_v61 }
 0x255   : > { %2456 = vmatmul.msk.bf16.gmra.mxu2 %vm426_vm0, %v2016_v19  ;;  %1773 = vst.msk [vmem:[#allocation2 + $0xdf] sm:$0xfe] %vm1728_vm1, %v3413_v7  ;;  %v2215_v61 = vadd.f32 %v2214_v31, %v2213_v57 }
 0x256   : > { %1774 = vst.msk [vmem:[#allocation2 + $0xe7] sm:$0xff] %vm1730_vm2, %v3414_v52  ;;  %v2109_v24 = vpop.f32.mrf.mxu0 }
 0x257   : > { %1968 = vst.msk [vmem:[#allocation2 + $0xde] sm:$0xfc] %vm1923_vm3, %v3423_v0  ;;  %v2110_v36 = vadd.f32 %v4890_v6, %v2109_v24 }
 0x258   : > { %1969 = vst.msk [vmem:[#allocation2 + $0xe6] sm:$0xff] %vm1925_vm5, %v3424_v44  ;;  %v2217_v44 = vadd.f32 %v2216_v4, %v2215_v61 }
 0x259   : > { %v3427_v21 = vpop.permute.xlu1 %3426  ;;  %v1868_v48 = vpop.permute.xlu0 %1867  ;;  %v2183_v49 = vmax.f32 %v2110_v36, 0.0 }
 0x25a   : > { %v3429_v59 = vunpack.i.h.bf16 %v3427_v21  ;;  %v3428_v30 = vunpack.i.l.bf16 %v3427_v21  ;;  %1970 = vst.msk [vmem:[#allocation2 + $0xee] sm:$0x3] %vm1927_vm6, %v1868_v48 }
 0x25b   : > { %v2218_v7 = vsel %vm426_vm0, %v2183_v49, 0.0 }
 0x25c   : > { %1450 = vst.msk [vmem:[#allocation2 + $0xf6] sm:$0xff] %vm1403_vm14, %v3428_v30  ;;  %v2134_v35 = vpop.f32.mrf.mxu2 }
 0x25d   : > { %1451 = vst.msk [vmem:[#allocation2 + $0xfe] sm:$0x3] %vm1405_vm12, %v3429_v59  ;;  %v2219_v59 = vadd.f32 %v2218_v7, %v2217_v44 }
 0x25e   : > { %1581 = vst.msk [vmem:[#allocation2 + $0xf0] sm:$0xff] %vm1550_vm15, %v3433_v60  ;;  %v2111_v39 = vpop.f32.mrf.mxu0 }
 0x25f   : > { %1582 = vst.msk [vmem:[#allocation2 + $0xf8] sm:$0xff] %vm1550_vm15, %v3434_v17  ;;  %v2002_v42 = vld [vmem:[#allocation2 + $0xe0] sm:$0xff]  ;;  %v2112_v27 = vadd.f32 %v4890_v6, %v2111_v39  ;;  %v2135_v39 = vadd.f32 %v4890_v6, %v2134_v35 }
 0x260   : > { %1776 = vst.msk [vmem:[#allocation2 + $0xef] sm:$0xfe] %vm1728_vm1, %v3419_v16 }
 0x261   : > { %v2003_v26 = vld [vmem:[#allocation2 + $0xe8] sm:$0xff]  ;;  %v3437_v29 = vpop.permute.xlu0 %3436  ;;  %v3442_v56 = vpop.permute.xlu1 %3441  ;;  %v2184_v23 = vmax.f32 %v2112_v27, 0.0  ;;  %v2193_v62 = vmax.f32 %v2135_v39, 0.0 }
 0x262   : > { %v2020_v37 = vpack.c.bf16 %v2003_v26, %v2002_v42  ;;  %v3439_v14 = vunpack.i.h.bf16 %v3437_v29  ;;  %v3438_v54 = vunpack.i.l.bf16 %v3437_v29  ;;  %v3444_v9 = vunpack.i.h.bf16 %v3442_v56 }
 0x263   : > { %v3443_v46 = vunpack.i.l.bf16 %v3442_v56  ;;  %v2220_v21 = vsel %vm426_vm0, %v2184_v23, 0.0  ;;  %v2291_v23 = vld [vmem:[%s5021_s4 + $0x18] sm:$0xff] }
 0x264   : > { %2460 = vmatmul.msk.bf16.gmra.mxu3 %vm426_vm0, %v2020_v37  ;;  %1778 = vst.msk [vmem:[#allocation2 + $0xff] sm:$0x1] %vm1732_vm4, %v3439_v14  ;;  %v2136_v15 = vpop.f32.mrf.mxu2  ;;  %v2221_v42 = vadd.f32 %v2220_v21, %v2219_v59  ;;  %2308 = vmatpush.msrb.mxu1 %v2291_v23 }
 0x265   : > { %1777 = vst.msk [vmem:[#allocation2 + $0xf7] sm:$0xff] %vm1730_vm2, %v3438_v54  ;;  %2464 = vmatmul.msk.f32.vlgmr.msrb.gmra.mxu2 %vm2321_vm8, %v2316_v47  ;;  %v2137_v12 = vadd.f32 %v4890_v6, %v2136_v15  ;;  %v2238_v15 = vsel %vm426_vm0, %v2193_v62, 0.0 }
 0x266   : > { %1971 = vst.msk [vmem:[#allocation2 + $0xee] sm:$0xfc] %vm1923_vm3, %v3443_v46 }
 0x267   : > { %1972 = vst.msk [vmem:[#allocation2 + $0xf6] sm:$0xff] %vm1925_vm5, %v3444_v9  ;;  %v2194_v51 = vmax.f32 %v2137_v12, 0.0 }
 0x268   : > { %1973 = vst.msk [vmem:[#allocation2 + $0xfe] sm:$0x3] %vm1927_vm6, %v1874_v50 }
 0x269   : > { %v2240_v57 = vsel %vm426_vm0, %v2194_v51, 0.0 }
 0x26c   : > { %v4896_v43 = vpop.f32.mrf.mxu3 }
 0x26e   : > { %v2004_v58 = vld [vmem:[#allocation2 + $0xf0] sm:$0xff] }
 0x26f   : > { %v2005_v2 = vld [vmem:[#allocation2 + $0xf8] sm:$0xff] }
 0x270   : > { %v2021_v53 = vpack.c.bf16 %v2005_v2, %v2004_v58  ;;  %v2114_v32 = vpop.f32.mrf.mxu0 }
 0x271   : > { %v2115_v11 = vadd.f32 %v4890_v6, %v2114_v32 }
 0x273   : > { %v2185_v19 = vmax.f32 %v2115_v11, 0.0 }
 0x274   : > { %2461 = vmatmul.msk.bf16.gmra.mxu3 %vm426_vm0, %v2021_v53  ;;  %v4908_v40 = vpop.f32.mrf.mxu3 }
 0x275   : > { %v2222_v60 = vsel %vm426_vm0, %v2185_v19, 0.0 }
 0x276   : > { %v2223_v56 = vadd.f32 %v2222_v60, %v2221_v42  ;;  %v2290_v60 = vld [vmem:[%s5021_s4 + $0x10] sm:$0xff] }
 0x277   : > { %2309 = vmatpush.msrb.mxu1 %v2290_v60  ;;  %v2320_v60 = vld [vmem:[%s5024_s7] sm:$0x1] }
 0x278   : > { %v2116_v38 = vpop.f32.mrf.mxu0 }
 0x279   : > { %v2117_v25 = vadd.f32 %v4890_v6, %v2116_v38 }
 0x27b   : > { %v2186_v48 = vmax.f32 %v2117_v25, 0.0 }
 0x27d   : > { %v2224_v26 = vsel %vm426_vm0, %v2186_v48, 0.0 }
 0x27e   : > { %v2225_v54 = vadd.f32 %v2224_v26, %v2223_v56 }
 0x283   : > { %v2139_v8 = vpop.f32.mrf.mxu2 }
 0x284   : > { %v2140_v33 = vadd.f32 %v4890_v6, %v2139_v8 }
 0x286   : > { %v2195_v41 = vmax.f32 %v2140_v33, 0.0 }
 0x288   : > { %v2242_v61 = vsel %vm426_vm0, %v2195_v41, 0.0 }
 0x28b   : > { %v2141_v17 = vpop.f32.mrf.mxu2 }
 0x28c   : > { %v2142_v35 = vadd.f32 %v4890_v6, %v2141_v17 }
 0x28e   : > { %v2196_v4 = vmax.f32 %v2142_v35, 0.0 }
 0x290   : > { %v2244_v44 = vsel %vm426_vm0, %v2196_v4, 0.0 }
 0x294   : > { %v4916_v20 = vpop.f32.mrf.mxu3 }
 0x296   : > { %v2124_v63 = vpop.f32.mrf.mxu1 }
 0x297   : > { %v2125_v37 = vadd.f32 %v4890_v6, %v2124_v63 }
 0x299   : > { %v2189_v10 = vmax.f32 %v2125_v37, 0.0 }
 0x29b   : > { %v2230_v3 = vsel %vm426_vm0, %v2189_v10, 0.0 }
 0x29c   : > { %v2161_v32 = vpop.f32.mrf.mxu3 }
 0x29e   : > { %v2126_v30 = vpop.f32.mrf.mxu1 }
 0x29f   : > { %v2127_v34 = vadd.f32 %v4890_v6, %v2126_v30 }
 0x2a0   : > { %v2119_v55 = vpop.f32.mrf.mxu0 }
 0x2a1   : > { %v2120_v0 = vadd.f32 %v4890_v6, %v2119_v55  ;;  %v2190_v13 = vmax.f32 %v2127_v34, 0.0  ;;  %v2160_v34 = vadd.f32 %v4890_v6, %v4916_v20  ;;  %v2289_v20 = vld [vmem:[%s5021_s4 + $0x8] sm:$0xff] }
 0x2a2   : > { %2310 = vmatpush.msrb.mxu1 %v2289_v20 }
 0x2a3   : > { %v2187_v16 = vmax.f32 %v2120_v0, 0.0  ;;  %v2232_v28 = vsel %vm426_vm0, %v2190_v13, 0.0  ;;  %v2203_v13 = vmax.f32 %v2160_v34, 0.0 }
 0x2a5   : > { %v2226_v14 = vsel %vm426_vm0, %v2187_v16, 0.0  ;;  %v2155_v16 = vadd.f32 %v4890_v6, %v4896_v43 }
 0x2a6   : > { %v2227_v46 = vadd.f32 %v2226_v14, %v2225_v54  ;;  %v2157_v14 = vadd.f32 %v4890_v6, %v4908_v40 }
 0x2a8   : > { %v2121_v52 = vpop.f32.mrf.mxu0  ;;  %v2202_v10 = vmax.f32 %v2157_v14, 0.0 }
 0x2a9   : > { %v2122_v5 = vadd.f32 %v4890_v6, %v2121_v52 }
 0x2ab   : > { %v2188_v29 = vmax.f32 %v2122_v5, 0.0 }
 0x2ad   : > { %v2228_v9 = vsel %vm426_vm0, %v2188_v29, 0.0 }
 0x2ae   : > { %v2229_v53 = vadd.f32 %v2228_v9, %v2227_v46  ;;  %v2201_v9 = vmax.f32 %v2155_v16, 0.0 }
 0x2b0   : > { %v2231_v24 = vadd.f32 %v2230_v3, %v2229_v53  ;;  %v2256_v3 = vsel %vm426_vm0, %v2202_v10, 0.0 }
 0x2b2   : > { %v2233_v18 = vadd.f32 %v2232_v28, %v2231_v24  ;;  %v2258_v24 = vsel %vm426_vm0, %v2203_v13, 0.0 }
 0x2b3   : > { %v2144_v58 = vpop.f32.mrf.mxu2 }
 0x2b4   : > { %v2145_v31 = vadd.f32 %v4890_v6, %v2144_v58  ;;  %v2254_v58 = vsel %vm426_vm0, %v2201_v9, 0.0  ;;  %v2292_v9 = vld [vmem:[%s5022_s5] sm:$0x1] }
 0x2b6   : > { %v2197_v52 = vmax.f32 %v2145_v31, 0.0 }
 0x2b8   : > { %v2246_v5 = vsel %vm426_vm0, %v2197_v52, 0.0 }
 0x2bb   : > { %v2146_v45 = vpop.f32.mrf.mxu2 }
 0x2bc   : > { %v2147_v8 = vadd.f32 %v4890_v6, %v2146_v45 }
 0x2be   : > { %v2198_v21 = vmax.f32 %v2147_v8, 0.0 }
 0x2c0   : > { %v2248_v17 = vsel %vm426_vm0, %v2198_v21, 0.0 }
 0x2c4   : > { %v2164_v49 = vpop.f32.mrf.mxu3 }
 0x2c5   : > { %v2129_v50 = vpop.f32.mrf.mxu1 }
 0x2c6   : > { %v2130_v2 = vadd.f32 %v4890_v6, %v2129_v50 }
 0x2c8   : > { %v2191_v47 = vmax.f32 %v2130_v2, 0.0 }
 0x2ca   : > { %v2234_v1 = vsel %vm426_vm0, %v2191_v47, 0.0  ;;  %v2162_v47 = vadd.f32 %v4890_v6, %v2161_v32 }
 0x2cb   : > { %v2235_v63 = vadd.f32 %v2234_v1, %v2233_v18  ;;  %v2288_v1 = vld [vmem:[%s5021_s4] sm:$0xff] }
 0x2cc   : > { %v2166_v42 = vpop.f32.mrf.mxu3  ;;  %v2204_v39 = vmax.f32 %v2162_v47, 0.0  ;;  %2311 = vmatpush.msrb.mxu1 %v2288_v1 }
 0x2cd   : > { %v2131_v38 = vpop.f32.mrf.mxu1  ;;  %v2167_v18 = vadd.f32 %v4890_v6, %v2166_v42 }
 0x2ce   : > { %v2132_v55 = vadd.f32 %v4890_v6, %v2131_v38  ;;  %v2165_v38 = vadd.f32 %v4890_v6, %v2164_v49 }
 0x2cf   : > { %v2206_v45 = vmax.f32 %v2167_v18, 0.0 }
 0x2d0   : > { %v2192_v36 = vmax.f32 %v2132_v55, 0.0  ;;  %v2260_v55 = vsel %vm426_vm0, %v2204_v39, 0.0  ;;  %v2205_v32 = vmax.f32 %v2165_v38, 0.0 }
 0x2d2   : > { %v2236_v22 = vsel %vm426_vm0, %v2192_v36, 0.0  ;;  %v2262_v33 = vsel %vm426_vm0, %v2205_v32, 0.0 }
 0x2d3   : > { %v2237_v27 = vadd.f32 %v2236_v22, %v2235_v63  ;;  %v3521_v22 = vmov 256.0  }
 0x2d4   : > { %3446 = vrcp.f32 %v3521_v22 }
 0x2d5   : > { %v2239_v11 = vadd.f32 %v2238_v15, %v2237_v27  ;;  %v2264_v15 = vsel %vm426_vm0, %v2206_v45, 0.0 }
 0x2d7   : > { %v2241_v25 = vadd.f32 %v2240_v57, %v2239_v11 }
 0x2d8   : > { %v2149_v7 = vpop.f32.mrf.mxu2 }
 0x2d9   : > { %v2243_v19 = vadd.f32 %v2242_v61, %v2241_v25  ;;  %v2150_v0 = vadd.f32 %v4890_v6, %v2149_v7 }
 0x2da   : > { %v3447_v57 = vpop.eup %3446 }
 0x2db   : > { %v2245_v48 = vadd.f32 %v2244_v44, %v2243_v19  ;;  %v2199_v59 = vmax.f32 %v2150_v0, 0.0  ;;  %v2281_v7 = vmul.f32 256.0, %v3447_v57  ;;  %vm2285_vm9 = vweird.f32 %v3447_v57 }
 0x2dd   : > { %v2247_v30 = vadd.f32 %v2246_v5, %v2245_v48  ;;  %v2250_v56 = vsel %vm426_vm0, %v2199_v59, 0.0  ;;  %v2282_v48 = vsub.f32 1.0, %v2281_v7 }
 0x2df   : > { %v2249_v26 = vadd.f32 %v2248_v17, %v2247_v30  ;;  %v2283_v30 = vmul.f32 %v3447_v57, %v2282_v48 }
 0x2e0   : > { %v2151_v29 = vpop.f32.mrf.mxu2 }
 0x2e1   : > { %v2152_v37 = vadd.f32 %v4890_v6, %v2151_v29  ;;  %v2251_v54 = vadd.f32 %v2250_v56, %v2249_v26  ;;  %v2284_v26 = vadd.f32 %v3447_v57, %v2283_v30 }
 0x2e3   : > { %v2200_v46 = vmax.f32 %v2152_v37, 0.0  ;;  %v2286_v37 = vsel %vm2285_vm9, %v3447_v57, %v2284_v26 }
 0x2e5   : > { %v2252_v50 = vsel %vm426_vm0, %v2200_v46, 0.0 }
 0x2e6   : > { %v2253_v43 = vadd.f32 %v2252_v50, %v2251_v54 }
 0x2e7   : > { %v2169_v2 = vpop.f32.mrf.mxu3 }
 0x2e8   : > { %v2255_v53 = vadd.f32 %v2254_v58, %v2253_v43  ;;  %v2170_v36 = vadd.f32 %v4890_v6, %v2169_v2  ;;  %v2346_v16 = vpop.f32.mrf.mxu2 }
 0x2ea   : > { %v2257_v40 = vadd.f32 %v2256_v3, %v2255_v53  ;;  %v2207_v41 = vmax.f32 %v2170_v36, 0.0 }
 0x2ec   : > { %v2259_v12 = vadd.f32 %v2258_v24, %v2257_v40  ;;  %v2266_v4 = vsel %vm426_vm0, %v2207_v41, 0.0 }
 0x2ee   : > { %v2261_v62 = vadd.f32 %v2260_v55, %v2259_v12 }
 0x2ef   : > { %v2171_v28 = vpop.f32.mrf.mxu3 }
 0x2f0   : > { %v2172_v63 = vadd.f32 %v4890_v6, %v2171_v28  ;;  %v2263_v51 = vadd.f32 %v2262_v33, %v2261_v62 }
 0x2f2   : > { %v2208_v31 = vmax.f32 %v2172_v63, 0.0  ;;  %v2265_v49 = vadd.f32 %v2264_v15, %v2263_v51 }
 0x2f4   : > { %v2268_v8 = vsel %vm426_vm0, %v2208_v31, 0.0  ;;  %v2267_v23 = vadd.f32 %v2266_v4, %v2265_v49 }
 0x2f6   : > { %v2269_v19 = vadd.f32 %v2268_v8, %v2267_v23 }
 0x2f7   : > { %v2174_v35 = vpop.f32.mrf.mxu3 }
 0x2f8   : > { %v2175_v27 = vadd.f32 %v4890_v6, %v2174_v35 }
 0x2fa   : > { %v2209_v11 = vmax.f32 %v2175_v27, 0.0 }
 0x2fc   : > { %v2270_v61 = vsel %vm426_vm0, %v2209_v11, 0.0 }
 0x2fd   : > { %v2271_v44 = vadd.f32 %v2270_v61, %v2269_v19 }
 0x2ff   : > { %v2176_v25 = vpop.f32.mrf.mxu3 }
 0x300   : > { %v2177_v52 = vadd.f32 %v4890_v6, %v2176_v25  ;;  %v2347_v6 = vadd.f32 %v2346_v16, %v2320_v60 }
 0x302   : > { %v2210_v0 = vmax.f32 %v2177_v52, 0.0  ;;  %2350 = vrot.lane.b32.xlu0 %v2347_v6, %s3522_s18 }
 0x304   : > { %v2272_v21 = vsel %vm426_vm0, %v2210_v0, 0.0 }
 0x305   : > { %v2273_v5 = vadd.f32 %v2272_v21, %v2271_v44 }
 0x307   : > { %v2274_v59 = vrot.slane %v2273_v5, 4 }
 0x309   : > { %v2275_v17 = vadd.f32 %v2274_v59, %v2273_v5 }
 0x30b   : > { %v2276_v42 = vrot.slane %v2275_v17, 2 }
 0x30d   : > { %v2277_v29 = vadd.f32 %v2276_v42, %v2275_v17 }
 0x30f   : > { %v2278_v56 = vrot.slane %v2277_v29, 1 }
 0x311   : > { %v2279_v14 = vadd.f32 %v2278_v56, %v2277_v29 }
 0x313   : > { %v2287_v54 = vmul.f32 %v2286_v37, %v2279_v14 }
 0x315   : > { %2462 = vmatmul.msk.f32.vlgmr.msrb.gmra.mxu1 %vm426_vm0, %v2287_v54 }
 0x374   : > { %v2351_v50 = vpop.permute.xlu0 %2350 }
 0x392   : > { %v2313_v46 = vpop.f32.mrf.mxu1 }
 0x393   : > { %v2314_v10 = vadd.f32 %v2313_v46, %v2292_v9 }
 0x395   : > { %v2353_v34 = vsel %vm426_vm0, %v2314_v10, %v2351_v50 }
 0x396   : > { %2355 = vst.msk [vmem:[%s308_s24] sm:$0x1] %vm2354_vm10, %v2353_v34 }
 0x397   : > { %3475 = shalt.err (!%p3472_p3)
}
 0x398   : > { %2520 = dma.vmem_to_hbm [thread:$0]  (%p3606_p5), %s2368_s25, 16, %s2370_s26, %s2357_s10  }
 0x399 PF: > { %p2526_p4 = scmp.ge.s32.totalorder %s3510_s30, 2  ;;  %s2381_s19 = sand.u32 1, %s3498_s27  }
 0x39a   : > { %s2382_s21 = scalar_lea.sflag [#allocation4], %s2381_s19 }
 0x39b   : > { %p2523_p7 = pnand %p2526_p4, %p3610_p6 }
 0x39d   : > { %p2524_p8 = pneg %p2523_p7 }
 0x39f   : > { %3493 = dma.done.wait (%p2524_p8), %s2382_s21, 16  }
 0x3a0   : > { %3495 = vsyncadd (%p2524_p8), %s2382_s21, 4294967280  ;;  %p18_p9 = scmp.ge.s32.totalorder %s3593_s11, 4   ;;  %s5099_s27 = smov %s3502_s28 }
 0x3a1   : > { %s5100_s28 = smov %s3506_s29  ;;  %s5101_s29 = smov %s3604_s14 }
 0x3a2   : > { %s5102_s30 = smov %s3593_s11  ;;  %20 = sbr.rel (!%p18_p9) target bundleno = 3 (0x3), region = 90 }
 0x3a7   :  { %2387 = vsyncpa [#allocation4], 1 }
 0x3a8   :  { %2389 = vsyncpa [#allocation4 + $0x1], 1 }

</bundles_post_ra>
